<compile_context>
chip_gen: v7x
topology: tpu7x:2x2x1
jax: 0.10.0
libtpu: 0.0.40
codegen_flags: <defaults>
</compile_context>

<pallas_src>
import jax
import jax.numpy as jnp
from jax.experimental import pallas as pl
from jax.experimental.pallas import tpu as pltpu

KH = KW = 3                      # kernel_size = 3
PAD = 1                          # padding = 1
EPS = 1e-5                       # BatchNorm2d default eps
LANE = 128                       # lane width: pad channels to multiples of this
VMEM_LIMIT = 48 * 1024 * 1024    # fits v7x (64 MiB physical) with headroom


def _round_up(x, m):
    return (x + m - 1) // m * m


# --------------------------------------------------------------------------
# Pass 1: conv3x3 + bias + ReLU + per-sample channel statistics
# --------------------------------------------------------------------------
def _conv_relu_stats_kernel(xp_ref, w_ref, b_ref, y_ref, stats_ref):
    """Per grid step (one batch sample):

    xp_ref:    (1, H+2, W+2, Cin_p)   bf16  zero-padded NHWC input tile
    w_ref:     (KH*KW*Cin_p, Cout_p)  bf16  im2col-flattened conv weights
    b_ref:     (1, Cout_p)            f32   conv bias
    y_ref:     (1, H, W, Cout_p)      f32   conv + bias + ReLU output
    stats_ref: (1, 2, Cout_p)         f32   row0 = sum(y), row1 = sum(y*y)
    """
    _, H, W, Cout_p = y_ref.shape
    Cin_p = xp_ref.shape[-1]

    # im2col: 9 shifted windows concatenated on the 128-aligned channel axis
    # -> one deep MXU contraction (K = KH*KW*Cin_p) instead of 9 shallow dots.
    patches = jnp.concatenate(
        [xp_ref[0, kh:kh + H, kw:kw + W, :]
         for kh in range(KH) for kw in range(KW)],
        axis=-1)                                         # (H, W, 9*Cin_p) bf16
    patches = patches.reshape(H * W, KH * KW * Cin_p)

    acc = jnp.dot(patches, w_ref[...],
                  preferred_element_type=jnp.float32)    # (H*W, Cout_p) f32

    y = jnp.maximum(acc + b_ref[...], 0.0)               # bias + ReLU
    y_ref[...] = y.reshape(1, H, W, Cout_p).astype(y_ref.dtype)

    # Channel stats computed in the same pass (no second sweep over y).
    s = jnp.sum(y, axis=0, keepdims=True)                # (1, Cout_p)
    sq = jnp.sum(y * y, axis=0, keepdims=True)           # (1, Cout_p)
    stats_ref[...] = jnp.concatenate([s, sq], axis=0)[None]


# --------------------------------------------------------------------------
# Pass 2: BatchNorm applied as a single FMA (lane-dense, row-tiled)
# --------------------------------------------------------------------------
def _bn_apply_kernel(y_ref, scale_ref, shift_ref, o_ref):
    o_ref[...] = y_ref[...] * scale_ref[...] + shift_ref[...]


# --------------------------------------------------------------------------
# Wrapper: NCHW in / NCHW out, matching the PyTorch module
# --------------------------------------------------------------------------
def conv_block(x_nchw, weight, bias, gamma, beta):
    """x_nchw: (N, Cin, H, W) f32; weight: (Cout, Cin, KH, KW) (torch layout).
    Returns (N, Cout, H, W) f32 == Conv2d(3x3,s1,p1,bias) + ReLU + BN (train)."""
    N, Cin, H, W = x_nchw.shape
    Cout = weight.shape[0]
    Cin_p = _round_up(Cin, LANE)
    Cout_p = _round_up(Cout, LANE)
    TH = 8 if H % 8 == 0 else H          # row-tile height for the BN pass

    # ---- glue: NCHW -> lane-dense NHWC, bf16 operands, zero padding --------
    # TODO(synk): the spatial zero-pad + transposes are full HBM round-trips; a
    # halo-aware (pl.Element) index_map reading the unpadded tensor would remove
    # them — omitted here for robustness.
    x_nhwc = jnp.transpose(x_nchw, (0, 2, 3, 1)).astype(jnp.bfloat16)
    x_pad = jnp.pad(x_nhwc, ((0, 0), (PAD, PAD), (PAD, PAD), (0, Cin_p - Cin)))

    w_hwio = jnp.transpose(weight, (2, 3, 1, 0))              # (KH,KW,Cin,Cout)
    w_hwio = jnp.pad(w_hwio, ((0, 0), (0, 0),
                              (0, Cin_p - Cin), (0, Cout_p - Cout)))
    w_flat = w_hwio.reshape(KH * KW * Cin_p, Cout_p).astype(jnp.bfloat16)

    b_p = jnp.pad(bias, (0, Cout_p - Cout)).astype(jnp.float32).reshape(1, Cout_p)
    gamma_p = jnp.pad(gamma, (0, Cout_p - Cout)).astype(jnp.float32)
    beta_p = jnp.pad(beta, (0, Cout_p - Cout)).astype(jnp.float32)

    # ---- pass 1: conv + bias + ReLU + per-sample stats ----------------------
    flops1 = 2 * N * H * W * KH * KW * Cin_p * Cout_p
    bytes1 = (x_pad.size * 2 + w_flat.size * 2 + b_p.size * 4
              + N * H * W * Cout_p * 4 + N * 2 * Cout_p * 4)
    y, stats = pl.pallas_call(
        _conv_relu_stats_kernel,
        out_shape=(jax.ShapeDtypeStruct((N, H, W, Cout_p), jnp.float32),
                   jax.ShapeDtypeStruct((N, 2, Cout_p), jnp.float32)),
        grid=(N,),
        in_specs=[
            pl.BlockSpec((1, H + 2 * PAD, W + 2 * PAD, Cin_p),
                         lambda n: (n, 0, 0, 0)),
            pl.BlockSpec((KH * KW * Cin_p, Cout_p), lambda n: (0, 0)),
            pl.BlockSpec((1, Cout_p), lambda n: (0, 0)),
        ],
        out_specs=(
            pl.BlockSpec((1, H, W, Cout_p), lambda n: (n, 0, 0, 0)),
            pl.BlockSpec((1, 2, Cout_p), lambda n: (n, 0, 0)),
        ),
        compiler_params=pltpu.CompilerParams(
            dimension_semantics=("parallel",),
            vmem_limit_bytes=VMEM_LIMIT),
        cost_estimate=pl.CostEstimate(flops=flops1, transcendentals=0,
                                      bytes_accessed=bytes1),
    )(x_pad, w_flat, b_p)

    # ---- tiny per-channel reduction + BN affine fold (plain-JAX glue) -------
    count = jnp.float32(N * H * W)
    tot = jnp.sum(stats, axis=0)                             # (2, Cout_p)
    mean = tot[0] / count
    var = jnp.maximum(tot[1] / count - mean * mean, 0.0)     # biased variance
    scale = gamma_p * jax.lax.rsqrt(var + EPS)
    shift = beta_p - mean * scale
    scale2 = scale.reshape(1, Cout_p)
    shift2 = shift.reshape(1, Cout_p)

    # ---- pass 2: row-tiled normalization (single FMA per element) -----------
    flops2 = 2 * N * H * W * Cout_p
    bytes2 = 2 * N * H * W * Cout_p * 4 + 2 * 2 * Cout_p * 4
    out_nhwc = pl.pallas_call(
        _bn_apply_kernel,
        out_shape=jax.ShapeDtypeStruct((N, H, W, Cout_p), jnp.float32),
        grid=(N, H // TH),
        in_specs=[
            pl.BlockSpec((1, TH, W, Cout_p), lambda n, h: (n, h, 0, 0)),
            pl.BlockSpec((1, Cout_p), lambda n, h: (0, 0)),
            pl.BlockSpec((1, Cout_p), lambda n, h: (0, 0)),
        ],
        out_specs=pl.BlockSpec((1, TH, W, Cout_p), lambda n, h: (n, h, 0, 0)),
        compiler_params=pltpu.CompilerParams(
            dimension_semantics=("parallel", "parallel"),
            vmem_limit_bytes=VMEM_LIMIT),
        cost_estimate=pl.CostEstimate(flops=flops2, transcendentals=0,
                                      bytes_accessed=bytes2),
    )(y, scale2, shift2)

    # glue back to torch NCHW, drop channel padding
    return jnp.transpose(out_nhwc[..., :Cout], (0, 3, 1, 2))


def reference(x_nchw, weight, bias, gamma, beta):
    """Pure-JAX reference. The kernel feeds the MXU bf16 operands (f32 accum),
    so the reference rounds x/weight to bf16 first; remaining differences are
    only f32 accumulation order and the variance formulation."""
    xb = x_nchw.astype(jnp.bfloat16).astype(jnp.float32)
    wb = weight.astype(jnp.bfloat16).astype(jnp.float32)
    y = jax.lax.conv_general_dilated(
        xb, wb, window_strides=(1, 1),
        padding=((PAD, PAD), (PAD, PAD)),
        dimension_numbers=("NCHW", "OIHW", "NCHW"),
        precision=jax.lax.Precision.HIGHEST)
    y = jnp.maximum(y + bias.reshape(1, -1, 1, 1), 0.0)
    mean = jnp.mean(y, axis=(0, 2, 3), keepdims=True)
    var = jnp.mean((y - mean) ** 2, axis=(0, 2, 3), keepdims=True)
    y = (y - mean) * jax.lax.rsqrt(var + EPS)
    return y * gamma.reshape(1, -1, 1, 1) + beta.reshape(1, -1, 1, 1)


if __name__ == "__main__":
    key = jax.random.PRNGKey(0)
    N, Cin, Cout, H, W = 2, 4, 8, 16, 16

    kx, kw_, kb = jax.random.split(key, 3)
    x = jax.random.normal(kx, (N, Cin, H, W), dtype=jnp.float32)

    # Deterministic synthetic parameters (torch-like shapes / init bounds).
    fan_in = Cin * KH * KW
    bound = 1.0 / float(fan_in) ** 0.5
    weight = jax.random.uniform(kw_, (Cout, Cin, KH, KW), jnp.float32,
                                minval=-bound, maxval=bound)
    bias = jax.random.uniform(kb, (Cout,), jnp.float32,
                              minval=-bound, maxval=bound)
    gamma = jnp.ones((Cout,), jnp.float32)    # BatchNorm2d default weight init
    beta = jnp.zeros((Cout,), jnp.float32)    # BatchNorm2d default bias init

    out = jax.jit(conv_block)(x, weight, bias, gamma, beta)
    out = jax.block_until_ready(out)

    ref = reference(x, weight, bias, gamma, beta)
    assert out.shape == (N, Cout, H, W)
    max_err = jnp.max(jnp.abs(out - ref))
    assert jnp.allclose(out, ref, atol=2e-3, rtol=2e-3), \
        f"mismatch vs reference, max abs err = {max_err}"

    print("KERNEL_OK")
</pallas_src>

<mosaic_0001>
module attributes {stable_mosaic.version = 11 : i64} {
  func.func @_conv_relu_stats_kernel(%arg0: i32, %arg1: memref<1x18x18x128xbf16, #tpu.memory_space<vmem>>, %arg2: memref<1152x128xbf16, #tpu.memory_space<vmem>>, %arg3: memref<1x128xf32, #tpu.memory_space<vmem>>, %arg4: memref<1x16x16x128xf32, #tpu.memory_space<vmem>>, %arg5: memref<1x2x128xf32, #tpu.memory_space<vmem>>) attributes {dimension_semantics = [#tpu.dimension_semantics<parallel>], iteration_bounds = array<i64: 2>, scalar_prefetch = 0 : i64, scratch_operands = 0 : i64, tpu.core_type = #tpu.core_type<tc>, window_params = [{transform_indices = @transform_0, window_bounds = array<i64: 1, 18, 18, 128>}, {pipeline_mode = #tpu.pipeline_mode<synchronous>, transform_indices = @transform_1, window_bounds = array<i64: 1152, 128>}, {pipeline_mode = #tpu.pipeline_mode<synchronous>, transform_indices = @transform_2, window_bounds = array<i64: 1, 128>}, {transform_indices = @transform_3, window_bounds = array<i64: 1, 16, 16, 128>}, {transform_indices = @transform_4, window_bounds = array<i64: 1, 2, 128>}]} {
    %c0 = arith.constant 0 : index
    %c0_0 = arith.constant 0 : index
    %c0_1 = arith.constant 0 : index
    %c0_2 = arith.constant 0 : index
    %0 = vector.load %arg1[%c0, %c0_0, %c0_1, %c0_2] : memref<1x18x18x128xbf16, #tpu.memory_space<vmem>>, vector<1x16x16x128xbf16>
    %1 = vector.shape_cast %0 : vector<1x16x16x128xbf16> to vector<16x16x128xbf16>
    %c0_3 = arith.constant 0 : index
    %c0_4 = arith.constant 0 : index
    %c1 = arith.constant 1 : index
    %c0_5 = arith.constant 0 : index
    %2 = vector.load %arg1[%c0_3, %c0_4, %c1, %c0_5] : memref<1x18x18x128xbf16, #tpu.memory_space<vmem>>, vector<1x16x16x128xbf16>
    %3 = vector.shape_cast %2 : vector<1x16x16x128xbf16> to vector<16x16x128xbf16>
    %c0_6 = arith.constant 0 : index
    %c0_7 = arith.constant 0 : index
    %c2 = arith.constant 2 : index
    %c0_8 = arith.constant 0 : index
    %4 = vector.load %arg1[%c0_6, %c0_7, %c2, %c0_8] : memref<1x18x18x128xbf16, #tpu.memory_space<vmem>>, vector<1x16x16x128xbf16>
    %5 = vector.shape_cast %4 : vector<1x16x16x128xbf16> to vector<16x16x128xbf16>
    %c0_9 = arith.constant 0 : index
    %c1_10 = arith.constant 1 : index
    %c0_11 = arith.constant 0 : index
    %c0_12 = arith.constant 0 : index
    %6 = vector.load %arg1[%c0_9, %c1_10, %c0_11, %c0_12] : memref<1x18x18x128xbf16, #tpu.memory_space<vmem>>, vector<1x16x16x128xbf16>
    %7 = vector.shape_cast %6 : vector<1x16x16x128xbf16> to vector<16x16x128xbf16>
    %c0_13 = arith.constant 0 : index
    %c1_14 = arith.constant 1 : index
    %c1_15 = arith.constant 1 : index
    %c0_16 = arith.constant 0 : index
    %8 = vector.load %arg1[%c0_13, %c1_14, %c1_15, %c0_16] : memref<1x18x18x128xbf16, #tpu.memory_space<vmem>>, vector<1x16x16x128xbf16>
    %9 = vector.shape_cast %8 : vector<1x16x16x128xbf16> to vector<16x16x128xbf16>
    %c0_17 = arith.constant 0 : index
    %c1_18 = arith.constant 1 : index
    %c2_19 = arith.constant 2 : index
    %c0_20 = arith.constant 0 : index
    %10 = vector.load %arg1[%c0_17, %c1_18, %c2_19, %c0_20] : memref<1x18x18x128xbf16, #tpu.memory_space<vmem>>, vector<1x16x16x128xbf16>
    %11 = vector.shape_cast %10 : vector<1x16x16x128xbf16> to vector<16x16x128xbf16>
    %c0_21 = arith.constant 0 : index
    %c2_22 = arith.constant 2 : index
    %c0_23 = arith.constant 0 : index
    %c0_24 = arith.constant 0 : index
    %12 = vector.load %arg1[%c0_21, %c2_22, %c0_23, %c0_24] : memref<1x18x18x128xbf16, #tpu.memory_space<vmem>>, vector<1x16x16x128xbf16>
    %13 = vector.shape_cast %12 : vector<1x16x16x128xbf16> to vector<16x16x128xbf16>
    %c0_25 = arith.constant 0 : index
    %c2_26 = arith.constant 2 : index
    %c1_27 = arith.constant 1 : index
    %c0_28 = arith.constant 0 : index
    %14 = vector.load %arg1[%c0_25, %c2_26, %c1_27, %c0_28] : memref<1x18x18x128xbf16, #tpu.memory_space<vmem>>, vector<1x16x16x128xbf16>
    %15 = vector.shape_cast %14 : vector<1x16x16x128xbf16> to vector<16x16x128xbf16>
    %c0_29 = arith.constant 0 : index
    %c2_30 = arith.constant 2 : index
    %c2_31 = arith.constant 2 : index
    %c0_32 = arith.constant 0 : index
    %16 = vector.load %arg1[%c0_29, %c2_30, %c2_31, %c0_32] : memref<1x18x18x128xbf16, #tpu.memory_space<vmem>>, vector<1x16x16x128xbf16>
    %17 = vector.shape_cast %16 : vector<1x16x16x128xbf16> to vector<16x16x128xbf16>
    %18 = tpu.concatenate %1, %3, %5, %7, %9, %11, %13, %15, %17 in 2 : vector<16x16x128xbf16>, vector<16x16x128xbf16>, vector<16x16x128xbf16>, vector<16x16x128xbf16>, vector<16x16x128xbf16>, vector<16x16x128xbf16>, vector<16x16x128xbf16>, vector<16x16x128xbf16>, vector<16x16x128xbf16> -> vector<16x16x1152xbf16>
    %19 = vector.shape_cast %18 : vector<16x16x1152xbf16> to vector<256x1152xbf16>
    %c0_33 = arith.constant 0 : index
    %c0_34 = arith.constant 0 : index
    %20 = vector.load %arg2[%c0_33, %c0_34] : memref<1152x128xbf16, #tpu.memory_space<vmem>>, vector<1152x128xbf16>
    %cst = arith.constant dense<0.000000e+00> : vector<256x128xf32>
    %21 = tpu.matmul %19, %20, %cst {dimension_numbers = #tpu.dot_dimension_numbers<[1], [0], [0], [1], [0, 0, 1, 1], [], []>} : vector<256x1152xbf16>, vector<1152x128xbf16>, vector<256x128xf32> -> vector<256x128xf32>
    %c0_35 = arith.constant 0 : index
    %c0_36 = arith.constant 0 : index
    %22 = vector.load %arg3[%c0_35, %c0_36] : memref<1x128xf32, #tpu.memory_space<vmem>>, vector<1x128xf32>
    %23 = vector.broadcast %22 : vector<1x128xf32> to vector<256x128xf32>
    %24 = arith.addf %21, %23 : vector<256x128xf32>
    %cst_37 = arith.constant 0.000000e+00 : f32
    %25 = vector.broadcast %cst_37 : f32 to vector<256x128xf32>
    %26 = arith.maximumf %24, %25 : vector<256x128xf32>
    %27 = vector.shape_cast %26 : vector<256x128xf32> to vector<1x16x16x128xf32>
    %c0_38 = arith.constant 0 : index
    %c0_39 = arith.constant 0 : index
    %c0_40 = arith.constant 0 : index
    %c0_41 = arith.constant 0 : index
    %28 = vector.load %arg4[%c0_38, %c0_39, %c0_40, %c0_41] : memref<1x16x16x128xf32, #tpu.memory_space<vmem>>, vector<1x16x16x128xf32>
    tpu.vector_store %arg4[%c0_38, %c0_39, %c0_40, %c0_41], %27 {strides = array<i32>} : memref<1x16x16x128xf32, #tpu.memory_space<vmem>>, vector<1x16x16x128xf32>,
    %cst_42 = arith.constant dense<0.000000e+00> : vector<128xf32>
    %29 = vector.multi_reduction <add>, %26, %cst_42 [0] : vector<256x128xf32> to vector<128xf32>
    %30 = vector.shape_cast %29 : vector<128xf32> to vector<1x128xf32>
    %31 = arith.mulf %26, %26 : vector<256x128xf32>
    %cst_43 = arith.constant dense<0.000000e+00> : vector<128xf32>
    %32 = vector.multi_reduction <add>, %31, %cst_43 [0] : vector<256x128xf32> to vector<128xf32>
    %33 = vector.shape_cast %32 : vector<128xf32> to vector<1x128xf32>
    %34 = tpu.concatenate %30, %33 in 0 : vector<1x128xf32>, vector<1x128xf32> -> vector<2x128xf32>
    %35 = vector.shape_cast %34 : vector<2x128xf32> to vector<1x2x128xf32>
    %c0_44 = arith.constant 0 : index
    %c0_45 = arith.constant 0 : index
    %c0_46 = arith.constant 0 : index
    %36 = vector.load %arg5[%c0_44, %c0_45, %c0_46] : memref<1x2x128xf32, #tpu.memory_space<vmem>>, vector<1x2x128xf32>
    tpu.vector_store %arg5[%c0_44, %c0_45, %c0_46], %35 {strides = array<i32>} : memref<1x2x128xf32, #tpu.memory_space<vmem>>, vector<1x2x128xf32>,
    return
  }
  func.func @transform_0(%arg0: i32) -> (i32, i32, i32, i32) {
    %c0_i32 = arith.constant 0 : i32
    %c0_i32_0 = arith.constant 0 : i32
    %c0_i32_1 = arith.constant 0 : i32
    %c0_i32_2 = arith.constant 0 : i32
    return %arg0, %c0_i32, %c0_i32_0, %c0_i32_1 : i32, i32, i32, i32
  }
  func.func @transform_1(%arg0: i32) -> (i32, i32) {
    %c0_i32 = arith.constant 0 : i32
    %c0_i32_0 = arith.constant 0 : i32
    %c0_i32_1 = arith.constant 0 : i32
    return %c0_i32, %c0_i32_0 : i32, i32
  }
  func.func @transform_2(%arg0: i32) -> (i32, i32) {
    %c0_i32 = arith.constant 0 : i32
    %c0_i32_0 = arith.constant 0 : i32
    %c0_i32_1 = arith.constant 0 : i32
    return %c0_i32, %c0_i32_0 : i32, i32
  }
  func.func @transform_3(%arg0: i32) -> (i32, i32, i32, i32) {
    %c0_i32 = arith.constant 0 : i32
    %c0_i32_0 = arith.constant 0 : i32
    %c0_i32_1 = arith.constant 0 : i32
    %c0_i32_2 = arith.constant 0 : i32
    return %arg0, %c0_i32, %c0_i32_0, %c0_i32_1 : i32, i32, i32, i32
  }
  func.func @transform_4(%arg0: i32) -> (i32, i32, i32) {
    %c0_i32 = arith.constant 0 : i32
    %c0_i32_0 = arith.constant 0 : i32
    %c0_i32_1 = arith.constant 0 : i32
    return %arg0, %c0_i32, %c0_i32_0 : i32, i32, i32
  }
}

module attributes {stable_mosaic.version = 11 : i64} {
  func.func @_bn_apply_kernel(%arg0: i32, %arg1: i32, %arg2: memref<1x8x16x128xf32, #tpu.memory_space<vmem>>, %arg3: memref<1x128xf32, #tpu.memory_space<vmem>>, %arg4: memref<1x128xf32, #tpu.memory_space<vmem>>, %arg5: memref<1x8x16x128xf32, #tpu.memory_space<vmem>>) attributes {dimension_semantics = [#tpu.dimension_semantics<parallel>, #tpu.dimension_semantics<parallel>], iteration_bounds = array<i64: 2, 2>, scalar_prefetch = 0 : i64, scratch_operands = 0 : i64, tpu.core_type = #tpu.core_type<tc>, window_params = [{transform_indices = @transform_0, window_bounds = array<i64: 1, 8, 16, 128>}, {pipeline_mode = #tpu.pipeline_mode<synchronous>, transform_indices = @transform_1, window_bounds = array<i64: 1, 128>}, {pipeline_mode = #tpu.pipeline_mode<synchronous>, transform_indices = @transform_2, window_bounds = array<i64: 1, 128>}, {transform_indices = @transform_3, window_bounds = array<i64: 1, 8, 16, 128>}]} {
    %c0 = arith.constant 0 : index
    %c0_0 = arith.constant 0 : index
    %c0_1 = arith.constant 0 : index
    %c0_2 = arith.constant 0 : index
    %0 = vector.load %arg2[%c0, %c0_0, %c0_1, %c0_2] : memref<1x8x16x128xf32, #tpu.memory_space<vmem>>, vector<1x8x16x128xf32>
    %c0_3 = arith.constant 0 : index
    %c0_4 = arith.constant 0 : index
    %1 = vector.load %arg3[%c0_3, %c0_4] : memref<1x128xf32, #tpu.memory_space<vmem>>, vector<1x128xf32>
    %2 = vector.shape_cast %1 : vector<1x128xf32> to vector<1x1x1x128xf32>
    %3 = vector.broadcast %2 : vector<1x1x1x128xf32> to vector<1x8x16x128xf32>
    %4 = arith.mulf %0, %3 : vector<1x8x16x128xf32>
    %c0_5 = arith.constant 0 : index
    %c0_6 = arith.constant 0 : index
    %5 = vector.load %arg4[%c0_5, %c0_6] : memref<1x128xf32, #tpu.memory_space<vmem>>, vector<1x128xf32>
    %6 = vector.shape_cast %5 : vector<1x128xf32> to vector<1x1x1x128xf32>
    %7 = vector.broadcast %6 : vector<1x1x1x128xf32> to vector<1x8x16x128xf32>
    %8 = arith.addf %4, %7 : vector<1x8x16x128xf32>
    %c0_7 = arith.constant 0 : index
    %c0_8 = arith.constant 0 : index
    %c0_9 = arith.constant 0 : index
    %c0_10 = arith.constant 0 : index
    %9 = vector.load %arg5[%c0_7, %c0_8, %c0_9, %c0_10] : memref<1x8x16x128xf32, #tpu.memory_space<vmem>>, vector<1x8x16x128xf32>
    tpu.vector_store %arg5[%c0_7, %c0_8, %c0_9, %c0_10], %8 {strides = array<i32>} : memref<1x8x16x128xf32, #tpu.memory_space<vmem>>, vector<1x8x16x128xf32>,
    return
  }
  func.func @transform_0(%arg0: i32, %arg1: i32) -> (i32, i32, i32, i32) {
    %c0_i32 = arith.constant 0 : i32
    %c0_i32_0 = arith.constant 0 : i32
    %c0_i32_1 = arith.constant 0 : i32
    return %arg0, %arg1, %c0_i32, %c0_i32_0 : i32, i32, i32, i32
  }
  func.func @transform_1(%arg0: i32, %arg1: i32) -> (i32, i32) {
    %c0_i32 = arith.constant 0 : i32
    %c0_i32_0 = arith.constant 0 : i32
    %c0_i32_1 = arith.constant 0 : i32
    return %c0_i32, %c0_i32_0 : i32, i32
  }
  func.func @transform_2(%arg0: i32, %arg1: i32) -> (i32, i32) {
    %c0_i32 = arith.constant 0 : i32
    %c0_i32_0 = arith.constant 0 : i32
    %c0_i32_1 = arith.constant 0 : i32
    return %c0_i32, %c0_i32_0 : i32, i32
  }
  func.func @transform_3(%arg0: i32, %arg1: i32) -> (i32, i32, i32, i32) {
    %c0_i32 = arith.constant 0 : i32
    %c0_i32_0 = arith.constant 0 : i32
    %c0_i32_1 = arith.constant 0 : i32
    return %arg0, %arg1, %c0_i32, %c0_i32_0 : i32, i32, i32, i32
  }
}

</mosaic_0001>

<bundles_post_ra>
// kernel: conv_block.3
= control target key start
LH: loop header
LB: loop body
LE: loop exit
PB: predicated region body
PF: predicated region fallthrough
CT: control target
= control target key end

     0   :  { %s509_s12 = smov 0   ;;  %s511_s13 = smov 0   ;;  %s620_s0 = inlined_call_operand.vmem [shape: f32[2,16,16,128], index: 0, kind: input, shape index: {}]   ;;  %s621_s1 = inlined_call_operand.vmem [shape: f32[1,128], index: 1, kind: input, shape index: {}]   ;;  %s622_s2 = inlined_call_operand.vmem [shape: f32[1,128], index: 2, kind: input, shape index: {}]   ;;  %s623_s3 = inlined_call_operand.vmem [shape: f32[2,16,16,128], index: 3, kind: output, shape index: {}]  }
   0x1   :  { %s513_s14 = smov 0   ;;  %s515_s15 = smov 0  }
   0x2   :  { %s517_s16 = smov 0  }
   0x3 LB: > { %s22_s17 = sadd.s32 1, %s479_s14  ;;  %s25_s18 = sadd.s32 1, %s483_s15  ;;  %s487_s16 = sphi %s517_s16, %s13_s16   ;;  %s483_s15 = sphi %s515_s15, %s627_s15   ;;  %s479_s14 = sphi %s513_s14, %s626_s14   ;;  %s475_s13 = sphi %s511_s13, %s625_s13   ;;  %s471_s12 = sphi %s509_s12, %s624_s12  }
   0x4   : > { %p23_p0 = scmp.ge.s32.totalorder %s22_s17, 2  ;;  %p396_p1 = scmp.ge.s32.totalorder %s487_s16, 1 }
   0x5   : > { %p159_p2 = scmp.lt.s32.totalorder %s487_s16, 5 }
   0x6   : > { %s629_s17 = smov (%p23_p0, %s22_s17), 0  ;;  %s631_s18 = smov (!%p23_p0, %s25_s18), %s483_s15 }
   0x7   : > { %p160_p3 = pnand %p396_p1, %p159_p2  ;;  %p27_p4 = scmp.ge.s32.totalorder %s631_s18, 2 }
   0x8   : > { %s397_s19 = sshll.u32 (!%p160_p3), %s471_s12, 3  ;;  %p194_p5 = scmp.lt.s32.totalorder (!%p160_p3), %s475_s13, 1  ;;  %v405_v0 = vld [vmem:[%s621_s1] ss:$0 sm:$0xff] (!%p160_p3) }
   0x9   : > { %s633_s18 = smov (%p27_p4, %s631_s18), 0  ;;  %163 = sbr.rel (%p160_p3) target bundleno = 35 (0x23), region = 32 }
   0xa   : > { %p196_p6 = scmp.lt.s32.totalorder (!%p160_p3), %s397_s19, 15  ;;  %v550_v1 = vld [vmem:[%s622_s2] ss:$0 sm:$0xff] (!%p160_p3) }
  0x10   : > { %s635_s13 = smov (!%p194_p5, %s475_s13), 1  ;;  %s637_s19 = smov (!%p196_p6, %s397_s19), 15 }
  0x11   : > { %s399_s20 = sshll.u32 %s635_s13, 5  ;;  %s398_s21 = sshll.u32 %s637_s19, 1 }
  0x12   : > { %s200_s22 = sadd.s32 %s399_s20, %s398_s21 }
  0x13   : > { %s400_s23 = sshll.u32 %s200_s22, 3 }
  0x14   : > { %s545_s28 = scalar_lea.vmem %s620_s0, %s400_s23  ;;  %s561_s6 = scalar_lea.vmem %s623_s3, %s400_s23 }
  0x15   : > { %v215_v2 = vld [vmem:[%s545_s28] sm:$0xff]  ;;  %v216_v3 = vld [vmem:[%s545_s28 + $0x8] sm:$0xff]  ;;  %v217_v4 = vld [vmem:[%s545_s28 + $0x10] sm:$0xff] }
  0x16   : > { %v238_v5 = vmul.f32 %v405_v0, %v215_v2  ;;  %v239_v6 = vmul.f32 %v405_v0, %v216_v3  ;;  %v240_v7 = vmul.f32 %v405_v0, %v217_v4  ;;  %v218_v8 = vld [vmem:[%s545_s28 + $0x18] sm:$0xff]  ;;  %v219_v9 = vld [vmem:[%s545_s28 + $0x20] sm:$0xff]  ;;  %v220_v10 = vld [vmem:[%s545_s28 + $0x28] sm:$0xff] }
  0x17   : > { %v241_v11 = vmul.f32 %v405_v0, %v218_v8  ;;  %v242_v12 = vmul.f32 %v405_v0, %v219_v9  ;;  %v243_v13 = vmul.f32 %v405_v0, %v220_v10  ;;  %v221_v14 = vld [vmem:[%s545_s28 + $0x30] sm:$0xff]  ;;  %v222_v15 = vld [vmem:[%s545_s28 + $0x38] sm:$0xff]  ;;  %v223_v16 = vld [vmem:[%s545_s28 + $0x40] sm:$0xff] }
  0x18   : > { %v261_v17 = vadd.f32 %v550_v1, %v238_v5  ;;  %v262_v18 = vadd.f32 %v550_v1, %v239_v6  ;;  %v263_v19 = vadd.f32 %v550_v1, %v240_v7  ;;  %v244_v20 = vmul.f32 %v405_v0, %v221_v14  ;;  %v224_v21 = vld [vmem:[%s545_s28 + $0x48] sm:$0xff]  ;;  %v225_v22 = vld [vmem:[%s545_s28 + $0x50] sm:$0xff]  ;;  %v226_v23 = vld [vmem:[%s545_s28 + $0x58] sm:$0xff] }
  0x19   : > { %v264_v24 = vadd.f32 %v550_v1, %v241_v11  ;;  %v265_v25 = vadd.f32 %v550_v1, %v242_v12  ;;  %v266_v26 = vadd.f32 %v550_v1, %v243_v13  ;;  %v245_v27 = vmul.f32 %v405_v0, %v222_v15  ;;  %v227_v28 = vld [vmem:[%s545_s28 + $0x60] sm:$0xff]  ;;  %v228_v29 = vld [vmem:[%s545_s28 + $0x68] sm:$0xff]  ;;  %v229_v30 = vld [vmem:[%s545_s28 + $0x70] sm:$0xff] }
  0x1a   : > { %277 = vst [vmem:[%s561_s6] sm:$0xff] %v261_v17  ;;  %278 = vst [vmem:[%s561_s6 + $0x8] sm:$0xff] %v262_v18  ;;  %v267_v31 = vadd.f32 %v550_v1, %v244_v20  ;;  %v246_v32 = vmul.f32 %v405_v0, %v223_v16  ;;  %v247_v33 = vmul.f32 %v405_v0, %v224_v21  ;;  %v230_v35 = vld [vmem:[%s545_s28 + $0x78] sm:$0xff] }
  0x1b   : > { %279 = vst [vmem:[%s561_s6 + $0x10] sm:$0xff] %v263_v19  ;;  %v248_v34 = vmul.f32 %v405_v0, %v225_v22  ;;  %280 = vst [vmem:[%s561_s6 + $0x18] sm:$0xff] %v264_v24  ;;  %v268_v36 = vadd.f32 %v550_v1, %v245_v27  ;;  %v249_v37 = vmul.f32 %v405_v0, %v226_v23 }
  0x1c   : > { %281 = vst [vmem:[%s561_s6 + $0x20] sm:$0xff] %v265_v25  ;;  %282 = vst [vmem:[%s561_s6 + $0x28] sm:$0xff] %v266_v26  ;;  %v250_v38 = vmul.f32 %v405_v0, %v227_v28  ;;  %v251_v39 = vmul.f32 %v405_v0, %v228_v29  ;;  %v269_v40 = vadd.f32 %v550_v1, %v246_v32 }
  0x1d   : > { %283 = vst [vmem:[%s561_s6 + $0x30] sm:$0xff] %v267_v31  ;;  %v270_v41 = vadd.f32 %v550_v1, %v247_v33  ;;  %v271_v42 = vadd.f32 %v550_v1, %v248_v34  ;;  %v252_v43 = vmul.f32 %v405_v0, %v229_v30  ;;  %284 = vst [vmem:[%s561_s6 + $0x38] sm:$0xff] %v268_v36 }
  0x1e   : > { %v272_v44 = vadd.f32 %v550_v1, %v249_v37  ;;  %v273_v45 = vadd.f32 %v550_v1, %v250_v38  ;;  %v274_v46 = vadd.f32 %v550_v1, %v251_v39  ;;  %v253_v47 = vmul.f32 %v405_v0, %v230_v35  ;;  %285 = vst [vmem:[%s561_s6 + $0x40] sm:$0xff] %v269_v40 }
  0x1f   : > { %286 = vst [vmem:[%s561_s6 + $0x48] sm:$0xff] %v270_v41  ;;  %287 = vst [vmem:[%s561_s6 + $0x50] sm:$0xff] %v271_v42  ;;  %v275_v48 = vadd.f32 %v550_v1, %v252_v43 }
  0x20   : > { %288 = vst [vmem:[%s561_s6 + $0x58] sm:$0xff] %v272_v44  ;;  %289 = vst [vmem:[%s561_s6 + $0x60] sm:$0xff] %v273_v45  ;;  %v276_v49 = vadd.f32 %v550_v1, %v253_v47 }
  0x21   : > { %290 = vst [vmem:[%s561_s6 + $0x68] sm:$0xff] %v274_v46  ;;  %291 = vst [vmem:[%s561_s6 + $0x70] sm:$0xff] %v275_v48 }
  0x22   : > { %292 = vst [vmem:[%s561_s6 + $0x78] sm:$0xff] %v276_v49 }
  0x23 PF: > { %s13_s16 = sadd.s32 1, %s487_s16   ;;  %s624_s12 = smov %s479_s14 }
  0x24   : > { %p10_p7 = scmp.ge.s32.totalorder %s13_s16, 6   ;;  %s625_s13 = smov %s483_s15 }
  0x25   : > { %s626_s14 = smov %s629_s17  ;;  %s627_s15 = smov %s633_s18 }
  0x26   :  { %12 = sbr.rel (!%p10_p7) target bundleno = 3 (0x3), region = 62 }

// kernel: conv_block.2
= control target key start
LH: loop header
LB: loop body
LE: loop exit
PB: predicated region body
PF: predicated region fallthrough
CT: control target
= control target key end

     0   :  { %s4604_s15 = smov 0   ;;  %s6033_s0 = inlined_call_operand.vmem [shape: bf16[2,18,18,128], index: 0, kind: input, shape index: {}]   ;;  %s6034_s1 = inlined_call_operand.vmem [shape: bf16[1152,128], index: 1, kind: input, shape index: {}]   ;;  %s6035_s2 = inlined_call_operand.vmem [shape: f32[1,128], index: 2, kind: input, shape index: {}]   ;;  %s6036_s3 = inlined_call_operand.vmem [shape: f32[2,16,16,128], index: 3, kind: output, shape index: {0}]   ;;  %s6037_s4 = inlined_call_operand.vmem [shape: f32[2,2,128], index: 4, kind: output, shape index: {1}]  }
   0x1 LB: > { %s3445_s16 = sadd.s32 4294967295, %s4577_s15   ;;  %p3449_p0 = scmp.ge.s32.totalorder %s4577_s15, 1  ;;  %s4577_s15 = sphi %s4604_s15, %s15_s15  }
   0x2   : > { %p165_p1 = scmp.lt.s32.totalorder %s4577_s15, 3 }
   0x4   : > { %p166_p2 = pnand %p3449_p0, %p165_p1 }
   0x5   : > { %v4347_v0 = vld [vmem:[%s6034_s1 + $0x40] sm:$0xff] (!%p166_p2)   ;;  %p195_p3 = scmp.lt.s32.totalorder (!%p166_p2), %s3445_s16, 1  ;;  %v4349_v2 = vld [vmem:[%s6034_s1 + $0x48] sm:$0xff] (!%p166_p2)   ;;  %v4351_v4 = vld [vmem:[%s6034_s1 + $0x50] sm:$0xff] (!%p166_p2)   ;;  %vm548_vm0 = vsmask.f32 (!%p166_p2), 7424 }
   0x6   : > { %169 = sbr.rel (%p166_p2) target bundleno = 560 (0x230), region = 32  ;;  %v4348_v1 = vld [vmem:[%s6034_s1] sm:$0xff] (!%p166_p2)   ;;  %3802 = vmatprep.subr.bf16.mxu0 (!%p166_p2), %v4347_v0  ;;  %4322 = vmatprep.subr.bf16.mxu1 (!%p166_p2), %v4347_v0  ;;  %v4350_v3 = vld [vmem:[%s6034_s1 + $0x8] sm:$0xff] (!%p166_p2)   ;;  %v4352_v5 = vld [vmem:[%s6034_s1 + $0x10] sm:$0xff] (!%p166_p2)   ;;  %vm805_vm1 = vcmask (!%p166_p2), 1046528   ;;  %vm3356_vm2 = vcmask (!%p166_p2), 1040384  }
   0x7   : > { %3803 = vmatpush3.bf16.msra.mxu0 (!%p166_p2), %v4348_v1  ;;  %4330 = vmatpush3.bf16.msra.mxu1 (!%p166_p2), %v4348_v1  ;;  %v4353_v6 = vld [vmem:[%s6034_s1 + $0x58] sm:$0xff] (!%p166_p2)   ;;  %v4355_v8 = vld [vmem:[%s6034_s1 + $0x60] sm:$0xff] (!%p166_p2)   ;;  %v4357_v10 = vld [vmem:[%s6034_s1 + $0x68] sm:$0xff] (!%p166_p2)  }
   0x8   : > { %3804 = vmatprep.subr.bf16.mxu0 (!%p166_p2), %v4349_v2  ;;  %4323 = vmatprep.subr.bf16.mxu1 (!%p166_p2), %v4349_v2  ;;  %v4354_v7 = vld [vmem:[%s6034_s1 + $0x18] sm:$0xff] (!%p166_p2)   ;;  %v4356_v9 = vld [vmem:[%s6034_s1 + $0x20] sm:$0xff] (!%p166_p2)   ;;  %v4358_v17 = vld [vmem:[%s6034_s1 + $0x28] sm:$0xff] (!%p166_p2)  }
   0x9   : > { %v4359_v21 = vld [vmem:[%s6034_s1 + $0x70] sm:$0xff] (!%p166_p2)   ;;  %v4361_v31 = vld [vmem:[%s6034_s1 + $0x78] sm:$0xff] (!%p166_p2)   ;;  %v4367_v37 = vld [vmem:[%s6034_s1 + $0xc0] sm:$0xff] (!%p166_p2)  }
   0xa   : > { %v4360_v26 = vld [vmem:[%s6034_s1 + $0x30] sm:$0xff] (!%p166_p2)   ;;  %v4362_v34 = vld [vmem:[%s6034_s1 + $0x38] sm:$0xff] (!%p166_p2)   ;;  %v4368_v40 = vld [vmem:[%s6034_s1 + $0x140] sm:$0xff] (!%p166_p2)  }
   0xb   : > { %3805 = vmatpush3.bf16.msra.mxu0 (!%p166_p2), %v4350_v3  ;;  %4331 = vmatpush3.bf16.msra.mxu1 (!%p166_p2), %v4350_v3  ;;  %v4369_v46 = vld [vmem:[%s6034_s1 + $0x80] sm:$0xff] (!%p166_p2)   ;;  %v4371_v57 = vld [vmem:[%s6034_s1 + $0xc8] sm:$0xff] (!%p166_p2)   ;;  %v4377_v2 = vld [vmem:[%s6034_s1 + $0xd0] sm:$0xff] (!%p166_p2)  }
   0xc   : > { %3806 = vmatprep.subr.bf16.mxu0 (!%p166_p2), %v4351_v4  ;;  %4324 = vmatprep.subr.bf16.mxu1 (!%p166_p2), %v4351_v4  ;;  %v4370_v47 = vld [vmem:[%s6034_s1 + $0x100] sm:$0xff] (!%p166_p2)   ;;  %v4372_v59 = vld [vmem:[%s6034_s1 + $0x88] sm:$0xff] (!%p166_p2)  }
   0xd   : > { %s6039_s16 = smov (!%p195_p3, %s3445_s16), 1  ;;  %v4380_v63 = vld [vmem:[%s6034_s1 + $0x148] sm:$0xff]  }
   0xe   : > { %s4338_s5 = smul.u32 216, %s6039_s16  ;;  %v4382_v3 = vld [vmem:[%s6034_s1 + $0x108] sm:$0xff]  }
   0xf   : > { %3807 = vmatpush3.bf16.msra.mxu0 %v4352_v5  ;;  %4332 = vmatpush3.bf16.msra.mxu1 %v4352_v5 }
  0x10   : > { %3808 = vmatprep.subr.bf16.mxu0 %v4353_v6  ;;  %4325 = vmatprep.subr.bf16.mxu1 %v4353_v6  ;;  %s4645_s12 = scalar_lea.vmem %s6033_s0, %s4338_s5  ;;  %s3453_s5 = sshll.u32 %s6039_s16, 1 }
  0x11   : > { %v210_v11 = vld [vmem:[%s4645_s12] sm:$0xf]  ;;  %v4655_v12 = vld [vmem:[%s4645_s12 + $0x4] sm:$0xf]  ;;  %v234_v15 = vld [vmem:[%s4645_s12 + $0x90] sm:$0xf]  ;;  %s208_s8 = scalar_lea.vmem %s6037_s4, %s3453_s5 }
  0x12   : > { %v4658_v13 = vcombine.low %v210_v11, %v4655_v12  ;;  %v4661_v14 = vld [vmem:[%s4645_s12 + $0x8] ss:$0 sps:$4 sm:$0x11]   ;;  %v235_v16 = vld [vmem:[%s4645_s12 + $0x94] sm:$0xf] }
  0x13   : > { %3809 = vmatpush3.bf16.msra.mxu0 %v4354_v7  ;;  %4333 = vmatpush3.bf16.msra.mxu1 %v4354_v7  ;;  %v557_v20 = vshll.u32 %v4661_v14, 16  ;;  %v3594_v22 = vcombine.low %v234_v15, %v235_v16  ;;  %v4366_v23 = vld [vmem:[%s4645_s12 + $0x98] ss:$0 sps:$4 sm:$0x11]   ;;  %v212_v38 = vld [vmem:[%s4645_s12 + $0xc] sm:$0xf] }
  0x14   : > { %3810 = vmatprep.subr.bf16.mxu0 %v4355_v8  ;;  %4326 = vmatprep.subr.bf16.mxu1 %v4355_v8  ;;  %v550_v18 = vshrl.u32 %v4658_v13, 16  ;;  %v552_v19 = vshll.u32 %v4658_v13, 16  ;;  %v701_v29 = vshll.u32 %v4366_v23, 16  ;;  %v4690_v39 = vld [vmem:[%s4645_s12 + $0x10] sm:$0xf] }
  0x15   : > { %v559_v25 = vrot.slane %v557_v20, 1  ;;  %v694_v27 = vshrl.u32 %v3594_v22, 16  ;;  %v696_v28 = vshll.u32 %v3594_v22, 16  ;;  %v3583_v41 = vcombine.low %v212_v38, %v4690_v39  ;;  %v4697_v42 = vld [vmem:[%s4645_s12 + $0x14] ss:$0 sps:$4 sm:$0x11]  }
  0x16   : > { %v554_v24 = vrot.slane %v552_v19, 1  ;;  %v703_v33 = vrot.slane %v701_v29, 1  ;;  %v236_v44 = vld [vmem:[%s4645_s12 + $0x9c] sm:$0xf]  ;;  %v237_v45 = vld [vmem:[%s4645_s12 + $0xa0] sm:$0xf] }
  0x17   : > { %3811 = vmatpush3.bf16.msra.mxu0 %v4356_v9  ;;  %4334 = vmatpush3.bf16.msra.mxu1 %v4356_v9  ;;  %v698_v32 = vrot.slane %v696_v28, 1  ;;  %v562_v48 = vshrl.u32 %v3583_v41, 16  ;;  %v564_v49 = vshll.u32 %v3583_v41, 16  ;;  %v569_v50 = vshll.u32 %v4697_v42, 16  ;;  %v214_v4 = vld [vmem:[%s4645_s12 + $0x18] sm:$0xf] }
  0x18   : > { %3812 = vmatprep.subr.bf16.mxu0 %v4357_v10  ;;  %4327 = vmatprep.subr.bf16.mxu1 %v4357_v10  ;;  %v555_v30 = vor.u32 %v554_v24, %v550_v18  ;;  %v3595_v51 = vcombine.low %v236_v44, %v237_v45  ;;  %v4376_v52 = vld [vmem:[%s4645_s12 + $0xa4] ss:$0 sps:$4 sm:$0x11]   ;;  %v4729_v5 = vld [vmem:[%s4645_s12 + $0x1c] sm:$0xf]  ;;  %v4378_v7 = vld [vmem:[%s6034_s1 + $0x90] sm:$0xff]  }
  0x19   : > { %v699_v36 = vor.u32 %v698_v32, %v694_v27  ;;  %v566_v53 = vrot.slane %v564_v49, 1  ;;  %v571_v54 = vrot.slane %v569_v50, 1  ;;  %v713_v58 = vshll.u32 %v4376_v52, 16  ;;  %v4737_v9 = vld [vmem:[%s4645_s12 + $0x20] ss:$0 sps:$4 sm:$0x11]  }
  0x1a   : > { %v560_v35 = vsel %vm548_vm0, %v555_v30, %v559_v25  ;;  %v706_v55 = vshrl.u32 %v3595_v51, 16  ;;  %v708_v56 = vshll.u32 %v3595_v51, 16  ;;  %v3584_v8 = vcombine.low %v214_v4, %v4729_v5  ;;  %v4379_v10 = vld [vmem:[%s6034_s1 + $0xd8] sm:$0xff]   ;;  %v238_v11 = vld [vmem:[%s4645_s12 + $0xa8] sm:$0xf]  ;;  %v4387_v29 = vld [vmem:[%s6034_s1 + $0xe0] sm:$0xff]  }
  0x1b   : > { %3813 = vmatpush3.bf16.msra.mxu0 %v4358_v17  ;;  %4335 = vmatpush3.bf16.msra.mxu1 %v4358_v17  ;;  %v704_v43 = vsel %vm548_vm0, %v699_v36, %v703_v33  ;;  %v567_v60 = vor.u32 %v566_v53, %v562_v48  ;;  %v715_v62 = vrot.slane %v713_v58, 1  ;;  %v581_v17 = vshll.u32 %v4737_v9, 16  ;;  %v4386_v19 = vld [vmem:[%s4645_s12 + $0xb0] ss:$0 sps:$4 sm:$0x11]   ;;  %v4381_v25 = vld [vmem:[%s6034_s1 + $0x98] sm:$0xff]  }
  0x1c   : > { %3814 = vmatprep.subr.bf16.mxu0 %v4359_v21  ;;  %4328 = vmatprep.subr.bf16.mxu1 %v4359_v21  ;;  %v710_v61 = vrot.slane %v708_v56, 1  ;;  %v574_v15 = vshrl.u32 %v3584_v8, 16  ;;  %v576_v16 = vshll.u32 %v3584_v8, 16  ;;  %v725_v24 = vshll.u32 %v4386_v19, 16  ;;  %v216_v30 = vld [vmem:[%s4645_s12 + $0x24] sm:$0xf] }
  0x1d   : > { %2413 = vmatprep.mubr.bf16.mxu0 %v560_v35  ;;  %2509 = vmatprep.mubr.bf16.mxu1 %v704_v43  ;;  %v572_v0 = vsel %vm548_vm0, %v567_v60, %v571_v54  ;;  %v583_v21 = vrot.slane %v581_v17, 1  ;;  %v4762_v36 = vld [vmem:[%s4645_s12 + $0x2c] ss:$0 sps:$4 sm:$0x11]   ;;  %v240_v38 = vld [vmem:[%s4645_s12 + $0xb4] sm:$0xf] }
  0x1e   : > { %v711_v1 = vor.u32 %v710_v61, %v706_v55  ;;  %v578_v20 = vrot.slane %v576_v16, 1  ;;  %v727_v28 = vrot.slane %v725_v24, 1  ;;  %v593_v45 = vshll.u32 %v4762_v36, 16  ;;  %v4390_v48 = vld [vmem:[%s6034_s1 + $0xa8] sm:$0xff]   ;;  %v4396_v52 = vld [vmem:[%s6034_s1 + $0x150] sm:$0xff]   ;;  %v4400_v17 = vld [vmem:[%s6034_s1 + $0xb8] sm:$0xff]  }
  0x1f   : > { %3815 = vmatpush3.bf16.msra.mxu0 %v4360_v26  ;;  %4336 = vmatpush3.bf16.msra.mxu1 %v4360_v26  ;;  %v258_v16 = vld [vmem:[%s4645_s12] sm:$0xe]  ;;  %v4409_v24 = vld [vmem:[%s6034_s1 + $0x118] sm:$0xff]  }
  0x20   : > { %3816 = vmatprep.subr.bf16.mxu0 %v4361_v31  ;;  %4329 = vmatprep.subr.bf16.mxu1 %v4361_v31  ;;  %v716_v6 = vsel %vm548_vm0, %v711_v1, %v715_v62  ;;  %v579_v26 = vor.u32 %v578_v20, %v574_v15  ;;  %v4754_v31 = vld [vmem:[%s4645_s12 + $0x28] sm:$0xf]  ;;  %v595_v50 = vrot.slane %v593_v45, 1  ;;  %v218_v62 = vld [vmem:[%s4645_s12 + $0x30] sm:$0xf]  ;;  %v4406_v20 = vld [vmem:[%s6034_s1 + $0x1c0] sm:$0xff]  }
  0x21   : > { %v3585_v35 = vcombine.low %v216_v30, %v4754_v31  ;;  %v4835_v30 = vld [vmem:[%s4645_s12 + $0x44] ss:$0 sps:$4 sm:$0x11]   ;;  %v4421_v45 = vld [vmem:[%s6034_s1 + $0x1c8] sm:$0xff]  }
  0x22   : > { %v584_v32 = vsel %vm548_vm0, %v579_v26, %v583_v21  ;;  %v4829_v26 = vld [vmem:[%s4645_s12 + $0x40] sm:$0xf] }
  0x23   : > { %3817 = vmatpush3.bf16.msra.mxu0 %v4362_v34  ;;  %4337 = vmatpush3.bf16.msra.mxu1 %v4362_v34  ;;  %v4388_v34 = vld [vmem:[%s6034_s1 + $0xa0] sm:$0xff]   ;;  %v586_v43 = vshrl.u32 %v3585_v35, 16  ;;  %v588_v44 = vshll.u32 %v3585_v35, 16 }
  0x24   : > { %3914 = vmatprep.subr.bf16.mxu1 %v4367_v37  ;;  %4026 = vmatprep.subr.bf16.mxu0 %v4368_v40  ;;  %v4389_v37 = vld [vmem:[%s6034_s1 + $0xe8] sm:$0xff]   ;;  %v241_v40 = vld [vmem:[%s4645_s12 + $0xb8] sm:$0xf] }
  0x25   : > { %v590_v49 = vrot.slane %v588_v44, 1  ;;  %v222_v44 = vld [vmem:[%s4645_s12 + $0x48] sm:$0xf] }
  0x26   : > { %2414 = vmatmul.mubr.bf16.vlgmr.msra.gmra.mrb[0].mxu0 %v4658_v13  ;;  %2510 = vmatmul.mubr.bf16.vlgmr.msra.gmra.mrb[0].mxu1 %v3594_v22  ;;  %v239_v13 = vld [vmem:[%s4645_s12 + $0xac] sm:$0xf] }
  0x27   : > { %3915 = vmatpush3.bf16.msra.mxu1 %v4369_v46  ;;  %4027 = vmatpush3.bf16.msra.mxu0 %v4370_v47  ;;  %v3596_v18 = vcombine.low %v238_v11, %v239_v13  ;;  %v4394_v46 = vld [vmem:[%s4645_s12 + $0xbc] ss:$0 sps:$4 sm:$0x11]   ;;  %v3597_v47 = vcombine.low %v240_v38, %v241_v40  ;;  %v591_v55 = vor.u32 %v590_v49, %v586_v43 }
  0x28   : > { %3916 = vmatprep.subr.bf16.mxu1 %v4371_v57  ;;  %2421 = vmatprep.mubr.bf16.mxu0 %v572_v0  ;;  %v4395_v57 = vld [vmem:[%s6034_s1 + $0xf0] sm:$0xff]  }
  0x29   : > { %4028 = vmatprep.subr.bf16.mxu0 %v4380_v63  ;;  %2517 = vmatprep.mubr.bf16.mxu1 %v716_v6  ;;  %v718_v22 = vshrl.u32 %v3596_v18, 16  ;;  %v720_v23 = vshll.u32 %v3596_v18, 16  ;;  %v730_v53 = vshrl.u32 %v3597_v47, 16  ;;  %v732_v54 = vshll.u32 %v3597_v47, 16  ;;  %v4787_v63 = vld [vmem:[%s4645_s12 + $0x34] sm:$0xf] }
  0x2a   : > { %v596_v60 = vsel %vm548_vm0, %v591_v55, %v595_v50  ;;  %v4397_v0 = vld [vmem:[%s6034_s1 + $0xb0] sm:$0xff]   ;;  %v3586_v1 = vcombine.low %v218_v62, %v4787_v63  ;;  %v4399_v6 = vld [vmem:[%s6034_s1 + $0xf8] sm:$0xff]  }
  0x2b   : > { %3917 = vmatpush3.bf16.msra.mxu1 %v4372_v59  ;;  %4029 = vmatpush3.bf16.msra.mxu0 %v4382_v3  ;;  %v722_v27 = vrot.slane %v720_v23, 1  ;;  %v734_v58 = vrot.slane %v732_v54, 1  ;;  %v4398_v59 = vld [vmem:[%s6034_s1 + $0x110] sm:$0xff]   ;;  %v807_v3 = vrot.slane %v4661_v14, 1  ;;  %v3614_v14 = vcombine.low %v258_v16, %v4655_v12  ;;  %v4408_v12 = vld [vmem:[%s6034_s1 + $0x158] sm:$0xff]   ;;  %v4407_v23 = vld [vmem:[%s6034_s1 + $0x180] sm:$0xff]  }
  0x2c   : > { %3918 = vmatprep.subr.bf16.mxu1 %v4377_v2  ;;  %4030 = vmatprep.subr.bf16.mxu0 %v4396_v52  ;;  %v4794_v2 = vld [vmem:[%s4645_s12 + $0x38] ss:$0 sps:$4 sm:$0x11]   ;;  %v600_v11 = vshll.u32 %v3586_v1, 16 }
  0x2d   : > { %v723_v33 = vor.u32 %v722_v27, %v718_v22  ;;  %v735_v61 = vor.u32 %v734_v58, %v730_v53  ;;  %v605_v13 = vshll.u32 %v4794_v2, 16  ;;  %v806_v21 = vrot.slane %v3614_v14, 1  ;;  %v4865_v53 = vld [vmem:[%s4645_s12 + $0x28] sm:$0xf]  ;;  %v260_v58 = vld [vmem:[%s4645_s12 + $0x18] sm:$0xe] }
  0x2e   : > { %2422 = vmatmul.mubr.bf16.gmra.mrb[4].mxu0 %v3583_v41  ;;  %2518 = vmatmul.mubr.bf16.gmra.mrb[4].mxu1 %v3595_v51  ;;  %v737_v51 = vshll.u32 %v4394_v46, 16  ;;  %v813_v14 = vrot.slane %v4737_v9, 1 }
  0x2f   : > { %3919 = vmatpush3.bf16.msra.mxu1 %v4378_v7  ;;  %2429 = vmatprep.mubr.bf16.mxu0 %v584_v32  ;;  %v728_v41 = vsel %vm548_vm0, %v723_v33, %v727_v28  ;;  %v3454_v7 = vld [vmem:[%s4645_s12 + $0xc] sm:$0xf]  ;;  %v607_v19 = vrot.slane %v605_v13, 1  ;;  %v808_v28 = vsel %vm805_vm1, %v806_v21, %v807_v3  ;;  %v3456_v32 = vld [vmem:[%s4645_s12 + $0x18] sm:$0xf]  ;;  %v4420_v33 = vld [vmem:[%s6034_s1 + $0x160] sm:$0xff]   ;;  %v3616_v3 = vcombine.low %v260_v58, %v4729_v5 }
  0x30   : > { %3920 = vmatprep.subr.bf16.mxu1 %v4379_v10  ;;  %2525 = vmatprep.mubr.bf16.mxu1 %v728_v41  ;;  %v739_v56 = vrot.slane %v737_v51, 1  ;;  %v598_v10 = vshrl.u32 %v3586_v1, 16  ;;  %v617_v41 = vshll.u32 %v4835_v30, 16  ;;  %v4862_v51 = vld [vmem:[%s4645_s12 + $0x50] ss:$0 sps:$4 sm:$0x11]  }
  0x31   : > { %4031 = vmatpush3.bf16.msra.mxu0 %v4398_v59  ;;  %v4423_v59 = vld [vmem:[%s6034_s1 + $0x188] sm:$0xff]   ;;  %v812_v16 = vrot.slane %v3616_v3, 1  ;;  %v4948_v58 = vld [vmem:[%s4645_s12 + $0x74] ss:$0 sps:$4 sm:$0x11]  }
  0x32   : > { %v740_v4 = vsel %vm548_vm0, %v735_v61, %v739_v56  ;;  %4032 = vmatprep.subr.bf16.mxu0 %v4408_v12  ;;  %v619_v49 = vrot.slane %v617_v41, 1  ;;  %v4429_v13 = vld [vmem:[%s6034_s1 + $0x168] sm:$0xff]   ;;  %v261_v12 = vld [vmem:[%s4645_s12 + $0x24] sm:$0xe]  ;;  %v665_v3 = vshll.u32 %v4948_v58, 16 }
  0x33   : > { %3921 = vmatpush3.bf16.msra.mxu1 %v4381_v25  ;;  %v220_v25 = vld [vmem:[%s4645_s12 + $0x3c] sm:$0xf] }
  0x34   : > { %3922 = vmatprep.subr.bf16.mxu1 %v4387_v29  ;;  %v3587_v29 = vcombine.low %v220_v25, %v4829_v26  ;;  %v814_v25 = vsel %vm805_vm1, %v812_v16, %v813_v14  ;;  %v3464_v16 = vld [vmem:[%s4645_s12 + $0x48] sm:$0xf]  ;;  %v263_v14 = vld [vmem:[%s4645_s12 + $0x3c] sm:$0xe] }
  0x35   : > { %4033 = vmatpush3.bf16.msra.mxu0 %v4409_v24 }
  0x36   : > { %2430 = vmatmul.mubr.bf16.gmra.mrb[8].mxu0 %v3584_v8  ;;  %2526 = vmatmul.mubr.bf16.gmra.mrb[8].mxu1 %v3596_v18  ;;  %v4803_v8 = vld [vmem:[%s4645_s12 + $0x10] sm:$0xf]  ;;  %v602_v18 = vrot.slane %v600_v11, 1  ;;  %v610_v38 = vshrl.u32 %v3587_v29, 16  ;;  %v612_v40 = vshll.u32 %v3587_v29, 16 }
  0x37   : > { %3923 = vmatpush3.bf16.msra.mxu1 %v4388_v34  ;;  %2437 = vmatprep.mubr.bf16.mxu0 %v596_v60  ;;  %v4807_v15 = vcombine.low %v3454_v7, %v4803_v8  ;;  %v4842_v34 = vld [vmem:[%s4645_s12 + $0x1c] sm:$0xf]  ;;  %v4883_v7 = vld [vmem:[%s4645_s12 + $0x58] sm:$0xf] }
  0x38   : > { %3924 = vmatprep.subr.bf16.mxu1 %v4389_v37  ;;  %2533 = vmatprep.mubr.bf16.mxu1 %v740_v4  ;;  %v603_v22 = vor.u32 %v602_v18, %v598_v10  ;;  %v810_v37 = vrot.slane %v4697_v42, 1  ;;  %v4848_v43 = vcombine.low %v3456_v32, %v4842_v34  ;;  %v4856_v42 = vld [vmem:[%s4645_s12 + $0x4c] sm:$0xf]  ;;  %v4887_v11 = vld [vmem:[%s4645_s12 + $0x5c] ss:$0 sps:$4 sm:$0x11]  }
  0x39   : > { %4034 = vmatprep.subr.bf16.mxu0 %v4420_v33  ;;  %v3588_v50 = vcombine.low %v222_v44, %v4856_v42  ;;  %v4897_v18 = vld [vmem:[%s4645_s12 + $0x34] sm:$0xf]  ;;  %v641_v21 = vshll.u32 %v4887_v11, 16 }
  0x3a   : > { %v608_v27 = vsel %vm548_vm0, %v603_v22, %v607_v19  ;;  %v4430_v22 = vld [vmem:[%s6034_s1 + $0x128] sm:$0xff]   ;;  %v4436_v32 = vld [vmem:[%s6034_s1 + $0x1d0] sm:$0xff]  }
  0x3b   : > { %3925 = vmatpush3.bf16.msra.mxu1 %v4390_v48  ;;  %v614_v48 = vrot.slane %v612_v40, 1  ;;  %v622_v55 = vshrl.u32 %v3588_v50, 16  ;;  %v624_v56 = vshll.u32 %v3588_v50, 16  ;;  %v643_v24 = vrot.slane %v641_v21, 1  ;;  %v4973_v21 = vld [vmem:[%s4645_s12 + $0x4c] sm:$0xf] }
  0x3c   : > { %3926 = vmatprep.subr.bf16.mxu1 %v4395_v57  ;;  %v629_v57 = vshll.u32 %v4862_v51, 16  ;;  %v816_v40 = vrot.slane %v4762_v36, 1  ;;  %v4443_v36 = vld [vmem:[%s6034_s1 + $0x170] sm:$0xff]  }
  0x3d   : > { %v615_v54 = vor.u32 %v614_v48, %v610_v38  ;;  %v4932_v48 = vld [vmem:[%s4645_s12 + $0x40] sm:$0xf] }
  0x3e   : > { %2438 = vmatmul.mubr.bf16.gmra.mrb[12].mxu0 %v3585_v35  ;;  %2534 = vmatmul.mubr.bf16.gmra.mrb[12].mxu1 %v3597_v47  ;;  %v259_v35 = vld [vmem:[%s4645_s12 + $0xc] sm:$0xe]  ;;  %v3458_v47 = vld [vmem:[%s4645_s12 + $0x24] sm:$0xf] }
  0x3f   : > { %3927 = vmatpush3.bf16.msra.mxu1 %v4397_v0  ;;  %2574 = vmatprep.mubr.bf16.mxu1 %v4807_v15  ;;  %v3615_v46 = vcombine.low %v259_v35, %v4690_v39  ;;  %v4422_v39 = vld [vmem:[%s6034_s1 + $0x120] sm:$0xff]   ;;  %v4877_v61 = vcombine.low %v3458_v47, %v4865_v53  ;;  %v620_v62 = vsel %vm548_vm0, %v615_v54, %v619_v49  ;;  %v626_v0 = vrot.slane %v624_v56, 1  ;;  %v4920_v35 = vld [vmem:[%s4645_s12 + $0x68] ss:$0 sps:$4 sm:$0x11]  }
  0x40   : > { %3928 = vmatprep.subr.bf16.mxu1 %v4399_v6  ;;  %2445 = vmatprep.mubr.bf16.mxu0 %v608_v27  ;;  %v224_v6 = vld [vmem:[%s4645_s12 + $0x54] sm:$0xf]  ;;  %v3462_v47 = vld [vmem:[%s4645_s12 + $0x3c] sm:$0xf]  ;;  %v262_v49 = vld [vmem:[%s4645_s12 + $0x30] sm:$0xe] }
  0x41   : > { %v809_v52 = vrot.slane %v3615_v46, 1  ;;  %4035 = vmatpush3.bf16.msra.mxu0 %v4422_v39  ;;  %v627_v4 = vor.u32 %v626_v0, %v622_v55  ;;  %v3589_v10 = vcombine.low %v224_v6, %v4883_v7  ;;  %v653_v46 = vshll.u32 %v4920_v35, 16  ;;  %v228_v39 = vld [vmem:[%s4645_s12 + $0x6c] sm:$0xf]  ;;  %v4941_v54 = vld [vmem:[%s4645_s12 + $0x70] sm:$0xf] }
  0x42   : > { %4036 = vmatprep.subr.bf16.mxu0 %v4429_v13  ;;  %v3618_v56 = vcombine.low %v262_v49, %v4787_v63 }
  0x43   : > { %3929 = vmatpush3.bf16.msra.mxu1 %v4400_v17  ;;  %v811_v60 = vsel %vm805_vm1, %v809_v52, %v810_v37  ;;  %v3460_v17 = vld [vmem:[%s4645_s12 + $0x30] sm:$0xf]  ;;  %v634_v19 = vshrl.u32 %v3589_v10, 16  ;;  %v655_v52 = vrot.slane %v653_v46, 1  ;;  %v5008_v46 = vld [vmem:[%s4645_s12 + $0x58] sm:$0xf] }
  0x44   : > { %4138 = vmatprep.subr.bf16.mxu1 %v4406_v20  ;;  %v636_v20 = vshll.u32 %v3589_v10, 16  ;;  %v4907_v27 = vcombine.low %v3460_v17, %v4897_v18  ;;  %v4437_v37 = vld [vmem:[%s6034_s1 + $0x190] sm:$0xff]   ;;  %v818_v6 = vrot.slane %v3618_v56, 1 }
  0x45   : > { %4037 = vmatpush3.bf16.msra.mxu0 %v4430_v22  ;;  %v3619_v22 = vcombine.low %v263_v14, %v4829_v26 }
  0x46   : > { %2446 = vmatmul.mubr.bf16.gmra.mrb[16].mxu0 %v3586_v1  ;;  %2575 = vmatmul.mubr.bf16.vlgmr.msra.gmra.mrb[16].mxu1 %v808_v28  ;;  %v631_v1 = vrot.slane %v629_v57, 1  ;;  %v638_v9 = vrot.slane %v636_v20, 1  ;;  %v226_v28 = vld [vmem:[%s4645_s12 + $0x60] sm:$0xf]  ;;  %v4945_v57 = vcombine.low %v228_v39, %v4941_v54  ;;  %v667_v20 = vrot.slane %v665_v3, 1 }
  0x47   : > { %4139 = vmatpush3.bf16.msra.mxu1 %v4407_v23  ;;  %2582 = vmatprep.mubr.bf16.mxu1 %v4848_v43  ;;  %v3617_v23 = vcombine.low %v261_v12, %v4754_v31  ;;  %v4463_v39 = vld [vmem:[%s6034_s1 + $0x1e0] sm:$0xff]  }
  0x48   : > { %4140 = vmatprep.subr.bf16.mxu1 %v4421_v45  ;;  %2453 = vmatprep.mubr.bf16.mxu0 %v620_v62  ;;  %v632_v5 = vsel %vm548_vm0, %v627_v4, %v631_v1  ;;  %v639_v33 = vor.u32 %v638_v9, %v634_v19  ;;  %v819_v62 = vrot.slane %v4794_v2, 1  ;;  %v658_v1 = vshrl.u32 %v4945_v57, 16  ;;  %v4444_v4 = vld [vmem:[%s6034_s1 + $0x130] sm:$0xff]   ;;  %v4964_v2 = vld [vmem:[%s4645_s12 + $0x7c] sm:$0xf] }
  0x49   : > { %v815_v38 = vrot.slane %v3617_v23, 1  ;;  %4038 = vmatprep.subr.bf16.mxu0 %v4443_v36  ;;  %v660_v63 = vshll.u32 %v4945_v57, 16  ;;  %v4450_v23 = vld [vmem:[%s6034_s1 + $0x1d8] sm:$0xff]   ;;  %v264_v36 = vld [vmem:[%s4645_s12 + $0x48] sm:$0xe] }
  0x4a   : > { %v644_v41 = vsel %vm548_vm0, %v639_v33, %v643_v24  ;;  %4039 = vmatpush3.bf16.msra.mxu0 %v4444_v4  ;;  %v820_v9 = vsel %vm805_vm1, %v818_v6, %v819_v62  ;;  %v4985_v24 = vcombine.low %v3464_v16, %v4973_v21  ;;  %v5029_v62 = vld [vmem:[%s6034_s1 + $0x200] sm:$0xff]   ;;  %v825_v4 = vrot.slane %v4862_v51, 1 }
  0x4b   : > { %4141 = vmatpush3.bf16.msra.mxu1 %v4423_v59  ;;  %v817_v59 = vsel %vm805_vm1, %v815_v38, %v816_v40  ;;  %v662_v13 = vrot.slane %v660_v63, 1  ;;  %v4452_v38 = vld [vmem:[%s6034_s1 + $0x178] sm:$0xff]   ;;  %v3468_v6 = vld [vmem:[%s4645_s12 + $0x60] sm:$0xf]  ;;  %v5044_v51 = vld [vmem:[%s4645_s12 + $0x64] sm:$0xf] }
  0x4c   : > { %4142 = vmatprep.subr.bf16.mxu1 %v4436_v32  ;;  %v4453_v40 = vld [vmem:[%s6034_s1 + $0x138] sm:$0xff]   ;;  %4040 = vmatprep.subr.bf16.mxu0 %v4452_v38 }
  0x4d   : > { %v663_v19 = vor.u32 %v662_v13, %v658_v1 }
  0x4e   : > { %2454 = vmatmul.mubr.bf16.gmra.mrb[20].mxu0 %v3587_v29  ;;  %2583 = vmatmul.mubr.bf16.gmra.mrb[20].mxu1 %v811_v60  ;;  %v4911_v29 = vld [vmem:[%s4645_s12 + $0x64] sm:$0xf]  ;;  %v4952_v60 = vcombine.low %v3462_v47, %v4932_v48 }
  0x4f   : > { %2590 = vmatprep.mubr.bf16.mxu1 %v4877_v61  ;;  %2461 = vmatprep.mubr.bf16.mxu0 %v632_v5  ;;  %v4917_v31 = vcombine.low %v226_v28, %v4911_v29  ;;  %v230_v5 = vld [vmem:[%s4645_s12 + $0x78] sm:$0xf]  ;;  %v668_v32 = vsel %vm548_vm0, %v663_v19, %v667_v20  ;;  %v265_v19 = vld [vmem:[%s4645_s12 + $0x54] sm:$0xe] }
  0x50   : > { %4143 = vmatpush3.bf16.msra.mxu1 %v4437_v37  ;;  %v4970_v17 = vcombine.low %v230_v5, %v4964_v2  ;;  %v4451_v37 = vld [vmem:[%s6034_s1 + $0x198] sm:$0xff]   ;;  %4041 = vmatpush3.bf16.msra.mxu0 %v4453_v40  ;;  %v4465_v5 = vld [vmem:[%s6034_s1 + $0x1a0] sm:$0xff]  }
  0x51   : > { %v646_v44 = vshrl.u32 %v4917_v31, 16  ;;  %v648_v45 = vshll.u32 %v4917_v31, 16  ;;  %4144 = vmatprep.subr.bf16.mxu1 %v4450_v23  ;;  %4274 = vmatprep.subr.bf16.mxu0 %v5029_v62  ;;  %v3503_v40 = vld [vmem:[%s4645_s12 + $0x18] sm:$0xe] }
  0x52   : > { %v672_v12 = vshll.u32 %v4970_v17, 16  ;;  %v670_v28 = vshrl.u32 %v4970_v17, 16 }
  0x54   : > { %v674_v26 = vrot.slane %v672_v12, 1  ;;  %4145 = vmatpush3.bf16.msra.mxu1 %v4451_v37  ;;  %v5050_v12 = vcombine.low %v3468_v6, %v5044_v51  ;;  %v266_v37 = vld [vmem:[%s4645_s12 + $0x60] sm:$0xe] }
  0x55   : > { %4146 = vmatprep.subr.bf16.mxu1 %v4463_v39 }
  0x56   : > { %2462 = vmatmul.mubr.bf16.gmra.mrb[24].mxu0 %v3588_v50  ;;  %2591 = vmatmul.mubr.bf16.gmra.mrb[24].mxu1 %v814_v25  ;;  %v650_v50 = vrot.slane %v648_v45, 1  ;;  %v822_v25 = vrot.slane %v4835_v30, 1  ;;  %v821_v30 = vrot.slane %v3619_v22, 1  ;;  %v3466_v45 = vld [vmem:[%s4645_s12 + $0x54] sm:$0xf]  ;;  %v3621_v22 = vcombine.low %v265_v19, %v4883_v7 }
  0x57   : > { %2469 = vmatprep.mubr.bf16.mxu0 %v644_v41  ;;  %2598 = vmatprep.mubr.bf16.mxu1 %v4907_v27  ;;  %v232_v41 = vld [vmem:[%s4645_s12 + $0x84] sm:$0xf]  ;;  %v5023_v56 = vcombine.low %v3466_v45, %v5008_v46  ;;  %v3622_v45 = vcombine.low %v266_v37, %v4911_v29  ;;  %v831_v29 = vrot.slane %v4920_v35, 1 }
  0x58   : > { %v651_v55 = vor.u32 %v650_v50, %v646_v44  ;;  %v5003_v44 = vld [vmem:[%s4645_s12 + $0x88] sm:$0xf]  ;;  %v5015_v50 = vld [vmem:[%s4645_s12 + $0x8c] ss:$0 sps:$4 sm:$0x11]   ;;  %4147 = vmatpush3.bf16.msra.mxu1 %v4465_v5  ;;  %v827_v7 = vrot.slane %v3621_v22, 1 }
  0x59   : > { %v5011_v47 = vcombine.low %v232_v41, %v5003_v44  ;;  %v689_v3 = vshll.u32 %v5015_v50, 16  ;;  %v830_v39 = vrot.slane %v3622_v45, 1  ;;  %v4487_v5 = vld [vmem:[%s6034_s1 + $0x1b0] sm:$0xff]   ;;  %v4472_v22 = vld [vmem:[%s4645_s12 + $0x2c] ss:$0 sps:$4 sm:$0x11]  }
  0x5a   : > { %v656_v0 = vsel %vm548_vm0, %v651_v55, %v655_v52  ;;  %v823_v55 = vsel %vm805_vm1, %v821_v30, %v822_v25  ;;  %v4474_v25 = vld [vmem:[%s6034_s1 + $0x1e8] sm:$0xff]  }
  0x5b   : > { %v684_v52 = vshll.u32 %v5011_v47, 16  ;;  %v682_v1 = vshrl.u32 %v5011_v47, 16  ;;  %v691_v14 = vrot.slane %v689_v3, 1  ;;  %4148 = vmatprep.subr.bf16.mxu1 %v4474_v25  ;;  %v4476_v30 = vld [vmem:[%s6034_s1 + $0x1a8] sm:$0xff]   ;;  %v3504_v3 = vld [vmem:[%s4645_s12 + $0x24] sm:$0xe] }
  0x5c   : > { %4149 = vmatpush3.bf16.msra.mxu1 %v4476_v30  ;;  %v1041_v25 = vshll.u32 %v4877_v61, 16  ;;  %v3505_v30 = vld [vmem:[%s4645_s12 + $0x30] sm:$0xe] }
  0x5d   : > { %v686_v63 = vrot.slane %v684_v52, 1  ;;  %v3663_v52 = vcombine.low %v3503_v40, %v4842_v34  ;;  %v3472_v34 = vld [vmem:[%s4645_s12 + $0x78] sm:$0xf] }
  0x5e   : > { %2470 = vmatmul.mubr.bf16.gmra.mrb[28].mxu0 %v3589_v10  ;;  %2599 = vmatmul.mubr.bf16.gmra.mrb[28].mxu1 %v817_v59  ;;  %v4976_v10 = vld [vmem:[%s4645_s12 + $0x80] ss:$0 sps:$4 sm:$0x11]   ;;  %v3620_v59 = vcombine.low %v264_v36, %v4856_v42  ;;  %v3502_v42 = vld [vmem:[%s4645_s12 + $0xc] sm:$0xe] }
  0x5f   : > { %2477 = vmatprep.mubr.bf16.mxu0 %v656_v0  ;;  %2606 = vmatprep.mubr.bf16.mxu1 %v4952_v60  ;;  %v677_v33 = vshll.u32 %v4976_v10, 16  ;;  %v687_v16 = vor.u32 %v686_v63, %v682_v1  ;;  %v1029_v1 = vshll.u32 %v4848_v43, 16  ;;  %v5089_v63 = vld [vmem:[%s4645_s12 + $0x7c] sm:$0xf] }
  0x60   : > { %v824_v13 = vrot.slane %v3620_v59, 1  ;;  %v4479_v40 = vld [vmem:[%s4645_s12 + $0x38] ss:$0 sps:$4 sm:$0x11]  }
  0x61   : > { %v679_v49 = vrot.slane %v677_v33, 1  ;;  %v692_v23 = vsel %vm548_vm0, %v687_v16, %v691_v14  ;;  %v1027_v14 = vshrl.u32 %v4848_v43, 16  ;;  %v1031_v19 = vrot.slane %v1029_v1, 1  ;;  %v5112_v43 = vld [vmem:[%s4645_s12 + $0x88] sm:$0xf] }
  0x62   : > { %v826_v20 = vsel %vm805_vm1, %v824_v13, %v825_v4  ;;  %v1273_v4 = vrot.slane %v3663_v52, 1  ;;  %v5096_v13 = vcombine.low %v3472_v34, %v5089_v63  ;;  %v1046_v52 = vshll.u32 %v4472_v22, 16  ;;  %v269_v1 = vld [vmem:[%s4645_s12 + $0x84] sm:$0xe]  ;;  %v5147_v34 = vld [vmem:[%s4645_s12 + $0x94] sm:$0xf] }
  0x66   : > { %2478 = vmatmul.mubr.bf16.gmra.mrb[32].mxu0 %v4917_v31  ;;  %2607 = vmatmul.mubr.bf16.gmra.mrb[32].mxu1 %v820_v9  ;;  %v675_v31 = vor.u32 %v674_v26, %v670_v28  ;;  %v4461_v9 = vld [vmem:[%s4645_s12 + $0x14] ss:$0 sps:$4 sm:$0x11]   ;;  %v1017_v28 = vshll.u32 %v4807_v15, 16  ;;  %v5063_v26 = vld [vmem:[%s4645_s12 + $0x70] sm:$0xf] }
  0x67   : > { %2485 = vmatprep.mubr.bf16.mxu0 %v668_v32  ;;  %2614 = vmatprep.mubr.bf16.mxu1 %v4985_v24  ;;  %v3470_v32 = vld [vmem:[%s4645_s12 + $0x6c] sm:$0xf]  ;;  %v1271_v38 = vrot.slane %v4461_v9, 1  ;;  %v1022_v41 = vshll.u32 %v4461_v9, 16 }
  0x68   : > { %v680_v0 = vsel %vm548_vm0, %v675_v31, %v679_v49  ;;  %v5075_v49 = vcombine.low %v3470_v32, %v5063_v26 }
  0x69   : > { %v1024_v59 = vrot.slane %v1022_v41, 1  ;;  %v4498_v41 = vld [vmem:[%s6034_s1 + $0x1b8] sm:$0xff]  }
  0x6e   : > { %2486 = vmatmul.mubr.bf16.gmra.mrb[36].mxu0 %v4945_v57  ;;  %2615 = vmatmul.mubr.bf16.gmra.mrb[36].mxu1 %v823_v55  ;;  %v3662_v57 = vcombine.low %v3502_v42, %v4803_v8  ;;  %v828_v8 = vrot.slane %v4887_v11, 1  ;;  %v1015_v11 = vshrl.u32 %v4807_v15, 16  ;;  %v4468_v15 = vld [vmem:[%s4645_s12 + $0x20] ss:$0 sps:$4 sm:$0x11]   ;;  %v832_v42 = vsel %vm805_vm1, %v830_v39, %v831_v29 }
  0x6f   : > { %2493 = vmatprep.mubr.bf16.mxu0 %v680_v0  ;;  %2622 = vmatprep.mubr.bf16.mxu1 %v5023_v56  ;;  %v4485_v0 = vld [vmem:[%s6034_s1 + $0x1f0] sm:$0xff]   ;;  %v1274_v35 = vrot.slane %v4468_v15, 1  ;;  %v837_v29 = vrot.slane %v4976_v10, 1  ;;  %v3625_v10 = vcombine.low %v269_v1, %v5003_v44 }
  0x70   : > { %v1270_v33 = vrot.slane %v3662_v57, 1  ;;  %v829_v31 = vsel %vm805_vm1, %v827_v7, %v828_v8  ;;  %4150 = vmatprep.subr.bf16.mxu1 %v4485_v0  ;;  %v1034_v57 = vshll.u32 %v4468_v15, 16  ;;  %v1032_v8 = vor.u32 %v1031_v19, %v1027_v14  ;;  %v268_v7 = vld [vmem:[%s4645_s12 + $0x78] sm:$0xe]  ;;  %v3476_v0 = vld [vmem:[%s4645_s12 + $0x90] sm:$0xf] }
  0x71   : > { %4151 = vmatpush3.bf16.msra.mxu1 %v4487_v5  ;;  %v1275_v9 = vsel %vm805_vm1, %v1273_v4, %v1274_v35  ;;  %v3506_v4 = vld [vmem:[%s4645_s12 + $0x3c] sm:$0xe]  ;;  %v5155_v5 = vcombine.low %v3476_v0, %v5147_v34  ;;  %v1058_v14 = vshll.u32 %v4479_v40, 16  ;;  %v4483_v19 = vld [vmem:[%s4645_s12 + $0x44] ss:$0 sps:$4 sm:$0x11]  }
  0x72   : > { %v1272_v36 = vsel %vm805_vm1, %v1270_v33, %v1271_v38  ;;  %v1036_v32 = vrot.slane %v1034_v57, 1  ;;  %v4496_v33 = vld [vmem:[%s6034_s1 + $0x1f8] sm:$0xff]   ;;  %v1277_v38 = vrot.slane %v4472_v22, 1  ;;  %v4506_v57 = vld [vmem:[%s6034_s1 + $0x220] sm:$0xff]   ;;  %v840_v22 = vrot.slane %v5015_v50, 1  ;;  %v4513_v50 = vld [vmem:[%s6034_s1 + $0x228] sm:$0xff]  }
  0x73   : > { %4152 = vmatprep.subr.bf16.mxu1 %v4496_v33  ;;  %v4527_v0 = vld [vmem:[%s6034_s1 + $0x238] sm:$0xff]  }
  0x75   : > { %4153 = vmatpush3.bf16.msra.mxu1 %v4498_v41  ;;  %v4490_v41 = vld [vmem:[%s4645_s12 + $0x50] ss:$0 sps:$4 sm:$0x11]  }
  0x76   : > { %2494 = vmatmul.mubr.bf16.gmra.mrb[40].mxu0 %v4970_v17  ;;  %2623 = vmatmul.mubr.bf16.gmra.mrb[40].mxu1 %v826_v20  ;;  %v1019_v17 = vrot.slane %v1017_v28, 1  ;;  %v3664_v20 = vcombine.low %v3504_v3, %v4865_v53  ;;  %v834_v28 = vrot.slane %v4948_v58, 1  ;;  %v1280_v3 = vrot.slane %v4479_v40, 1 }
  0x77   : > { %2501 = vmatprep.mubr.bf16.mxu0 %v692_v23  ;;  %2630 = vmatprep.mubr.bf16.mxu1 %v5050_v12  ;;  %v4475_v23 = vld [vmem:[%s6034_s1 + $0x208] sm:$0xff]   ;;  %v1070_v40 = vshll.u32 %v4483_v19, 16 }
  0x78   : > { %v1020_v55 = vor.u32 %v1019_v17, %v1015_v11  ;;  %v1276_v37 = vrot.slane %v3664_v20, 1  ;;  %v1039_v11 = vshrl.u32 %v4877_v61, 16  ;;  %v3624_v17 = vcombine.low %v268_v7, %v4964_v2  ;;  %v4497_v2 = vld [vmem:[%s6034_s1 + $0x218] sm:$0xff]  }
  0x79   : > { %v3665_v61 = vcombine.low %v3505_v30, %v4897_v18  ;;  %v3666_v20 = vcombine.low %v3506_v4, %v4932_v48 }
  0x7a   : > { %v1025_v6 = vsel %vm548_vm0, %v1020_v55, %v1024_v59  ;;  %v1278_v15 = vsel %vm805_vm1, %v1276_v37, %v1277_v38  ;;  %v836_v39 = vrot.slane %v3624_v17, 1  ;;  %v1053_v55 = vshll.u32 %v4907_v27, 16  ;;  %v4563_v37 = vld [vmem:[%s4645_s12 + $0x94] sm:$0xf] }
  0x7b   : > { %v1048_v59 = vrot.slane %v1046_v52, 1  ;;  %v4564_v52 = vld [vmem:[%s4645_s12 + $0x98] ss:$0 sps:$4 sm:$0x11]  }
  0x7c   : > { %v838_v35 = vsel %vm805_vm1, %v836_v39, %v837_v29  ;;  %v5193_v39 = vld [vmem:[%s4645_s12 + $0xac] sm:$0xf] }
  0x7e   : > { %2502 = vmatmul.mubr.bf16.gmra.mrb[44].mxu0 %v5011_v47  ;;  %2631 = vmatmul.mubr.bf16.gmra.mrb[44].mxu1 %v829_v31  ;;  %v267_v47 = vld [vmem:[%s4645_s12 + $0x6c] sm:$0xe]  ;;  %v1037_v31 = vsel %vm548_vm0, %v1032_v8, %v1036_v32  ;;  %v1283_v8 = vrot.slane %v4483_v19, 1  ;;  %v3507_v32 = vld [vmem:[%s4645_s12 + $0x48] sm:$0xe] }
  0x7f   : > { %2638 = vmatprep.mubr.bf16.mxu1 %v5075_v49  ;;  %2735 = vmatprep.mubr.bf16.mxu0 %v1272_v36  ;;  %v3623_v16 = vcombine.low %v267_v47, %v4941_v54  ;;  %v3474_v54 = vld [vmem:[%s4645_s12 + $0x84] sm:$0xf]  ;;  %v1043_v36 = vrot.slane %v1041_v25, 1  ;;  %v1279_v47 = vrot.slane %v3665_v61, 1  ;;  %v1065_v25 = vshll.u32 %v4952_v60, 16 }
  0x80   : > { %v5127_v58 = vcombine.low %v3474_v54, %v5112_v43  ;;  %v1060_v54 = vrot.slane %v1058_v14, 1  ;;  %v843_v61 = vrot.slane %v4564_v52, 1  ;;  %v4494_v19 = vld [vmem:[%s4645_s12 + $0x5c] ss:$0 sps:$4 sm:$0x11]  }
  0x81   : > { %v833_v53 = vrot.slane %v3623_v16, 1  ;;  %v1044_v18 = vor.u32 %v1043_v36, %v1039_v11  ;;  %v1055_v16 = vrot.slane %v1053_v55, 1  ;;  %v1281_v44 = vsel %vm805_vm1, %v1279_v47, %v1280_v3 }
  0x82   : > { %v1063_v11 = vshrl.u32 %v4952_v60, 16  ;;  %v1067_v17 = vrot.slane %v1065_v25, 1  ;;  %v1077_v60 = vshll.u32 %v4985_v24, 16  ;;  %v1286_v55 = vrot.slane %v4490_v41, 1 }
  0x83   : > { %v835_v45 = vsel %vm805_vm1, %v833_v53, %v834_v28  ;;  %v270_v53 = vld [vmem:[%s4645_s12 + $0x90] sm:$0xe]  ;;  %v1282_v28 = vrot.slane %v3666_v20, 1  ;;  %v1075_v3 = vshrl.u32 %v4985_v24, 16  ;;  %v3509_v24 = vld [vmem:[%s4645_s12 + $0x60] sm:$0xe] }
  0x84   : > { %v3626_v38 = vcombine.low %v270_v53, %v4563_v37  ;;  %v4566_v20 = vld [vmem:[%s4645_s12 + $0xa4] ss:$0 sps:$4 sm:$0x11]   ;;  %v1289_v53 = vrot.slane %v4494_v19, 1 }
  0x86   : > { %2639 = vmatmul.mubr.bf16.gmra.mrb[48].mxu1 %v832_v42  ;;  %2736 = vmatmul.mubr.bf16.vlgmr.msra.gmra.mrb[48].mxu0 %v1025_v6  ;;  %v1051_v42 = vshrl.u32 %v4907_v27, 16  ;;  %v1049_v6 = vsel %vm548_vm0, %v1044_v18, %v1048_v59  ;;  %v839_v27 = vrot.slane %v3625_v10, 1  ;;  %v842_v36 = vrot.slane %v3626_v38, 1  ;;  %v271_v18 = vld [vmem:[%s4645_s12 + $0x9c] sm:$0xe] }
  0x87   : > { %4275 = vmatpush3.bf16.msra.mxu0 %v5029_v62  ;;  %2646 = vmatprep.mubr.bf16.mxu1 %v5096_v13  ;;  %v4486_v62 = vld [vmem:[%s6034_s1 + $0x210] sm:$0xff]   ;;  %v1094_v38 = vshll.u32 %v4494_v19, 16 }
  0x88   : > { %2743 = vmatprep.mubr.bf16.mxu0 %v1275_v9  ;;  %4276 = vmatprep.subr.bf16.mxu0 %v4475_v23  ;;  %v5166_v9 = vld [vmem:[%s4645_s12 + $0xa0] sm:$0xf]  ;;  %v1056_v48 = vor.u32 %v1055_v16, %v1051_v42  ;;  %v841_v7 = vsel %vm805_vm1, %v839_v27, %v840_v22  ;;  %v3508_v59 = vld [vmem:[%s4645_s12 + $0x54] sm:$0xe]  ;;  %v844_v1 = vsel %vm805_vm1, %v842_v36, %v843_v61  ;;  %v1079_v42 = vrot.slane %v1077_v60, 1 }
  0x89   : > { %v3668_v16 = vcombine.low %v3508_v59, %v5008_v46  ;;  %v3482_v27 = vld [vmem:[%s4645_s12 + $0xb4] sm:$0xf]  ;;  %v5215_v22 = vld [vmem:[%s4645_s12 + $0xb8] sm:$0xf]  ;;  %v1096_v60 = vrot.slane %v1094_v38, 1  ;;  %v1099_v59 = vshrl.u32 %v5050_v12, 16 }
  0x8a   : > { %v1061_v30 = vsel %vm548_vm0, %v1056_v48, %v1060_v54  ;;  %v1080_v25 = vor.u32 %v1079_v42, %v1075_v3  ;;  %v4568_v36 = vld [vmem:[%s4645_s12 + $0xb0] ss:$0 sps:$4 sm:$0x11]   ;;  %v3520_v3 = vld [vmem:[%s4645_s12 + $0x24] sm:$0xf] }
  0x8b   : > { %4277 = vmatpush3.bf16.msra.mxu0 %v4475_v23  ;;  %v3478_v23 = vld [vmem:[%s4645_s12 + $0x9c] sm:$0xf]  ;;  %v1288_v54 = vrot.slane %v3668_v16, 1  ;;  %v849_v52 = vrot.slane %v4568_v36, 1 }
  0x8c   : > { %4278 = vmatprep.subr.bf16.mxu0 %v4486_v62  ;;  %v5177_v33 = vcombine.low %v3478_v23, %v5166_v9  ;;  %v272_v23 = vld [vmem:[%s4645_s12 + $0xa8] sm:$0xe]  ;;  %v4503_v16 = vld [vmem:[%s4645_s12 + $0x74] ss:$0 sps:$4 sm:$0x11]  }
  0x8e   : > { %2647 = vmatmul.mubr.bf16.gmra.mrb[52].mxu1 %v835_v45  ;;  %2744 = vmatmul.mubr.bf16.gmra.mrb[52].mxu0 %v1037_v31  ;;  %v3667_v45 = vcombine.low %v3507_v32, %v4973_v21  ;;  %v1284_v31 = vsel %vm805_vm1, %v1282_v28, %v1283_v8  ;;  %v3480_v21 = vld [vmem:[%s4645_s12 + $0xa8] sm:$0xf]  ;;  %v3518_v28 = vld [vmem:[%s4645_s12 + $0x18] sm:$0xf]  ;;  %v5221_v8 = vld [vmem:[%s4645_s12 + $0x1c] sm:$0xf]  ;;  %v3669_v32 = vcombine.low %v3509_v24, %v5044_v51 }
  0x8f   : > { %2654 = vmatprep.mubr.bf16.mxu1 %v5127_v58  ;;  %2751 = vmatprep.mubr.bf16.mxu0 %v1278_v15  ;;  %v1068_v15 = vor.u32 %v1067_v17, %v1063_v11  ;;  %v5202_v47 = vcombine.low %v3480_v21, %v5193_v39  ;;  %v1087_v11 = vshrl.u32 %v5023_v56, 16  ;;  %v1290_v51 = vsel %vm805_vm1, %v1288_v54, %v1289_v53 }
  0x90   : > { %4279 = vmatpush3.bf16.msra.mxu0 %v4486_v62  ;;  %v4520_v62 = vld [vmem:[%s6034_s1 + $0x230] sm:$0xff]   ;;  %v1285_v29 = vrot.slane %v3667_v45, 1  ;;  %v5235_v45 = vcombine.low %v3518_v28, %v5221_v8 }
  0x91   : > { %4280 = vmatprep.subr.bf16.mxu0 %v4497_v2 }
  0x92   : > { %v1287_v14 = vsel %vm805_vm1, %v1285_v29, %v1286_v55  ;;  %v1291_v29 = vrot.slane %v3669_v32, 1  ;;  %v4505_v55 = vld [vmem:[%s4645_s12 + $0x20] ss:$0 sps:$4 sm:$0x11]   ;;  %v1295_v32 = vrot.slane %v4503_v16, 1 }
  0x93   : > { %v1735_v36 = vrot.slane %v4505_v55, 1 }
  0x94   : > { %4281 = vmatpush3.bf16.msra.mxu0 %v4497_v2  ;;  %v1072_v2 = vrot.slane %v1070_v40, 1  ;;  %v1101_v40 = vshll.u32 %v5050_v12, 16  ;;  %v1486_v12 = vshll.u32 %v4505_v55, 16 }
  0x95   : > { %4282 = vmatprep.subr.bf16.mxu0 %v4506_v57 }
  0x96   : > { %2655 = vmatmul.mubr.bf16.gmra.mrb[56].mxu1 %v838_v35  ;;  %2752 = vmatmul.mubr.bf16.gmra.mrb[56].mxu0 %v1049_v6  ;;  %v1073_v4 = vsel %vm548_vm0, %v1068_v15, %v1072_v2  ;;  %v4565_v35 = vld [vmem:[%s4645_s12 + $0xa0] sm:$0xf]  ;;  %v1082_v6 = vshll.u32 %v4490_v41, 16  ;;  %v4501_v41 = vld [vmem:[%s4645_s12 + $0x68] ss:$0 sps:$4 sm:$0x11]  }
  0x97   : > { %2662 = vmatprep.mubr.bf16.mxu1 %v5155_v5  ;;  %2759 = vmatprep.mubr.bf16.mxu0 %v1281_v44  ;;  %v3627_v10 = vcombine.low %v271_v18, %v4565_v35  ;;  %v846_v44 = vrot.slane %v4566_v20, 1  ;;  %v5241_v15 = vld [vmem:[%s4645_s12 + $0xc4] sm:$0xf]  ;;  %v273_v2 = vld [vmem:[%s4645_s12 + $0xb4] sm:$0xe]  ;;  %v1292_v18 = vrot.slane %v4501_v41, 1 }
  0x98   : > { %4283 = vmatpush3.bf16.msra.mxu0 %v4506_v57  ;;  %v1089_v57 = vshll.u32 %v5023_v56, 16  ;;  %v1084_v48 = vrot.slane %v1082_v6, 1  ;;  %v3484_v56 = vld [vmem:[%s4645_s12 + $0xc0] sm:$0xf]  ;;  %v1106_v6 = vshll.u32 %v4501_v41, 16  ;;  %v1479_v20 = vshrl.u32 %v5235_v45, 16 }
  0x99   : > { %4284 = vmatprep.subr.bf16.mxu0 %v4513_v50  ;;  %v845_v46 = vrot.slane %v3627_v10, 1  ;;  %v3521_v10 = vld [vmem:[%s4645_s12 + $0x28] sm:$0xf]  ;;  %v1293_v24 = vsel %vm805_vm1, %v1291_v29, %v1292_v18  ;;  %v1111_v41 = vshrl.u32 %v5075_v49, 16 }
  0x9a   : > { %v1091_v17 = vrot.slane %v1089_v57, 1  ;;  %v5256_v57 = vcombine.low %v3484_v56, %v5241_v15  ;;  %v1108_v53 = vrot.slane %v1106_v6, 1 }
  0x9c   : > { %4285 = vmatpush3.bf16.msra.mxu0 %v4513_v50  ;;  %v5225_v50 = vcombine.low %v3482_v27, %v5215_v22  ;;  %v1092_v21 = vor.u32 %v1091_v17, %v1087_v11  ;;  %v5260_v27 = vcombine.low %v3520_v3, %v3521_v10  ;;  %v3522_v11 = vld [vmem:[%s4645_s12 + $0x30] sm:$0xf] }
  0x9d   : > { %4286 = vmatprep.subr.bf16.mxu0 %v4520_v62 }
  0x9e   : > { %2663 = vmatmul.mubr.bf16.gmra.mrb[60].mxu1 %v841_v7  ;;  %2760 = vmatmul.mubr.bf16.gmra.mrb[60].mxu0 %v1061_v30  ;;  %v4567_v7 = vld [vmem:[%s4645_s12 + $0xac] sm:$0xf]  ;;  %v1085_v30 = vsel %vm548_vm0, %v1080_v25, %v1084_v48  ;;  %v1097_v19 = vsel %vm548_vm0, %v1092_v21, %v1096_v60  ;;  %v3511_v48 = vld [vmem:[%s4645_s12 + $0x78] sm:$0xe] }
  0x9f   : > { %2670 = vmatprep.mubr.bf16.mxu1 %v5177_v33  ;;  %2767 = vmatprep.mubr.bf16.mxu0 %v1284_v31  ;;  %v3628_v37 = vcombine.low %v272_v23, %v4567_v7  ;;  %v3510_v31 = vld [vmem:[%s4645_s12 + $0x6c] sm:$0xe]  ;;  %v1488_v7 = vrot.slane %v1486_v12, 1  ;;  %v4507_v21 = vld [vmem:[%s4645_s12 + $0x80] ss:$0 sps:$4 sm:$0x11]  }
  0xa0   : > { %4287 = vmatpush3.bf16.msra.mxu0 %v4520_v62  ;;  %v847_v62 = vsel %vm805_vm1, %v845_v46, %v846_v44  ;;  %v3670_v42 = vcombine.low %v3510_v31, %v5063_v26  ;;  %v1113_v26 = vshll.u32 %v5075_v49, 16  ;;  %v4570_v46 = vld [vmem:[%s4645_s12 + $0xbc] ss:$0 sps:$4 sm:$0x11]   ;;  %v5275_v31 = vld [vmem:[%s4645_s12 + $0x34] sm:$0xf] }
  0xa1   : > { %4288 = vmatprep.subr.bf16.mxu0 %v4527_v0  ;;  %v848_v61 = vrot.slane %v3628_v37, 1  ;;  %v852_v25 = vrot.slane %v4570_v46, 1  ;;  %v3566_v37 = vld [vmem:[%s4645_s12 + $0x18] sm:$0xe]  ;;  %v5284_v55 = vcombine.low %v3522_v11, %v5275_v31 }
  0xa2   : > { %v1294_v28 = vrot.slane %v3670_v42, 1  ;;  %v3710_v17 = vcombine.low %v3566_v37, %v5221_v8  ;;  %v1115_v56 = vrot.slane %v1113_v26, 1  ;;  %v1491_v8 = vshrl.u32 %v5260_v27, 16  ;;  %v5300_v26 = vld [vmem:[%s4645_s12 + $0x40] sm:$0xf] }
  0xa4   : > { %4289 = vmatpush3.bf16.msra.mxu0 %v4527_v0  ;;  %v1103_v0 = vrot.slane %v1101_v40, 1  ;;  %v3671_v40 = vcombine.low %v3511_v48, %v5089_v63  ;;  %v1296_v60 = vsel %vm805_vm1, %v1294_v28, %v1295_v32  ;;  %v1734_v29 = vrot.slane %v3710_v17, 1  ;;  %v4510_v28 = vld [vmem:[%s4645_s12 + $0x8c] ss:$0 sps:$4 sm:$0x11]  }
  0xa5   : > { %v1503_v32 = vshrl.u32 %v5284_v55, 16 }
  0xa6   : > { %2671 = vmatmul.mubr.bf16.gmra.mrb[64].mxu1 %v844_v1  ;;  %2768 = vmatmul.mubr.bf16.gmra.mrb[64].mxu0 %v1073_v4  ;;  %v1481_v1 = vshll.u32 %v5235_v45, 16  ;;  %v4569_v4 = vld [vmem:[%s4645_s12 + $0xb8] sm:$0xf]  ;;  %v1104_v54 = vor.u32 %v1103_v0, %v1099_v59  ;;  %v1297_v6 = vrot.slane %v3671_v40, 1  ;;  %v1301_v40 = vrot.slane %v4510_v28, 1 }
  0xa7   : > { %2678 = vmatprep.mubr.bf16.mxu1 %v5202_v47  ;;  %2775 = vmatprep.mubr.bf16.mxu0 %v1287_v14  ;;  %v3629_v35 = vcombine.low %v273_v2, %v4569_v4  ;;  %v850_v14 = vsel %vm805_vm1, %v848_v61, %v849_v52  ;;  %v3567_v52 = vld [vmem:[%s4645_s12 + $0x24] sm:$0xe]  ;;  %v1118_v2 = vshll.u32 %v4503_v16, 16  ;;  %v1125_v4 = vshll.u32 %v5096_v13, 16 }
  0xa8   : > { %v1483_v44 = vrot.slane %v1481_v1, 1  ;;  %v1109_v61 = vsel %vm548_vm0, %v1104_v54, %v1108_v53  ;;  %v3711_v63 = vcombine.low %v3567_v52, %v3521_v10  ;;  %v5287_v1 = vsel %vm805_vm1, %v1734_v29, %v1735_v36  ;;  %v5317_v36 = vld [vmem:[%s4645_s12 + $0x44] ss:$0 sps:$4 sm:$0x11]  }
  0xa9   : > { %v851_v23 = vrot.slane %v3629_v35, 1  ;;  %v3512_v35 = vld [vmem:[%s4645_s12 + $0x84] sm:$0xe]  ;;  %v1116_v10 = vor.u32 %v1115_v56, %v1111_v41  ;;  %v1120_v42 = vrot.slane %v1118_v2, 1  ;;  %v1298_v16 = vrot.slane %v4507_v21, 1 }
  0xaa   : > { %v1484_v38 = vor.u32 %v1483_v44, %v1479_v20  ;;  %v1737_v3 = vrot.slane %v3711_v63, 1  ;;  %v1505_v20 = vshll.u32 %v5284_v55, 16  ;;  %v3524_v44 = vld [vmem:[%s4645_s12 + $0x3c] sm:$0xf]  ;;  %v1127_v46 = vrot.slane %v1125_v4, 1 }
  0xab   : > { %v3672_v48 = vcombine.low %v3512_v35, %v5112_v43  ;;  %v1121_v54 = vsel %vm548_vm0, %v1116_v10, %v1120_v42  ;;  %v1299_v53 = vsel %vm805_vm1, %v1297_v6, %v1298_v16  ;;  %v1137_v43 = vshll.u32 %v5127_v58, 16  ;;  %v4514_v63 = vld [vmem:[%s4645_s12 + $0x98] ss:$0 sps:$4 sm:$0x11]  }
  0xac   : > { %v1489_v59 = vsel %vm548_vm0, %v1484_v38, %v1488_v7  ;;  %v1507_v37 = vrot.slane %v1505_v20, 1  ;;  %v1135_v56 = vshrl.u32 %v5127_v58, 16  ;;  %v1142_v2 = vshll.u32 %v4510_v28, 16  ;;  %v3528_v20 = vld [vmem:[%s4645_s12 + $0x54] sm:$0xf] }
  0xad   : > { %v1300_v17 = vrot.slane %v3672_v48, 1  ;;  %v1304_v42 = vrot.slane %v4514_v63, 1 }
  0xae   : > { %2679 = vmatmul.mubr.bf16.gmra.mrb[68].mxu1 %v847_v62  ;;  %2776 = vmatmul.mubr.bf16.gmra.mrb[68].mxu0 %v1085_v30  ;;  %v4509_v62 = vld [vmem:[%s4645_s12 + $0x2c] ss:$0 sps:$4 sm:$0x11]   ;;  %v1493_v30 = vshll.u32 %v5260_v27, 16  ;;  %v1144_v35 = vrot.slane %v1142_v2, 1 }
  0xaf   : > { %2686 = vmatprep.mubr.bf16.mxu1 %v5225_v50  ;;  %2783 = vmatprep.mubr.bf16.mxu0 %v1290_v51  ;;  %v853_v51 = vsel %vm805_vm1, %v851_v23, %v852_v25  ;;  %v1738_v18 = vrot.slane %v4509_v62, 1  ;;  %v1498_v0 = vshll.u32 %v4509_v62, 16  ;;  %v1123_v23 = vshrl.u32 %v5096_v13, 16  ;;  %v3513_v62 = vld [vmem:[%s4645_s12 + $0x90] sm:$0xe] }
  0xb0   : > { %v1495_v49 = vrot.slane %v1493_v30, 1  ;;  %v1130_v25 = vshll.u32 %v4507_v21, 16  ;;  %v5311_v13 = vcombine.low %v3524_v44, %v5300_v26  ;;  %v3673_v21 = vcombine.low %v3513_v62, %v5147_v34  ;;  %v5344_v44 = vld [vmem:[%s4645_s12 + $0x58] sm:$0xf] }
  0xb1   : > { %v1500_v12 = vrot.slane %v1498_v0, 1  ;;  %v1128_v30 = vor.u32 %v1127_v46, %v1123_v23  ;;  %v1302_v29 = vsel %vm805_vm1, %v1300_v17, %v1301_v40  ;;  %v1522_v0 = vshll.u32 %v5317_v36, 16  ;;  %v5361_v17 = vld [vmem:[%s4645_s12 + $0x5c] ss:$0 sps:$4 sm:$0x11]  }
  0xb2   : > { %v1132_v11 = vrot.slane %v1130_v25, 1  ;;  %v1517_v52 = vshll.u32 %v5311_v13, 16  ;;  %v1149_v34 = vshll.u32 %v5155_v5, 16  ;;  %v1303_v10 = vrot.slane %v3673_v21, 1 }
  0xb3   : > { %v1524_v16 = vrot.slane %v1522_v0, 1  ;;  %v1147_v23 = vshrl.u32 %v5155_v5, 16  ;;  %v1154_v46 = vshll.u32 %v4514_v63, 16  ;;  %v5355_v5 = vcombine.low %v3528_v20, %v5344_v44  ;;  %v3516_v0 = vld [vmem:[%s4645_s12 + $0xb4] sm:$0xe] }
  0xb4   : > { %v1161_v62 = vshll.u32 %v5177_v33, 16  ;;  %v5388_v20 = vld [vmem:[%s4645_s12 + $0x70] sm:$0xf] }
  0xb6   : > { %2687 = vmatmul.mubr.bf16.gmra.mrb[72].mxu1 %v850_v14  ;;  %2784 = vmatmul.mubr.bf16.gmra.mrb[72].mxu0 %v1097_v19  ;;  %v5292_v14 = vsel %vm805_vm1, %v1737_v3, %v1738_v18  ;;  %v1496_v19 = vor.u32 %v1495_v49, %v1491_v8  ;;  %v1133_v8 = vsel %vm548_vm0, %v1128_v30, %v1132_v11  ;;  %v1515_v18 = vshrl.u32 %v5311_v13, 16  ;;  %v3514_v3 = vld [vmem:[%s4645_s12 + $0x9c] sm:$0xe] }
  0xb7   : > { %2694 = vmatprep.mubr.bf16.mxu1 %v5256_v57  ;;  %2791 = vmatprep.mubr.bf16.mxu0 %v1293_v24  ;;  %v5295_v24 = vld [vmem:[%s4645_s12 + $0x38] ss:$0 sps:$4 sm:$0x11]   ;;  %v1519_v49 = vrot.slane %v1517_v52, 1  ;;  %v3674_v25 = vcombine.low %v3514_v3, %v5166_v9  ;;  %v3530_v52 = vld [vmem:[%s4645_s12 + $0x60] sm:$0xf] }
  0xb8   : > { %v1501_v7 = vsel %vm548_vm0, %v1496_v19, %v1500_v12  ;;  %v1510_v38 = vshll.u32 %v5295_v24, 16  ;;  %v5339_v19 = vld [vmem:[%s4645_s12 + $0x50] ss:$0 sps:$4 sm:$0x11]   ;;  %v1163_v21 = vrot.slane %v1161_v62, 1 }
  0xb9   : > { %v1520_v6 = vor.u32 %v1519_v49, %v1515_v18  ;;  %v1306_v30 = vrot.slane %v3674_v25, 1  ;;  %v4521_v18 = vld [vmem:[%s4645_s12 + $0xb0] ss:$0 sps:$4 sm:$0x11]  }
  0xba   : > { %v1512_v41 = vrot.slane %v1510_v38, 1  ;;  %v3515_v38 = vld [vmem:[%s4645_s12 + $0xa8] sm:$0xe] }
  0xbe   : > { %2695 = vmatmul.mubr.bf16.gmra.mrb[76].mxu1 %v853_v51  ;;  %2792 = vmatmul.mubr.bf16.gmra.mrb[76].mxu0 %v1109_v61  ;;  %v1508_v51 = vor.u32 %v1507_v37, %v1503_v32  ;;  %v3526_v61 = vld [vmem:[%s4645_s12 + $0x48] sm:$0xf]  ;;  %v1525_v32 = vsel %vm548_vm0, %v1520_v6, %v1524_v16  ;;  %v1534_v37 = vshll.u32 %v5339_v19, 16 }
  0xbf   : > { %2799 = vmatprep.mubr.bf16.mxu0 %v1296_v60  ;;  %2896 = vmatprep.mubr.bf16.mxu1 %v1489_v59  ;;  %v5322_v60 = vld [vmem:[%s4645_s12 + $0x4c] sm:$0xf] }
  0xc0   : > { %v1513_v59 = vsel %vm548_vm0, %v1508_v51, %v1512_v41  ;;  %v5333_v58 = vcombine.low %v3526_v61, %v5322_v60  ;;  %v1536_v51 = vrot.slane %v1534_v37, 1  ;;  %v1541_v41 = vshll.u32 %v5355_v5, 16  ;;  %v5366_v61 = vld [vmem:[%s4645_s12 + $0x64] sm:$0xf] }
  0xc2   : > { %v1529_v12 = vshll.u32 %v5333_v58, 16  ;;  %v1527_v28 = vshrl.u32 %v5333_v58, 16  ;;  %v1543_v49 = vrot.slane %v1541_v41, 1  ;;  %v3534_v41 = vld [vmem:[%s4645_s12 + $0x78] sm:$0xf] }
  0xc6   : > { %2800 = vmatmul.mubr.bf16.gmra.mrb[80].mxu0 %v1121_v54  ;;  %2897 = vmatmul.mubr.bf16.vlgmr.msra.gmra.mrb[80].mxu1 %v5235_v45  ;;  %v1139_v45 = vrot.slane %v1137_v43, 1  ;;  %v1305_v54 = vsel %vm805_vm1, %v1303_v10, %v1304_v42  ;;  %v1156_v43 = vrot.slane %v1154_v46, 1  ;;  %v1310_v42 = vrot.slane %v4521_v18, 1 }
  0xc7   : > { %2807 = vmatprep.mubr.bf16.mxu0 %v1299_v53  ;;  %2904 = vmatprep.mubr.bf16.mxu1 %v1501_v7  ;;  %v4517_v53 = vld [vmem:[%s4645_s12 + $0xa4] ss:$0 sps:$4 sm:$0x11]   ;;  %v1531_v7 = vrot.slane %v1529_v12, 1  ;;  %v3532_v12 = vld [vmem:[%s4645_s12 + $0x6c] sm:$0xf] }
  0xc8   : > { %v1140_v4 = vor.u32 %v1139_v45, %v1135_v56  ;;  %v1307_v11 = vrot.slane %v4517_v53, 1  ;;  %v1159_v45 = vshrl.u32 %v5177_v33, 16  ;;  %v1173_v33 = vshll.u32 %v5202_v47, 16 }
  0xc9   : > { %v1532_v40 = vor.u32 %v1531_v7, %v1527_v28  ;;  %v1178_v46 = vshll.u32 %v4521_v18, 16 }
  0xca   : > { %v1145_v48 = vsel %vm548_vm0, %v1140_v4, %v1144_v35  ;;  %v1308_v2 = vsel %vm805_vm1, %v1306_v30, %v1307_v11  ;;  %v5383_v4 = vld [vmem:[%s4645_s12 + $0x68] ss:$0 sps:$4 sm:$0x11]  }
  0xcb   : > { %v1537_v63 = vsel %vm548_vm0, %v1532_v40, %v1536_v51  ;;  %v1558_v28 = vshll.u32 %v5383_v4, 16  ;;  %v5405_v40 = vld [vmem:[%s4645_s12 + $0x74] ss:$0 sps:$4 sm:$0x11]  }
  0xcd   : > { %v1560_v11 = vrot.slane %v1558_v28, 1 }
  0xce   : > { %2808 = vmatmul.mubr.bf16.gmra.mrb[84].mxu0 %v1133_v8  ;;  %2905 = vmatmul.mubr.bf16.gmra.mrb[84].mxu1 %v5260_v27  ;;  %v1151_v27 = vrot.slane %v1149_v34, 1  ;;  %v1166_v8 = vshll.u32 %v4517_v53, 16  ;;  %v1164_v34 = vor.u32 %v1163_v21, %v1159_v45 }
  0xcf   : > { %2815 = vmatprep.mubr.bf16.mxu0 %v1302_v29  ;;  %2912 = vmatprep.mubr.bf16.mxu1 %v1513_v59  ;;  %v5373_v29 = vcombine.low %v3530_v52, %v5366_v61  ;;  %v1539_v59 = vshrl.u32 %v5355_v5, 16  ;;  %v5410_v52 = vld [vmem:[%s4645_s12 + $0x7c] sm:$0xf] }
  0xd0   : > { %v1152_v9 = vor.u32 %v1151_v27, %v1147_v23  ;;  %v1168_v3 = vrot.slane %v1166_v8, 1  ;;  %v3676_v23 = vcombine.low %v3516_v0, %v5215_v22  ;;  %v1175_v27 = vrot.slane %v1173_v33, 1 }
  0xd1   : > { %v1553_v35 = vshll.u32 %v5373_v29, 16  ;;  %v1544_v6 = vor.u32 %v1543_v49, %v1539_v59  ;;  %v5399_v22 = vcombine.low %v3532_v12, %v5388_v20  ;;  %v1570_v49 = vshll.u32 %v5405_v40, 16 }
  0xd2   : > { %v1157_v56 = vsel %vm548_vm0, %v1152_v9, %v1156_v43  ;;  %v1169_v25 = vsel %vm548_vm0, %v1164_v34, %v1168_v3  ;;  %v3517_v9 = vld [vmem:[%s4645_s12 + $0xc0] sm:$0xe]  ;;  %v1312_v43 = vrot.slane %v3676_v23, 1  ;;  %v1195_v12 = vshrl.u32 %v5256_v57, 16 }
  0xd3   : > { %v1555_v53 = vrot.slane %v1553_v35, 1  ;;  %v1565_v51 = vshll.u32 %v5399_v22, 16  ;;  %v1563_v18 = vshrl.u32 %v5399_v22, 16  ;;  %v1572_v35 = vrot.slane %v1570_v49, 1 }
  0xd5   : > { %v1567_v59 = vrot.slane %v1565_v51, 1 }
  0xd6   : > { %2816 = vmatmul.mubr.bf16.gmra.mrb[88].mxu0 %v1145_v48  ;;  %2913 = vmatmul.mubr.bf16.gmra.mrb[88].mxu1 %v5284_v55  ;;  %v3675_v55 = vcombine.low %v3515_v38, %v5193_v39  ;;  %v1546_v39 = vshll.u32 %v5361_v17, 16  ;;  %v4524_v48 = vld [vmem:[%s4645_s12 + $0xbc] ss:$0 sps:$4 sm:$0x11]   ;;  %v1180_v38 = vrot.slane %v1178_v46, 1 }
  0xd7   : > { %2823 = vmatprep.mubr.bf16.mxu0 %v1305_v54  ;;  %2920 = vmatprep.mubr.bf16.mxu1 %v1525_v32  ;;  %v1551_v54 = vshrl.u32 %v5373_v29, 16  ;;  %v1313_v62 = vrot.slane %v4524_v48, 1  ;;  %v1190_v8 = vshll.u32 %v4524_v48, 16  ;;  %v1568_v3 = vor.u32 %v1567_v59, %v1563_v18 }
  0xd8   : > { %v1309_v10 = vrot.slane %v3675_v55, 1  ;;  %v1548_v16 = vrot.slane %v1546_v39, 1  ;;  %v3677_v55 = vcombine.low %v3517_v9, %v5241_v15  ;;  %v5421_v15 = vcombine.low %v3534_v41, %v5410_v52 }
  0xd9   : > { %v1556_v30 = vor.u32 %v1555_v53, %v1551_v54  ;;  %v1314_v45 = vsel %vm805_vm1, %v1312_v43, %v1313_v62  ;;  %v1192_v33 = vrot.slane %v1190_v8, 1  ;;  %v3538_v62 = vld [vmem:[%s4645_s12 + $0x90] sm:$0xf] }
  0xda   : > { %v1311_v32 = vsel %vm805_vm1, %v1309_v10, %v1310_v42  ;;  %v1549_v7 = vsel %vm548_vm0, %v1544_v6, %v1548_v16  ;;  %v1315_v0 = vrot.slane %v3677_v55, 1  ;;  %v5426_v10 = vld [vmem:[%s4645_s12 + $0x80] ss:$0 sps:$4 sm:$0x11]   ;;  %v1577_v42 = vshll.u32 %v5421_v15, 16 }
  0xdb   : > { %v3536_v6 = vld [vmem:[%s4645_s12 + $0x84] sm:$0xf]  ;;  %v5431_v16 = vld [vmem:[%s4645_s12 + $0x88] sm:$0xf]  ;;  %v1575_v46 = vshrl.u32 %v5421_v15, 16  ;;  %v1582_v54 = vshll.u32 %v5426_v10, 16 }
  0xdc   : > { %v1579_v48 = vrot.slane %v1577_v42, 1  ;;  %v5440_v53 = vcombine.low %v3536_v6, %v5431_v16  ;;  %v5474_v42 = vld [vmem:[%s4645_s12 + $0x98] ss:$0 sps:$4 sm:$0x11]  }
  0xde   : > { %2824 = vmatmul.mubr.bf16.gmra.mrb[92].mxu0 %v1157_v56  ;;  %2921 = vmatmul.mubr.bf16.gmra.mrb[92].mxu1 %v5311_v13  ;;  %v1171_v13 = vshrl.u32 %v5202_v47, 16  ;;  %v1185_v47 = vshll.u32 %v5225_v50, 16  ;;  %v1183_v56 = vshrl.u32 %v5225_v50, 16  ;;  %v1197_v50 = vshll.u32 %v5256_v57, 16 }
  0xdf   : > { %2831 = vmatprep.mubr.bf16.mxu0 %v1308_v2  ;;  %2928 = vmatprep.mubr.bf16.mxu1 %v1537_v63  ;;  %v1561_v2 = vsel %vm548_vm0, %v1556_v30, %v1560_v11  ;;  %v4528_v63 = vld [vmem:[%s4645_s12 + $0xc8] ss:$0 sps:$4 sm:$0x11]   ;;  %v5450_v30 = vld [vmem:[%s4645_s12 + $0x94] sm:$0xf] }
  0xe0   : > { %v1176_v37 = vor.u32 %v1175_v27, %v1171_v13  ;;  %v1187_v21 = vrot.slane %v1185_v47, 1  ;;  %v1316_v34 = vrot.slane %v4528_v63, 1  ;;  %v1199_v23 = vrot.slane %v1197_v50, 1 }
  0xe1   : > { %v1584_v47 = vrot.slane %v1582_v54, 1  ;;  %v5462_v49 = vcombine.low %v3538_v62, %v5450_v30 }
  0xe2   : > { %v1188_v39 = vor.u32 %v1187_v21, %v1183_v56  ;;  %v1317_v27 = vsel %vm805_vm1, %v1315_v0, %v1316_v34  ;;  %v1200_v57 = vor.u32 %v1199_v23, %v1195_v12  ;;  %v3569_v0 = vld [vmem:[%s4645_s12 + $0x3c] sm:$0xe]  ;;  %v3570_v34 = vld [vmem:[%s4645_s12 + $0x48] sm:$0xe] }
  0xe3   : > { %v1601_v6 = vshll.u32 %v5462_v49, 16 }
  0xe4   : > { %v1193_v13 = vsel %vm548_vm0, %v1188_v39, %v1192_v33  ;;  %v1741_v33 = vrot.slane %v5295_v24, 1 }
  0xe6   : > { %2832 = vmatmul.mubr.bf16.gmra.mrb[96].mxu0 %v1169_v25  ;;  %2929 = vmatmul.mubr.bf16.gmra.mrb[96].mxu1 %v5333_v58  ;;  %v1181_v58 = vsel %vm548_vm0, %v1176_v37, %v1180_v38  ;;  %v1573_v25 = vsel %vm548_vm0, %v1568_v3, %v1572_v35  ;;  %v5445_v37 = vld [vmem:[%s4645_s12 + $0x8c] ss:$0 sps:$4 sm:$0x11]   ;;  %v1589_v38 = vshll.u32 %v5440_v53, 16 }
  0xe7   : > { %2839 = vmatprep.mubr.bf16.mxu0 %v1311_v32  ;;  %2936 = vmatprep.mubr.bf16.mxu1 %v1549_v7  ;;  %v3568_v32 = vld [vmem:[%s4645_s12 + $0x30] sm:$0xe]  ;;  %v1580_v7 = vor.u32 %v1579_v48, %v1575_v46  ;;  %v1594_v59 = vshll.u32 %v5445_v37, 16  ;;  %v3714_v46 = vcombine.low %v3570_v34, %v5322_v60 }
  0xe8   : > { %v1591_v18 = vrot.slane %v1589_v38, 1  ;;  %v1603_v38 = vrot.slane %v1601_v6, 1 }
  0xe9   : > { %v1596_v35 = vrot.slane %v1594_v59, 1 }
  0xee   : > { %2840 = vmatmul.mubr.bf16.gmra.mrb[100].mxu0 %v1181_v58  ;;  %2937 = vmatmul.mubr.bf16.gmra.mrb[100].mxu1 %v5355_v5  ;;  %v1202_v5 = vshll.u32 %v4528_v63, 16  ;;  %v1585_v63 = vsel %vm548_vm0, %v1580_v7, %v1584_v47 }
  0xef   : > { %2847 = vmatprep.mubr.bf16.mxu0 %v1314_v45  ;;  %2944 = vmatprep.mubr.bf16.mxu1 %v1561_v2  ;;  %v1587_v45 = vshrl.u32 %v5440_v53, 16  ;;  %v3712_v2 = vcombine.low %v3568_v32, %v5275_v31 }
  0xf0   : > { %v1204_v28 = vrot.slane %v1202_v5, 1  ;;  %v3540_v5 = vld [vmem:[%s4645_s12 + $0x9c] sm:$0xf] }
  0xf1   : > { %v1740_v31 = vrot.slane %v3712_v2, 1  ;;  %v1592_v3 = vor.u32 %v1591_v18, %v1587_v45  ;;  %v5510_v18 = vld [vmem:[%s4645_s12 + $0xac] sm:$0xf] }
  0xf3   : > { %v1597_v47 = vsel %vm548_vm0, %v1592_v3, %v1596_v35 }
  0xf6   : > { %2848 = vmatmul.mubr.bf16.gmra.mrb[104].mxu0 %v1193_v13  ;;  %2945 = vmatmul.mubr.bf16.gmra.mrb[104].mxu1 %v5373_v29  ;;  %v1205_v29 = vsel %vm548_vm0, %v1200_v57, %v1204_v28  ;;  %v5479_v13 = vld [vmem:[%s4645_s12 + $0xa0] sm:$0xf]  ;;  %v1742_v57 = vsel %vm805_vm1, %v1740_v31, %v1741_v33  ;;  %v1599_v28 = vshrl.u32 %v5462_v49, 16 }
  0xf7   : > { %2855 = vmatprep.mubr.bf16.mxu0 %v1317_v27  ;;  %2952 = vmatprep.mubr.bf16.mxu1 %v1573_v25  ;;  %v5492_v60 = vcombine.low %v3540_v5, %v5479_v13 }
  0xf8   : > { %v1604_v45 = vor.u32 %v1603_v38, %v1599_v28  ;;  %v1753_v28 = vrot.slane %v5383_v4, 1 }
  0xf9   : > { %v3818_v9 = vpop.f32.mrb[0].mxu0  ;;  %v3890_v43 = vpop.f32.mrb[0].mxu1  ;;  %v1611_v6 = vshrl.u32 %v5492_v60, 16 }
  0xfa   : > { %v3819_v11 = vpop.f32.mrb[1].mxu0  ;;  %v3891_v51 = vpop.f32.mrb[1].mxu1 }
  0xfb   : > { %v5453_v41 = vadd.f32 %v3819_v11, %v3818_v9  ;;  %v5455_v55 = vadd.f32 %v3891_v51, %v3890_v43  ;;  %v3821_v58 = vpop.f32.mrb[2].mxu0  ;;  %v3893_v56 = vpop.f32.mrb[2].mxu1  ;;  %v1744_v11 = vrot.slane %v5317_v36, 1  ;;  %v1746_v51 = vrot.slane %v3714_v46, 1 }
  0xfc   : > { %v3822_v21 = vpop.f32.mrb[3].mxu0  ;;  %v3894_v8 = vpop.f32.mrb[3].mxu1 }
  0xfd   : > { %v5464_v50 = vadd.f32 %v3822_v21, %v3821_v58  ;;  %v5466_v39 = vadd.f32 %v3894_v8, %v3893_v56  ;;  %v3571_v58 = vld [vmem:[%s4645_s12 + $0x54] sm:$0xe]  ;;  %v3572_v56 = vld [vmem:[%s4645_s12 + $0x60] sm:$0xe] }
  0xfe   : > { %2856 = vmatmul.mubr.bf16.gmra.mrb[108].mxu0 %v1205_v29  ;;  %2953 = vmatmul.mubr.bf16.gmra.mrb[108].mxu1 %v5399_v22  ;;  %v1747_v29 = vrot.slane %v5339_v19, 1  ;;  %v5505_v21 = vld [vmem:[%s4645_s12 + $0xa4] ss:$0 sps:$4 sm:$0x11]   ;;  %v3715_v33 = vcombine.low %v3571_v58, %v5344_v44 }
  0xff   : > { %2960 = vmatprep.mubr.bf16.mxu1 %v1585_v63  ;;  %4290 = vmatprep.mubr.bf16.mxu0 %v5287_v1  ;;  %v3713_v1 = vcombine.low %v3569_v0, %v5300_v26  ;;  %v1606_v26 = vshll.u32 %v5474_v42, 16 }
 0x100   : > { %v1748_v19 = vsel %vm805_vm1, %v1746_v51, %v1747_v29  ;;  %v3544_v51 = vld [vmem:[%s4645_s12 + $0xb4] sm:$0xf]  ;;  %v5541_v29 = vld [vmem:[%s4645_s12 + $0xb8] sm:$0xf] }
 0x101   : > { %v3824_v12 = vpop.f32.mrb[4].mxu0  ;;  %v3896_v23 = vpop.f32.mrb[4].mxu1  ;;  %v1743_v62 = vrot.slane %v3713_v1, 1  ;;  %v1608_v2 = vrot.slane %v1606_v26, 1  ;;  %v1618_v1 = vshll.u32 %v5505_v21, 16 }
 0x102   : > { %v3825_v22 = vpop.f32.mrb[5].mxu0  ;;  %v3897_v27 = vpop.f32.mrb[5].mxu1  ;;  %v5536_v26 = vld [vmem:[%s4645_s12 + $0xb0] ss:$0 sps:$4 sm:$0x11]  }
 0x103   : > { %v5483_v24 = vadd.f32 %v3825_v22, %v3824_v12  ;;  %v5485_v25 = vadd.f32 %v3897_v27, %v3896_v23  ;;  %v3827_v48 = vpop.f32.mrb[6].mxu0  ;;  %v3899_v54 = vpop.f32.mrb[6].mxu1  ;;  %v1745_v31 = vsel %vm805_vm1, %v1743_v62, %v1744_v11  ;;  %v3716_v12 = vcombine.low %v3572_v56, %v5366_v61 }
 0x104   : > { %v3828_v32 = vpop.f32.mrb[7].mxu0  ;;  %v3900_v7 = vpop.f32.mrb[7].mxu1  ;;  %v1609_v22 = vsel %vm548_vm0, %v1604_v45, %v1608_v2  ;;  %v1749_v61 = vrot.slane %v3715_v33, 1  ;;  %v1620_v38 = vrot.slane %v1618_v1, 1  ;;  %v3576_v1 = vld [vmem:[%s4645_s12 + $0x90] sm:$0xe] }
 0x105   : > { %v5494_v9 = vadd.f32 %v3828_v32, %v3827_v48  ;;  %v5496_v43 = vadd.f32 %v3900_v7, %v3899_v54  ;;  %v1750_v54 = vrot.slane %v5361_v17, 1  ;;  %v3573_v32 = vld [vmem:[%s4645_s12 + $0x6c] sm:$0xe]  ;;  %v3574_v7 = vld [vmem:[%s4645_s12 + $0x78] sm:$0xe] }
 0x106   : > { %2961 = vmatmul.mubr.bf16.gmra.mrb[112].mxu1 %v5421_v15  ;;  %4291 = vmatmul.mubr.bf16.vlgmr.msra.gmra.mrb[112].mxu0 %v5292_v14  ;;  %v1613_v15 = vshll.u32 %v5492_v60, 16  ;;  %v3542_v14 = vld [vmem:[%s4645_s12 + $0xa8] sm:$0xf]  ;;  %v3717_v45 = vcombine.low %v3573_v32, %v5388_v20  ;;  %v3718_v4 = vcombine.low %v3574_v7, %v5410_v52  ;;  %v1630_v20 = vshll.u32 %v5536_v26, 16  ;;  %v3546_v32 = vld [vmem:[%s4645_s12 + $0xc0] sm:$0xf] }
 0x107   : > { %2968 = vmatprep.mubr.bf16.mxu1 %v1597_v47  ;;  %4294 = vmatprep.mubr.bf16.mxu0 %v1742_v57  ;;  %v5524_v44 = vcombine.low %v3542_v14, %v5510_v18  ;;  %v1752_v57 = vrot.slane %v3716_v12, 1  ;;  %v1751_v56 = vsel %vm805_vm1, %v1749_v61, %v1750_v54  ;;  %v5555_v52 = vcombine.low %v3544_v51, %v5541_v29  ;;  %v5572_v54 = vld [vmem:[%s4645_s12 + $0xbc] ss:$0 sps:$4 sm:$0x11]   ;;  %v5577_v7 = vld [vmem:[%s4645_s12 + $0xc4] sm:$0xf] }
 0x108   : > { %v1615_v27 = vrot.slane %v1613_v15, 1  ;;  %v1756_v12 = vrot.slane %v5405_v40, 1 }
 0x109   : > { %v3830_v8 = vpop.f32.mrb[8].mxu0  ;;  %v3902_v63 = vpop.f32.mrb[8].mxu1  ;;  %v1625_v62 = vshll.u32 %v5524_v44, 16  ;;  %v1754_v14 = vsel %vm805_vm1, %v1752_v57, %v1753_v28  ;;  %v1637_v57 = vshll.u32 %v5555_v52, 16 }
 0x10a   : > { %v3831_v59 = vpop.f32.mrb[9].mxu0  ;;  %v3903_v36 = vpop.f32.mrb[9].mxu1  ;;  %v1616_v47 = vor.u32 %v1615_v27, %v1611_v6  ;;  %v1755_v6 = vrot.slane %v3717_v45, 1  ;;  %v3575_v27 = vld [vmem:[%s4645_s12 + $0x84] sm:$0xe] }
 0x10b   : > { %v5515_v0 = vadd.f32 %v3831_v59, %v3830_v8  ;;  %v5517_v34 = vadd.f32 %v3903_v36, %v3902_v63  ;;  %v3833_v3 = vpop.f32.mrb[10].mxu0  ;;  %v3905_v35 = vpop.f32.mrb[10].mxu1  ;;  %v1623_v59 = vshrl.u32 %v5524_v44, 16  ;;  %v1627_v33 = vrot.slane %v1625_v62, 1 }
 0x10c   : > { %v3834_v23 = vpop.f32.mrb[11].mxu0  ;;  %v3906_v5 = vpop.f32.mrb[11].mxu1 }
 0x10d   : > { %v5526_v46 = vadd.f32 %v3834_v23, %v3833_v3  ;;  %v5528_v48 = vadd.f32 %v3906_v5, %v3905_v35  ;;  %v1758_v23 = vrot.slane %v3718_v4, 1  ;;  %v1759_v5 = vrot.slane %v5426_v10, 1 }
 0x10e   : > { %2969 = vmatmul.mubr.bf16.gmra.mrb[116].mxu1 %v5440_v53  ;;  %4295 = vmatmul.mubr.bf16.gmra.mrb[116].mxu0 %v1745_v31  ;;  %v1628_v61 = vor.u32 %v1627_v33, %v1623_v59  ;;  %v1635_v4 = vshrl.u32 %v5555_v52, 16  ;;  %v1639_v59 = vrot.slane %v1637_v57, 1 }
 0x10f   : > { %2976 = vmatprep.mubr.bf16.mxu1 %v1609_v22  ;;  %4298 = vmatprep.mubr.bf16.mxu0 %v1748_v19  ;;  %v1621_v19 = vsel %vm548_vm0, %v1616_v47, %v1620_v38  ;;  %v5567_v22 = vld [vmem:[%s6035_s2] ss:$0 sm:$0xff]  ;;  %v1757_v38 = vsel %vm805_vm1, %v1755_v6, %v1756_v12  ;;  %v1760_v62 = vsel %vm805_vm1, %v1758_v23, %v1759_v5  ;;  %v1765_v12 = vrot.slane %v5474_v42, 1  ;;  %v3578_v5 = vld [vmem:[%s4645_s12 + $0xa8] sm:$0xe] }
 0x110   : > { %v2416_v51 = vadd.f32 %v5453_v41, %v5567_v22  ;;  %v2419_v41 = vadd.f32 %v5464_v50, %v5567_v22  ;;  %v3577_v50 = vld [vmem:[%s4645_s12 + $0x9c] sm:$0xe] }
 0x111   : > { %v3836_v53 = vpop.f32.mrb[12].mxu0  ;;  %v3908_v11 = vpop.f32.mrb[12].mxu1 }
 0x112   : > { %v3837_v58 = vpop.f32.mrb[13].mxu0  ;;  %v3909_v17 = vpop.f32.mrb[13].mxu1 }
 0x113   : > { %v5546_v2 = vadd.f32 %v3837_v58, %v3836_v53  ;;  %v5548_v15 = vadd.f32 %v3909_v17, %v3908_v11  ;;  %v3839_v8 = vpop.f32.mrb[14].mxu0  ;;  %v3911_v63 = vpop.f32.mrb[14].mxu1  ;;  %v3719_v53 = vcombine.low %v3575_v27, %v5431_v16  ;;  %v3720_v11 = vcombine.low %v3576_v1, %v5450_v30 }
 0x114   : > { %v3840_v36 = vpop.f32.mrb[15].mxu0  ;;  %v3912_v31 = vpop.f32.mrb[15].mxu1  ;;  %v1642_v16 = vshll.u32 %v5572_v54, 16  ;;  %v5591_v30 = vcombine.low %v3546_v32, %v5577_v7  ;;  %v1640_v27 = vor.u32 %v1639_v59, %v1635_v4 }
 0x115   : > { %v5557_v3 = vadd.f32 %v3840_v36, %v3839_v8  ;;  %v5559_v35 = vadd.f32 %v3912_v31, %v3911_v63  ;;  %v1761_v33 = vrot.slane %v3719_v53, 1  ;;  %v1764_v6 = vrot.slane %v3720_v11, 1 }
 0x116   : > { %2977 = vmatmul.mubr.bf16.gmra.mrb[120].mxu1 %v5462_v49  ;;  %4299 = vmatmul.mubr.bf16.gmra.mrb[120].mxu0 %v1751_v56  ;;  %v1632_v49 = vrot.slane %v1630_v20, 1  ;;  %v1762_v20 = vrot.slane %v5445_v37, 1  ;;  %v1644_v1 = vrot.slane %v1642_v16, 1 }
 0x117   : > { %2984 = vmatprep.mubr.bf16.mxu1 %v1621_v19  ;;  %4302 = vmatprep.mubr.bf16.mxu0 %v1754_v14 }
 0x118   : > { %v1633_v14 = vsel %vm548_vm0, %v1628_v61, %v1632_v49  ;;  %v5607_v61 = vld [vmem:[%s4645_s12 + $0xc8] ss:$0 sps:$4 sm:$0x11]   ;;  %v1763_v42 = vsel %vm805_vm1, %v1761_v33, %v1762_v20  ;;  %v1771_v20 = vrot.slane %v5536_v26, 1 }
 0x119   : > { %v3842_v28 = vpop.f32.mrb[16].mxu0  ;;  %v3930_v40 = vpop.f32.mrb[16].mxu1 }
 0x11a   : > { %v3843_v10 = vpop.f32.mrb[17].mxu0  ;;  %v3931_v47 = vpop.f32.mrb[17].mxu1 }
 0x11b   : > { %v5585_v58 = vadd.f32 %v3843_v10, %v3842_v28  ;;  %v3932_v17 = vadd.f32 %v3931_v47, %v3930_v40  ;;  %v3845_v56 = vpop.f32.mrb[18].mxu0  ;;  %v3933_v45 = vpop.f32.mrb[18].mxu1  ;;  %v3548_v28 = vld [vmem:[%s4645_s12 + $0xcc] sm:$0xf]  ;;  %v5612_v40 = vld [vmem:[%s4645_s12 + $0xd0] sm:$0xf]  ;;  %v1766_v10 = vsel %vm805_vm1, %v1764_v6, %v1765_v12  ;;  %v3721_v47 = vcombine.low %v3577_v50, %v5479_v13 }
 0x11c   : > { %v3846_v8 = vpop.f32.mrb[19].mxu0  ;;  %v3934_v63 = vpop.f32.mrb[19].mxu1  ;;  %v1654_v13 = vshll.u32 %v5607_v61, 16  ;;  %v3580_v12 = vld [vmem:[%s4645_s12 + $0xc0] sm:$0xe] }
 0x11d   : > { %v5595_v36 = vadd.f32 %v3932_v17, %v2416_v51  ;;  %v5597_v31 = vadd.f32 %v3846_v8, %v3845_v56  ;;  %v3935_v19 = vadd.f32 %v3934_v63, %v3933_v45  ;;  %v1647_v56 = vshrl.u32 %v5591_v30, 16 }
 0x11e   : > { %2985 = vmatmul.mubr.bf16.gmra.mrb[124].mxu1 %v5492_v60  ;;  %4303 = vmatmul.mubr.bf16.gmra.mrb[124].mxu0 %v1757_v38  ;;  %v1649_v60 = vshll.u32 %v5591_v30, 16  ;;  %v3722_v38 = vcombine.low %v3578_v5, %v5510_v18  ;;  %v1645_v8 = vsel %vm548_vm0, %v1640_v27, %v1644_v1  ;;  %v5626_v18 = vcombine.low %v3548_v28, %v5612_v40  ;;  %v5642_v27 = vld [vmem:[%s4645_s12 + $0xd4] ss:$0 sps:$4 sm:$0x11]  }
 0x11f   : > { %v5602_v23 = vadd.f32 %v3935_v19, %v2419_v41  ;;  %2992 = vmatprep.mubr.bf16.mxu1 %v1633_v14  ;;  %4306 = vmatprep.mubr.bf16.mxu0 %v1760_v62  ;;  %v2424_v62 = vadd.f32 %v5483_v24, %v5567_v22  ;;  %v2427_v24 = vadd.f32 %v5494_v9, %v5567_v22  ;;  %v1767_v41 = vrot.slane %v3721_v47, 1  ;;  %v3579_v9 = vld [vmem:[%s4645_s12 + $0xb4] sm:$0xe] }
 0x120   : > { %v1651_v63 = vrot.slane %v1649_v60, 1  ;;  %v1768_v19 = vrot.slane %v5505_v21, 1  ;;  %v1770_v33 = vrot.slane %v3722_v38, 1  ;;  %v1656_v5 = vrot.slane %v1654_v13, 1 }
 0x121   : > { %v3848_v49 = vpop.f32.mrb[20].mxu0  ;;  %v3936_v57 = vpop.f32.mrb[20].mxu1  ;;  %v1661_v1 = vshll.u32 %v5626_v18, 16  ;;  %v3723_v28 = vcombine.low %v3579_v9, %v5541_v29  ;;  %v3724_v38 = vcombine.low %v3580_v12, %v5577_v7 }
 0x122   : > { %v3849_v37 = vpop.f32.mrb[21].mxu0  ;;  %v3937_v32 = vpop.f32.mrb[21].mxu1  ;;  %v1652_v50 = vor.u32 %v1651_v63, %v1647_v56  ;;  %v1769_v21 = vsel %vm805_vm1, %v1767_v41, %v1768_v19  ;;  %v1772_v26 = vsel %vm805_vm1, %v1770_v33, %v1771_v20  ;;  %v1774_v63 = vrot.slane %v5572_v54, 1  ;;  %v3581_v19 = vld [vmem:[%s4645_s12 + $0xcc] sm:$0xe]  ;;  %s3801_s12 = sshll.u32 %s6039_s16, 8 }
 0x123   : > { %v5620_v53 = vadd.f32 %v3849_v37, %v3848_v49  ;;  %v3938_v11 = vadd.f32 %v3937_v32, %v3936_v57  ;;  %v3851_v51 = vpop.f32.mrb[22].mxu0  ;;  %v3939_v17 = vpop.f32.mrb[22].mxu1  ;;  %v2432_v37 = vadd.f32 %v5515_v0, %v5567_v22  ;;  %v1663_v56 = vrot.slane %v1661_v1, 1  ;;  %s5943_s30 = scalar_lea.vmem %s6036_s3, %s3801_s12 }
 0x124   : > { %v3852_v45 = vpop.f32.mrb[23].mxu0  ;;  %v3940_v4 = vpop.f32.mrb[23].mxu1  ;;  %v2435_v0 = vadd.f32 %v5526_v46, %v5567_v22  ;;  %v1773_v7 = vrot.slane %v3723_v28, 1  ;;  %v1776_v41 = vrot.slane %v3724_v38, 1  ;;  %v1777_v46 = vrot.slane %v5607_v61, 1 }
 0x125   : > { %v5630_v14 = vadd.f32 %v3938_v11, %v2424_v62  ;;  %v5632_v59 = vadd.f32 %v3852_v45, %v3851_v51  ;;  %v3941_v16 = vadd.f32 %v3940_v4, %v3939_v17  ;;  %v1657_v51 = vsel %vm548_vm0, %v1652_v50, %v1656_v5 }
 0x126   : > { %2993 = vmatmul.mubr.bf16.gmra.mrb[128].mxu1 %v5524_v44  ;;  %4307 = vmatmul.mubr.bf16.gmra.mrb[128].mxu0 %v1763_v42  ;;  %v1659_v17 = vshrl.u32 %v5626_v18, 16  ;;  %v1666_v45 = vshll.u32 %v5642_v27, 16  ;;  %v2440_v50 = vadd.f32 %v5546_v2, %v5567_v22 }
 0x127   : > { %v5637_v6 = vadd.f32 %v3941_v16, %v2427_v24  ;;  %3000 = vmatprep.mubr.bf16.mxu1 %v1645_v8  ;;  %4310 = vmatprep.mubr.bf16.mxu0 %v1766_v10 }
 0x128   : > { %v1664_v24 = vor.u32 %v1663_v56, %v1659_v17  ;;  %v1668_v16 = vrot.slane %v1666_v45, 1 }
 0x129   : > { %v3854_v44 = vpop.f32.mrb[24].mxu0  ;;  %v3942_v60 = vpop.f32.mrb[24].mxu1 }
 0x12a   : > { %v3855_v49 = vpop.f32.mrb[25].mxu0  ;;  %v3943_v57 = vpop.f32.mrb[25].mxu1  ;;  %v1669_v61 = vsel %vm548_vm0, %v1664_v24, %v1668_v16 }
 0x12b   : > { %v5650_v32 = vadd.f32 %v3855_v49, %v3854_v44  ;;  %v3944_v42 = vadd.f32 %v3943_v57, %v3942_v60  ;;  %v3857_v10 = vpop.f32.mrb[26].mxu0  ;;  %v3945_v47 = vpop.f32.mrb[26].mxu1  ;;  %v3725_v60 = vcombine.low %v3581_v19, %v5612_v40 }
 0x12c   : > { %v3858_v62 = vpop.f32.mrb[27].mxu0  ;;  %v3946_v11 = vpop.f32.mrb[27].mxu1 }
 0x12d   : > { %v5658_v29 = vadd.f32 %v3944_v42, %v2432_v37  ;;  %v5660_v4 = vadd.f32 %v3858_v62, %v3857_v10  ;;  %v3947_v8 = vadd.f32 %v3946_v11, %v3945_v47  ;;  %v1779_v40 = vrot.slane %v3725_v60, 1 }
 0x12e   : > { %3001 = vmatmul.mubr.bf16.gmra.mrb[132].mxu1 %v5555_v52  ;;  %4311 = vmatmul.mubr.bf16.gmra.mrb[132].mxu0 %v1769_v21  ;;  %v1775_v52 = vsel %vm805_vm1, %v1773_v7, %v1774_v63  ;;  %v1778_v21 = vsel %vm805_vm1, %v1776_v41, %v1777_v46  ;;  %v1780_v10 = vrot.slane %v5642_v27, 1  ;;  %v2451_v7 = vadd.f32 %v5597_v31, %v5567_v22 }
 0x12f   : > { %v5664_v13 = vadd.f32 %v3947_v8, %v2435_v0  ;;  %3008 = vmatprep.mubr.bf16.mxu1 %v1657_v51  ;;  %4314 = vmatprep.mubr.bf16.mxu0 %v1772_v26  ;;  %v2443_v26 = vadd.f32 %v5557_v3, %v5567_v22  ;;  %v2448_v3 = vadd.f32 %v5585_v58, %v5567_v22 }
 0x130   : > { %v1781_v45 = vsel %vm805_vm1, %v1779_v40, %v1780_v10 }
 0x131   : > { %v3860_v33 = vpop.f32.mrb[28].mxu0  ;;  %v3948_v20 = vpop.f32.mrb[28].mxu1 }
 0x132   : > { %v3861_v9 = vpop.f32.mrb[29].mxu0  ;;  %v3949_v12 = vpop.f32.mrb[29].mxu1 }
 0x133   : > { %v5671_v54 = vadd.f32 %v3861_v9, %v3860_v33  ;;  %v3950_v5 = vadd.f32 %v3949_v12, %v3948_v20  ;;  %v3863_v1 = vpop.f32.mrb[30].mxu0  ;;  %v3951_v44 = vpop.f32.mrb[30].mxu1  ;;  %v2456_v33 = vadd.f32 %v5620_v53, %v5567_v22 }
 0x134   : > { %v3864_v49 = vpop.f32.mrb[31].mxu0  ;;  %v3952_v57 = vpop.f32.mrb[31].mxu1 }
 0x135   : > { %v5678_v28 = vadd.f32 %v3950_v5, %v2440_v50  ;;  %v5680_v37 = vadd.f32 %v3864_v49, %v3863_v1  ;;  %v3953_v2 = vadd.f32 %v3952_v57, %v3951_v44 }
 0x136   : > { %3009 = vmatmul.mubr.bf16.gmra.mrb[136].mxu1 %v5591_v30  ;;  %4315 = vmatmul.mubr.bf16.gmra.mrb[136].mxu0 %v1775_v52 }
 0x137   : > { %v5683_v42 = vadd.f32 %v3953_v2, %v2443_v26  ;;  %3016 = vmatprep.mubr.bf16.mxu1 %v1669_v61  ;;  %4318 = vmatprep.mubr.bf16.mxu0 %v1778_v21  ;;  %v2464_v21 = vadd.f32 %v5650_v32, %v5567_v22 }
 0x139   : > { %v3866_v47 = vpop.f32.mrb[32].mxu0  ;;  %v3954_v38 = vpop.f32.mrb[32].mxu1 }
 0x13a   : > { %v3867_v62 = vpop.f32.mrb[33].mxu0  ;;  %v3955_v11 = vpop.f32.mrb[33].mxu1 }
 0x13b   : > { %v5688_v51 = vadd.f32 %v3867_v62, %v3866_v47  ;;  %v3956_v17 = vadd.f32 %v3955_v11, %v3954_v38  ;;  %v3869_v56 = vpop.f32.mrb[34].mxu0  ;;  %v3957_v30 = vpop.f32.mrb[34].mxu1  ;;  %v2467_v38 = vadd.f32 %v5660_v4, %v5567_v22 }
 0x13c   : > { %v3870_v0 = vpop.f32.mrb[35].mxu0  ;;  %v3958_v8 = vpop.f32.mrb[35].mxu1 }
 0x13d   : > { %v5693_v27 = vadd.f32 %v3956_v17, %v2448_v3  ;;  %v3871_v63 = vadd.f32 %v3870_v0, %v3869_v56  ;;  %v3959_v24 = vadd.f32 %v3958_v8, %v3957_v30  ;;  %v2472_v0 = vadd.f32 %v5671_v54, %v5567_v22 }
 0x13e   : > { %3017 = vmatmul.mubr.bf16.gmra.mrb[140].mxu1 %v5626_v18  ;;  %4319 = vmatmul.mubr.bf16.gmra.mrb[140].mxu0 %v1781_v45  ;;  %v2459_v18 = vadd.f32 %v5632_v59, %v5567_v22 }
 0x13f   : > { %v5696_v58 = vadd.f32 %v3959_v24, %v2451_v7 }
 0x141   : > { %v3872_v16 = vpop.f32.mrb[36].mxu0  ;;  %v3960_v41 = vpop.f32.mrb[36].mxu1 }
 0x142   : > { %v3873_v46 = vpop.f32.mrb[37].mxu0  ;;  %v3961_v19 = vpop.f32.mrb[37].mxu1 }
 0x143   : > { %v5700_v20 = vadd.f32 %v3873_v46, %v3872_v16  ;;  %v3962_v9 = vadd.f32 %v3961_v19, %v3960_v41  ;;  %v3875_v31 = vpop.f32.mrb[38].mxu0  ;;  %v3963_v12 = vpop.f32.mrb[38].mxu1  ;;  %v2475_v46 = vadd.f32 %v5680_v37, %v5567_v22  ;;  %v2483_v37 = vadd.f32 %v3871_v63, %v5567_v22 }
 0x144   : > { %v3876_v52 = vpop.f32.mrb[39].mxu0  ;;  %v3964_v50 = vpop.f32.mrb[39].mxu1 }
 0x145   : > { %v5704_v5 = vadd.f32 %v3962_v9, %v2456_v33  ;;  %v3877_v1 = vadd.f32 %v3876_v52, %v3875_v31  ;;  %v3965_v44 = vadd.f32 %v3964_v50, %v3963_v12  ;;  %v2488_v63 = vadd.f32 %v5700_v20, %v5567_v22 }
 0x147   : > { %v5706_v60 = vadd.f32 %v3965_v44, %v2459_v18  ;;  %v2480_v18 = vadd.f32 %v5688_v51, %v5567_v22 }
 0x149   : > { %v3878_v49 = vpop.f32.mrb[40].mxu0  ;;  %v3966_v57 = vpop.f32.mrb[40].mxu1 }
 0x14a   : > { %v3879_v61 = vpop.f32.mrb[41].mxu0  ;;  %v3967_v53 = vpop.f32.mrb[41].mxu1 }
 0x14b   : > { %v5710_v26 = vadd.f32 %v3879_v61, %v3878_v49  ;;  %v3968_v2 = vadd.f32 %v3967_v53, %v3966_v57  ;;  %v3881_v40 = vpop.f32.mrb[42].mxu0  ;;  %v3969_v10 = vpop.f32.mrb[42].mxu1 }
 0x14c   : > { %v3882_v47 = vpop.f32.mrb[43].mxu0  ;;  %v3970_v59 = vpop.f32.mrb[43].mxu1 }
 0x14d   : > { %v5714_v62 = vadd.f32 %v3968_v2, %v2464_v21  ;;  %v5716_v11 = vadd.f32 %v3882_v47, %v3881_v40  ;;  %v3971_v3 = vadd.f32 %v3970_v59, %v3969_v10 }
 0x14f   : > { %v5718_v17 = vadd.f32 %v3971_v3, %v2467_v38 }
 0x151   : > { %v3884_v56 = vpop.f32.mrb[44].mxu0  ;;  %v3972_v30 = vpop.f32.mrb[44].mxu1 }
 0x152   : > { %v3885_v32 = vpop.f32.mrb[45].mxu0  ;;  %v3973_v45 = vpop.f32.mrb[45].mxu1 }
 0x153   : > { %v5722_v8 = vadd.f32 %v3885_v32, %v3884_v56  ;;  %v3974_v7 = vadd.f32 %v3973_v45, %v3972_v30  ;;  %v3887_v24 = vpop.f32.mrb[46].mxu0  ;;  %v3975_v16 = vpop.f32.mrb[46].mxu1 }
 0x154   : > { %v3888_v4 = vpop.f32.mrb[47].mxu0  ;;  %v3976_v41 = vpop.f32.mrb[47].mxu1 }
 0x155   : > { %v5726_v19 = vadd.f32 %v3974_v7, %v2472_v0  ;;  %v5728_v33 = vadd.f32 %v3888_v4, %v3887_v24  ;;  %v3977_v9 = vadd.f32 %v3976_v41, %v3975_v16 }
 0x157   : > { %v5730_v31 = vadd.f32 %v3977_v9, %v2475_v46 }
 0x159   : > { %v3978_v12 = vpop.f32.mrb[48].mxu1  ;;  %v4042_v52 = vpop.f32.mrb[48].mxu0 }
 0x15a   : > { %v3979_v54 = vpop.f32.mrb[49].mxu1  ;;  %v4043_v50 = vpop.f32.mrb[49].mxu0 }
 0x15b   : > { %v3980_v44 = vadd.f32 %v3979_v54, %v3978_v12  ;;  %v4044_v49 = vadd.f32 %v4043_v50, %v4042_v52  ;;  %v3981_v57 = vpop.f32.mrb[50].mxu1  ;;  %v4045_v61 = vpop.f32.mrb[50].mxu0 }
 0x15c   : > { %v3982_v53 = vpop.f32.mrb[51].mxu1  ;;  %v4046_v21 = vpop.f32.mrb[51].mxu0 }
 0x15d   : > { %v5735_v2 = vadd.f32 %v3980_v44, %v2480_v18  ;;  %v5738_v40 = vadd.f32 %v4044_v49, %v5595_v36  ;;  %v3983_v10 = vadd.f32 %v3982_v53, %v3981_v57  ;;  %v4047_v47 = vadd.f32 %v4046_v21, %v4045_v61 }
 0x15e   : > { %v2491_v36 = vadd.f32 %v3877_v1, %v5567_v22  ;;  %v2496_v1 = vadd.f32 %v5710_v26, %v5567_v22 }
 0x15f   : > { %v5740_v59 = vadd.f32 %v3983_v10, %v2483_v37  ;;  %v5743_v38 = vadd.f32 %v4047_v47, %v5602_v23 }
 0x161   : > { %v3984_v51 = vpop.f32.mrb[52].mxu1  ;;  %v4048_v3 = vpop.f32.mrb[52].mxu0 }
 0x162   : > { %v3985_v56 = vpop.f32.mrb[53].mxu1  ;;  %v4049_v30 = vpop.f32.mrb[53].mxu0 }
 0x163   : > { %v3986_v32 = vadd.f32 %v3985_v56, %v3984_v51  ;;  %v4050_v45 = vadd.f32 %v4049_v30, %v4048_v3  ;;  %v3987_v0 = vpop.f32.mrb[54].mxu1  ;;  %v4051_v7 = vpop.f32.mrb[54].mxu0 }
 0x164   : > { %v3988_v24 = vpop.f32.mrb[55].mxu1  ;;  %v4052_v16 = vpop.f32.mrb[55].mxu0 }
 0x165   : > { %v5748_v4 = vadd.f32 %v3986_v32, %v2488_v63  ;;  %v5751_v23 = vadd.f32 %v4050_v45, %v5630_v14  ;;  %v3989_v41 = vadd.f32 %v3988_v24, %v3987_v0  ;;  %v4053_v46 = vadd.f32 %v4052_v16, %v4051_v7 }
 0x166   : > { %v2499_v14 = vadd.f32 %v5716_v11, %v5567_v22  ;;  %v2504_v11 = vadd.f32 %v5722_v8, %v5567_v22 }
 0x167   : > { %v5753_v9 = vadd.f32 %v3989_v41, %v2491_v36  ;;  %v5756_v12 = vadd.f32 %v4053_v46, %v5637_v6 }
 0x169   : > { %v3990_v20 = vpop.f32.mrb[56].mxu1  ;;  %v4054_v52 = vpop.f32.mrb[56].mxu0 }
 0x16a   : > { %v3991_v54 = vpop.f32.mrb[57].mxu1  ;;  %v4055_v50 = vpop.f32.mrb[57].mxu0 }
 0x16b   : > { %v3992_v18 = vadd.f32 %v3991_v54, %v3990_v20  ;;  %v4056_v44 = vadd.f32 %v4055_v50, %v4054_v52  ;;  %v3993_v49 = vpop.f32.mrb[58].mxu1  ;;  %v4057_v57 = vpop.f32.mrb[58].mxu0 }
 0x16c   : > { %v3994_v61 = vpop.f32.mrb[59].mxu1  ;;  %v4058_v37 = vpop.f32.mrb[59].mxu0 }
 0x16d   : > { %v5762_v53 = vadd.f32 %v3992_v18, %v2496_v1  ;;  %v5765_v6 = vadd.f32 %v4056_v44, %v5658_v29  ;;  %v3995_v21 = vadd.f32 %v3994_v61, %v3993_v49  ;;  %v4059_v10 = vadd.f32 %v4058_v37, %v4057_v57 }
 0x16e   : > { %v2507_v29 = vadd.f32 %v5728_v33, %v5567_v22  ;;  %v2512_v33 = vadd.f32 %v5455_v55, %v5567_v22 }
 0x16f   : > { %v5767_v47 = vadd.f32 %v3995_v21, %v2499_v14  ;;  %v5770_v26 = vadd.f32 %v4059_v10, %v5664_v13 }
 0x171   : > { %v3996_v51 = vpop.f32.mrb[60].mxu1  ;;  %v4060_v3 = vpop.f32.mrb[60].mxu0 }
 0x172   : > { %v3997_v56 = vpop.f32.mrb[61].mxu1  ;;  %v4061_v30 = vpop.f32.mrb[61].mxu0 }
 0x173   : > { %v3998_v63 = vadd.f32 %v3997_v56, %v3996_v51  ;;  %v4062_v32 = vadd.f32 %v4061_v30, %v4060_v3  ;;  %v3999_v45 = vpop.f32.mrb[62].mxu1  ;;  %v4063_v0 = vpop.f32.mrb[62].mxu0 }
 0x174   : > { %v4000_v7 = vpop.f32.mrb[63].mxu1  ;;  %v4064_v36 = vpop.f32.mrb[63].mxu0 }
 0x175   : > { %v5776_v24 = vadd.f32 %v3998_v63, %v2504_v11  ;;  %v5779_v13 = vadd.f32 %v4062_v32, %v5678_v28  ;;  %v4001_v16 = vadd.f32 %v4000_v7, %v3999_v45  ;;  %v4065_v41 = vadd.f32 %v4064_v36, %v4063_v0 }
 0x176   : > { %v2515_v28 = vadd.f32 %v5466_v39, %v5567_v22  ;;  %v2520_v39 = vadd.f32 %v5485_v25, %v5567_v22 }
 0x177   : > { %v5781_v46 = vadd.f32 %v4001_v16, %v2507_v29  ;;  %v5784_v8 = vadd.f32 %v4065_v41, %v5683_v42 }
 0x179   : > { %v4002_v20 = vpop.f32.mrb[64].mxu1  ;;  %v4066_v52 = vpop.f32.mrb[64].mxu0 }
 0x17a   : > { %v4003_v54 = vpop.f32.mrb[65].mxu1  ;;  %v4067_v50 = vpop.f32.mrb[65].mxu0 }
 0x17b   : > { %v4004_v1 = vadd.f32 %v4003_v54, %v4002_v20  ;;  %v4068_v18 = vadd.f32 %v4067_v50, %v4066_v52  ;;  %v4005_v44 = vpop.f32.mrb[66].mxu1  ;;  %v4069_v49 = vpop.f32.mrb[66].mxu0 }
 0x17c   : > { %v4006_v57 = vpop.f32.mrb[67].mxu1  ;;  %v4070_v14 = vpop.f32.mrb[67].mxu0 }
 0x17d   : > { %v5790_v61 = vadd.f32 %v4004_v1, %v2512_v33  ;;  %v5793_v42 = vadd.f32 %v4068_v18, %v5693_v27  ;;  %v4007_v37 = vadd.f32 %v4006_v57, %v4005_v44  ;;  %v4071_v21 = vadd.f32 %v4070_v14, %v4069_v49 }
 0x17e   : > { %v2523_v27 = vadd.f32 %v5496_v43, %v5567_v22  ;;  %v2528_v43 = vadd.f32 %v5517_v34, %v5567_v22 }
 0x17f   : > { %v5795_v10 = vadd.f32 %v4007_v37, %v2515_v28  ;;  %v5798_v55 = vadd.f32 %v4071_v21, %v5696_v58 }
 0x181   : > { %v4008_v51 = vpop.f32.mrb[68].mxu1  ;;  %v4072_v3 = vpop.f32.mrb[68].mxu0 }
 0x182   : > { %v4009_v56 = vpop.f32.mrb[69].mxu1  ;;  %v4073_v30 = vpop.f32.mrb[69].mxu0 }
 0x183   : > { %v4010_v11 = vadd.f32 %v4009_v56, %v4008_v51  ;;  %v4074_v63 = vadd.f32 %v4073_v30, %v4072_v3  ;;  %v4011_v32 = vpop.f32.mrb[70].mxu1  ;;  %v4075_v45 = vpop.f32.mrb[70].mxu0 }
 0x184   : > { %v4012_v0 = vpop.f32.mrb[71].mxu1  ;;  %v4076_v29 = vpop.f32.mrb[71].mxu0 }
 0x185   : > { %v5804_v7 = vadd.f32 %v4010_v11, %v2520_v39  ;;  %v5807_v58 = vadd.f32 %v4074_v63, %v5704_v5  ;;  %v4013_v36 = vadd.f32 %v4012_v0, %v4011_v32  ;;  %v4077_v16 = vadd.f32 %v4076_v29, %v4075_v45 }
 0x186   : > { %v2531_v5 = vadd.f32 %v5528_v48, %v5567_v22  ;;  %v2536_v48 = vadd.f32 %v5548_v15, %v5567_v22 }
 0x187   : > { %v5809_v41 = vadd.f32 %v4013_v36, %v2523_v27  ;;  %v5812_v25 = vadd.f32 %v4077_v16, %v5706_v60 }
 0x189   : > { %v4014_v20 = vpop.f32.mrb[72].mxu1  ;;  %v4078_v52 = vpop.f32.mrb[72].mxu0 }
 0x18a   : > { %v4015_v54 = vpop.f32.mrb[73].mxu1  ;;  %v4079_v50 = vpop.f32.mrb[73].mxu0 }
 0x18b   : > { %v4016_v33 = vadd.f32 %v4015_v54, %v4014_v20  ;;  %v4080_v1 = vadd.f32 %v4079_v50, %v4078_v52  ;;  %v4017_v18 = vpop.f32.mrb[74].mxu1  ;;  %v4081_v44 = vpop.f32.mrb[74].mxu0 }
 0x18c   : > { %v4018_v49 = vpop.f32.mrb[75].mxu1  ;;  %v4082_v28 = vpop.f32.mrb[75].mxu0 }
 0x18d   : > { %v5818_v57 = vadd.f32 %v4016_v33, %v2528_v43  ;;  %v5821_v60 = vadd.f32 %v4080_v1, %v5714_v62  ;;  %v4019_v14 = vadd.f32 %v4018_v49, %v4017_v18  ;;  %v4083_v37 = vadd.f32 %v4082_v28, %v4081_v44 }
 0x18e   : > { %v2539_v62 = vadd.f32 %v5559_v35, %v5567_v22 }
 0x18f   : > { %v5823_v21 = vadd.f32 %v4019_v14, %v2531_v5  ;;  %v5826_v34 = vadd.f32 %v4083_v37, %v5718_v17 }
 0x191   : > { %v4020_v51 = vpop.f32.mrb[76].mxu1  ;;  %v4084_v3 = vpop.f32.mrb[76].mxu0 }
 0x192   : > { %v4021_v56 = vpop.f32.mrb[77].mxu1  ;;  %v4085_v30 = vpop.f32.mrb[77].mxu0 }
 0x193   : > { %v4022_v39 = vadd.f32 %v4021_v56, %v4020_v51  ;;  %v4086_v11 = vadd.f32 %v4085_v30, %v4084_v3  ;;  %v4023_v63 = vpop.f32.mrb[78].mxu1  ;;  %v4087_v32 = vpop.f32.mrb[78].mxu0 }
 0x194   : > { %v4024_v45 = vpop.f32.mrb[79].mxu1  ;;  %v4088_v27 = vpop.f32.mrb[79].mxu0 }
 0x195   : > { %v5832_v0 = vadd.f32 %v4022_v39, %v2536_v48  ;;  %v5835_v17 = vadd.f32 %v4086_v11, %v5726_v19  ;;  %v4025_v29 = vadd.f32 %v4024_v45, %v4023_v63  ;;  %v4089_v36 = vadd.f32 %v4088_v27, %v4087_v32 }
 0x197   : > { %v5837_v16 = vadd.f32 %v4025_v29, %v2539_v62  ;;  %v5840_v15 = vadd.f32 %v4089_v36, %v5730_v31 }
 0x199   : > { %v4090_v20 = vpop.f32.mrb[80].mxu0  ;;  %v4154_v52 = vpop.f32.mrb[80].mxu1 }
 0x19a   : > { %v4091_v54 = vpop.f32.mrb[81].mxu0  ;;  %v4155_v50 = vpop.f32.mrb[81].mxu1 }
 0x19b   : > { %v4092_v43 = vadd.f32 %v4091_v54, %v4090_v20  ;;  %v4156_v35 = vadd.f32 %v4155_v50, %v4154_v52  ;;  %v4093_v22 = vpop.f32.mrb[82].mxu0  ;;  %v4157_v33 = vpop.f32.mrb[82].mxu1 }
 0x19c   : > { %v4094_v1 = vpop.f32.mrb[83].mxu0  ;;  %v4158_v18 = vpop.f32.mrb[83].mxu1 }
 0x19d   : > { %v5843_v19 = vadd.f32 %v4092_v43, %v5735_v2  ;;  %v4095_v44 = vadd.f32 %v4094_v1, %v4093_v22  ;;  %v4159_v5 = vadd.f32 %v4158_v18, %v4157_v33  ;;  %v5846_v49 = vadd.f32 %v4156_v35, %v5738_v40 }
 0x19f   : > { %v5849_v31 = vadd.f32 %v4095_v44, %v5740_v59  ;;  %v5852_v28 = vadd.f32 %v4159_v5, %v5743_v38 }
 0x1a1   : > { %v4096_v14 = vpop.f32.mrb[84].mxu0  ;;  %v4160_v37 = vpop.f32.mrb[84].mxu1 }
 0x1a2   : > { %v4097_v51 = vpop.f32.mrb[85].mxu0  ;;  %v4161_v3 = vpop.f32.mrb[85].mxu1 }
 0x1a3   : > { %v4098_v56 = vadd.f32 %v4097_v51, %v4096_v14  ;;  %v4162_v30 = vadd.f32 %v4161_v3, %v4160_v37  ;;  %v4099_v48 = vpop.f32.mrb[86].mxu0  ;;  %v4163_v2 = vpop.f32.mrb[86].mxu1 }
 0x1a4   : > { %v4100_v39 = vpop.f32.mrb[87].mxu0  ;;  %v4164_v11 = vpop.f32.mrb[87].mxu1 }
 0x1a5   : > { %v5855_v63 = vadd.f32 %v4098_v56, %v5748_v4  ;;  %v4101_v40 = vadd.f32 %v4100_v39, %v4099_v48  ;;  %v4165_v32 = vadd.f32 %v4164_v11, %v4163_v2  ;;  %v5858_v59 = vadd.f32 %v4162_v30, %v5751_v23 }
 0x1a7   : > { %v5861_v38 = vadd.f32 %v4101_v40, %v5753_v9  ;;  %v5864_v62 = vadd.f32 %v4165_v32, %v5756_v12 }
 0x1a9   : > { %v4102_v45 = vpop.f32.mrb[88].mxu0  ;;  %v4166_v27 = vpop.f32.mrb[88].mxu1 }
 0x1aa   : > { %v4103_v29 = vpop.f32.mrb[89].mxu0  ;;  %v4167_v36 = vpop.f32.mrb[89].mxu1 }
 0x1ab   : > { %v4104_v20 = vadd.f32 %v4103_v29, %v4102_v45  ;;  %v4168_v52 = vadd.f32 %v4167_v36, %v4166_v27  ;;  %v4105_v54 = vpop.f32.mrb[90].mxu0  ;;  %v4169_v4 = vpop.f32.mrb[90].mxu1 }
 0x1ac   : > { %v4106_v50 = vpop.f32.mrb[91].mxu0  ;;  %v4170_v43 = vpop.f32.mrb[91].mxu1 }
 0x1ad   : > { %v5867_v35 = vadd.f32 %v4104_v20, %v5762_v53  ;;  %v4107_v23 = vadd.f32 %v4106_v50, %v4105_v54  ;;  %v4171_v22 = vadd.f32 %v4170_v43, %v4169_v4  ;;  %v5870_v9 = vadd.f32 %v4168_v52, %v5765_v6 }
 0x1af   : > { %v5873_v12 = vadd.f32 %v4107_v23, %v5767_v47  ;;  %v5876_v33 = vadd.f32 %v4171_v22, %v5770_v26 }
 0x1b1   : > { %v4108_v1 = vpop.f32.mrb[92].mxu0  ;;  %v4172_v18 = vpop.f32.mrb[92].mxu1 }
 0x1b2   : > { %v4109_v44 = vpop.f32.mrb[93].mxu0  ;;  %v4173_v5 = vpop.f32.mrb[93].mxu1 }
 0x1b3   : > { %v4110_v14 = vadd.f32 %v4109_v44, %v4108_v1  ;;  %v4174_v37 = vadd.f32 %v4173_v5, %v4172_v18  ;;  %v4111_v51 = vpop.f32.mrb[94].mxu0  ;;  %v4175_v53 = vpop.f32.mrb[94].mxu1 }
 0x1b4   : > { %v4112_v3 = vpop.f32.mrb[95].mxu0  ;;  %v4176_v56 = vpop.f32.mrb[95].mxu1 }
 0x1b5   : > { %v5879_v30 = vadd.f32 %v4110_v14, %v5776_v24  ;;  %v4113_v6 = vadd.f32 %v4112_v3, %v4111_v51  ;;  %v4177_v48 = vadd.f32 %v4176_v56, %v4175_v53  ;;  %v5882_v47 = vadd.f32 %v4174_v37, %v5779_v13 }
 0x1b7   : > { %v5885_v26 = vadd.f32 %v4113_v6, %v5781_v46  ;;  %v5888_v2 = vadd.f32 %v4177_v48, %v5784_v8 }
 0x1b9   : > { %v4114_v39 = vpop.f32.mrb[96].mxu0  ;;  %v4178_v11 = vpop.f32.mrb[96].mxu1 }
 0x1ba   : > { %v4115_v40 = vpop.f32.mrb[97].mxu0  ;;  %v4179_v32 = vpop.f32.mrb[97].mxu1 }
 0x1bb   : > { %v4116_v45 = vadd.f32 %v4115_v40, %v4114_v39  ;;  %v4180_v27 = vadd.f32 %v4179_v32, %v4178_v11  ;;  %v4117_v29 = vpop.f32.mrb[98].mxu0  ;;  %v4181_v24 = vpop.f32.mrb[98].mxu1 }
 0x1bc   : > { %v4118_v36 = vpop.f32.mrb[99].mxu0  ;;  %v4182_v20 = vpop.f32.mrb[99].mxu1 }
 0x1bd   : > { %v5891_v52 = vadd.f32 %v4116_v45, %v5790_v61  ;;  %v4119_v13 = vadd.f32 %v4118_v36, %v4117_v29  ;;  %v4183_v54 = vadd.f32 %v4182_v20, %v4181_v24  ;;  %v5894_v46 = vadd.f32 %v4180_v27, %v5793_v42 }
 0x1bf   : > { %v5897_v8 = vadd.f32 %v4119_v13, %v5795_v10  ;;  %v5900_v4 = vadd.f32 %v4183_v54, %v5798_v55 }
 0x1c1   : > { %v4120_v50 = vpop.f32.mrb[100].mxu0  ;;  %v4184_v43 = vpop.f32.mrb[100].mxu1 }
 0x1c2   : > { %v4121_v23 = vpop.f32.mrb[101].mxu0  ;;  %v4185_v22 = vpop.f32.mrb[101].mxu1 }
 0x1c3   : > { %v4122_v1 = vadd.f32 %v4121_v23, %v4120_v50  ;;  %v4186_v18 = vadd.f32 %v4185_v22, %v4184_v43  ;;  %v4123_v44 = vpop.f32.mrb[102].mxu0  ;;  %v4187_v61 = vpop.f32.mrb[102].mxu1 }
 0x1c4   : > { %v4124_v5 = vpop.f32.mrb[103].mxu0  ;;  %v4188_v14 = vpop.f32.mrb[103].mxu1 }
 0x1c5   : > { %v5903_v37 = vadd.f32 %v4122_v1, %v5804_v7  ;;  %v4125_v42 = vadd.f32 %v4124_v5, %v4123_v44  ;;  %v4189_v51 = vadd.f32 %v4188_v14, %v4187_v61  ;;  %v5906_v10 = vadd.f32 %v4186_v18, %v5807_v58 }
 0x1c7   : > { %v5909_v55 = vadd.f32 %v4125_v42, %v5809_v41  ;;  %v5912_v53 = vadd.f32 %v4189_v51, %v5812_v25 }
 0x1c9   : > { %v4126_v3 = vpop.f32.mrb[104].mxu0  ;;  %v4190_v56 = vpop.f32.mrb[104].mxu1 }
 0x1ca   : > { %v4127_v6 = vpop.f32.mrb[105].mxu0  ;;  %v4191_v48 = vpop.f32.mrb[105].mxu1 }
 0x1cb   : > { %v4128_v39 = vadd.f32 %v4127_v6, %v4126_v3  ;;  %v4192_v11 = vadd.f32 %v4191_v48, %v4190_v56  ;;  %v4129_v40 = vpop.f32.mrb[106].mxu0  ;;  %v4193_v7 = vpop.f32.mrb[106].mxu1 }
 0x1cc   : > { %v4130_v32 = vpop.f32.mrb[107].mxu0  ;;  %v4194_v45 = vpop.f32.mrb[107].mxu1 }
 0x1cd   : > { %v5915_v27 = vadd.f32 %v4128_v39, %v5818_v57  ;;  %v4131_v58 = vadd.f32 %v4130_v32, %v4129_v40  ;;  %v4195_v29 = vadd.f32 %v4194_v45, %v4193_v7  ;;  %v5918_v41 = vadd.f32 %v4192_v11, %v5821_v60 }
 0x1cf   : > { %v5921_v25 = vadd.f32 %v4131_v58, %v5823_v21  ;;  %v5924_v24 = vadd.f32 %v4195_v29, %v5826_v34 }
 0x1d1   : > { %v4132_v36 = vpop.f32.mrb[108].mxu0  ;;  %v4196_v20 = vpop.f32.mrb[108].mxu1 }
 0x1d2   : > { %v4133_v13 = vpop.f32.mrb[109].mxu0  ;;  %v4197_v54 = vpop.f32.mrb[109].mxu1 }
 0x1d3   : > { %v4134_v50 = vadd.f32 %v4133_v13, %v4132_v36  ;;  %v4198_v43 = vadd.f32 %v4197_v54, %v4196_v20  ;;  %v4135_v57 = vpop.f32.mrb[110].mxu0  ;;  %v4199_v23 = vpop.f32.mrb[110].mxu1 }
 0x1d4   : > { %v4136_v22 = vpop.f32.mrb[111].mxu0  ;;  %v4200_v1 = vpop.f32.mrb[111].mxu1 }
 0x1d5   : > { %v5927_v60 = vadd.f32 %v4134_v50, %v5832_v0  ;;  %v4137_v18 = vadd.f32 %v4136_v22, %v4135_v57  ;;  %v4201_v21 = vadd.f32 %v4200_v1, %v4199_v23  ;;  %v5930_v44 = vadd.f32 %v4198_v43, %v5835_v17 }
 0x1d7   : > { %v5933_v34 = vadd.f32 %v4137_v18, %v5837_v16  ;;  %v5936_v61 = vadd.f32 %v4201_v21, %v5840_v15 }
 0x1d9   : > { %v4202_v5 = vpop.f32.mrb[112].mxu1  ;;  %v4292_v14 = vpop.f32.mrb[112].mxu0 }
 0x1da   : > { %v3068_v42 = vadd.f32 %v4292_v14, %v5858_v59  ;;  %v4203_v51 = vpop.f32.mrb[113].mxu1  ;;  %v3059_v3 = vpop.f32.mrb[113].mxu0 }
 0x1db   : > { %v4204_v0 = vadd.f32 %v4203_v51, %v4202_v5  ;;  %v3060_v17 = vadd.f32 %v3059_v3, %v5846_v49  ;;  %v4205_v16 = vpop.f32.mrb[114].mxu1  ;;  %v4293_v15 = vpop.f32.mrb[114].mxu0 }
 0x1dc   : > { %v3188_v56 = vmax.f32 %v3068_v42, 0.0  ;;  %v3071_v6 = vadd.f32 %v4293_v15, %v5864_v62  ;;  %v4206_v59 = vpop.f32.mrb[115].mxu1  ;;  %v3062_v48 = vpop.f32.mrb[115].mxu0 }
 0x1dd   : > { %v3186_v39 = vmax.f32 %v3060_v17, 0.0  ;;  %v4207_v11 = vadd.f32 %v4206_v59, %v4205_v16  ;;  %v3063_v40 = vadd.f32 %v3062_v48, %v5852_v28  ;;  %v5949_v7 = vadd.f32 %v4204_v0, %v5843_v19 }
 0x1de   : > { %3220 = vst [vmem:[%s5943_s30 + $0x10] sm:$0xff] %v3188_v56  ;;  %v3189_v32 = vmax.f32 %v3071_v6, 0.0  ;;  %v3289_v13 = vmul.f32 %v3188_v56, %v3188_v56 }
 0x1df   : > { %3218 = vst [vmem:[%s5943_s30] sm:$0xff] %v3186_v39  ;;  %v3187_v49 = vmax.f32 %v3063_v40, 0.0  ;;  %v5954_v45 = vadd.f32 %v4207_v11, %v5849_v31  ;;  %v3287_v58 = vmul.f32 %v3186_v39, %v3186_v39 }
 0x1e0   : > { %3221 = vst [vmem:[%s5943_s30 + $0x18] sm:$0xff] %v3189_v32  ;;  %v3290_v1 = vmul.f32 %v3189_v32, %v3189_v32 }
 0x1e1   : > { %3219 = vst [vmem:[%s5943_s30 + $0x8] sm:$0xff] %v3187_v49  ;;  %v3250_v62 = vadd.f32 %v3187_v49, %v3186_v39  ;;  %v3288_v29 = vmul.f32 %v3187_v49, %v3187_v49  ;;  %v4208_v36 = vpop.f32.mrb[116].mxu1  ;;  %v4296_v20 = vpop.f32.mrb[116].mxu0 }
 0x1e2   : > { %v3084_v28 = vadd.f32 %v4296_v20, %v5882_v47  ;;  %v4209_v54 = vpop.f32.mrb[117].mxu1  ;;  %v3075_v19 = vpop.f32.mrb[117].mxu0 }
 0x1e3   : > { %v3251_v50 = vadd.f32 %v3250_v62, %v3188_v56  ;;  %v3319_v43 = vadd.f32 %v3288_v29, %v3287_v58  ;;  %v4210_v57 = vadd.f32 %v4209_v54, %v4208_v36  ;;  %v3076_v23 = vadd.f32 %v3075_v19, %v5870_v9  ;;  %v4211_v31 = vpop.f32.mrb[118].mxu1  ;;  %v4297_v22 = vpop.f32.mrb[118].mxu0 }
 0x1e4   : > { %v3192_v18 = vmax.f32 %v3084_v28, 0.0  ;;  %v3087_v21 = vadd.f32 %v4297_v22, %v5888_v2  ;;  %v4212_v5 = vpop.f32.mrb[119].mxu1  ;;  %v3078_v14 = vpop.f32.mrb[119].mxu0 }
 0x1e5   : > { %v3320_v42 = vadd.f32 %v3319_v43, %v3289_v13  ;;  %v3190_v47 = vmax.f32 %v3076_v23, 0.0  ;;  %v3252_v51 = vadd.f32 %v3251_v50, %v3189_v32  ;;  %v4213_v3 = vadd.f32 %v4212_v5, %v4211_v31 }
 0x1e6   : > { %3224 = vst [vmem:[%s5943_s30 + $0x30] sm:$0xff] %v3192_v18  ;;  %v3193_v0 = vmax.f32 %v3087_v21, 0.0  ;;  %v3079_v17 = vadd.f32 %v3078_v14, %v5876_v33  ;;  %v5964_v9 = vadd.f32 %v4210_v57, %v5855_v63  ;;  %v3293_v49 = vmul.f32 %v3192_v18, %v3192_v18 }
 0x1e7   : > { %3222 = vst [vmem:[%s5943_s30 + $0x20] sm:$0xff] %v3190_v47  ;;  %v3253_v16 = vadd.f32 %v3252_v51, %v3190_v47  ;;  %v3291_v15 = vmul.f32 %v3190_v47, %v3190_v47  ;;  %v3321_v56 = vadd.f32 %v3320_v42, %v3290_v1  ;;  %v5968_v2 = vadd.f32 %v4213_v3, %v5861_v38 }
 0x1e8   : > { %3225 = vst [vmem:[%s5943_s30 + $0x38] sm:$0xff] %v3193_v0  ;;  %v3191_v6 = vmax.f32 %v3079_v17, 0.0 }
 0x1e9   : > { %v3322_v59 = vadd.f32 %v3321_v56, %v3291_v15  ;;  %v4214_v48 = vpop.f32.mrb[120].mxu1  ;;  %v4300_v39 = vpop.f32.mrb[120].mxu0 }
 0x1ea   : > { %3223 = vst [vmem:[%s5943_s30 + $0x28] sm:$0xff] %v3191_v6  ;;  %v3254_v11 = vadd.f32 %v3253_v16, %v3191_v6  ;;  %v3292_v40 = vmul.f32 %v3191_v6, %v3191_v6  ;;  %v3100_v33 = vadd.f32 %v4300_v39, %v5906_v10  ;;  %v4215_v32 = vpop.f32.mrb[121].mxu1  ;;  %v3091_v63 = vpop.f32.mrb[121].mxu0 }
 0x1eb   : > { %v4216_v58 = vadd.f32 %v4215_v32, %v4214_v48  ;;  %v3092_v62 = vadd.f32 %v3091_v63, %v5894_v46  ;;  %v4217_v29 = vpop.f32.mrb[122].mxu1  ;;  %v4301_v38 = vpop.f32.mrb[122].mxu0  ;;  %v3294_v46 = vmul.f32 %v3193_v0, %v3193_v0 }
 0x1ec   : > { %v3255_v36 = vadd.f32 %v3254_v11, %v3192_v18  ;;  %v3323_v20 = vadd.f32 %v3322_v59, %v3292_v40  ;;  %v3196_v13 = vmax.f32 %v3100_v33, 0.0  ;;  %v3103_v28 = vadd.f32 %v4301_v38, %v5912_v53  ;;  %v4218_v54 = vpop.f32.mrb[123].mxu1  ;;  %v3094_v19 = vpop.f32.mrb[123].mxu0 }
 0x1ed   : > { %v3194_v50 = vmax.f32 %v3092_v62, 0.0  ;;  %v4219_v10 = vadd.f32 %v4218_v54, %v4217_v29  ;;  %v3095_v43 = vadd.f32 %v3094_v19, %v5900_v4  ;;  %v5977_v57 = vadd.f32 %v4216_v58, %v5867_v35 }
 0x1ee   : > { %v3324_v23 = vadd.f32 %v3323_v20, %v3293_v49  ;;  %3228 = vst [vmem:[%s5943_s30 + $0x50] sm:$0xff] %v3196_v13  ;;  %v3256_v31 = vadd.f32 %v3255_v36, %v3193_v0  ;;  %v3197_v22 = vmax.f32 %v3103_v28, 0.0  ;;  %v3297_v17 = vmul.f32 %v3196_v13, %v3196_v13 }
 0x1ef   : > { %3226 = vst [vmem:[%s5943_s30 + $0x40] sm:$0xff] %v3194_v50  ;;  %v3295_v1 = vmul.f32 %v3194_v50, %v3194_v50  ;;  %v3195_v18 = vmax.f32 %v3095_v43, 0.0  ;;  %v5982_v53 = vadd.f32 %v4219_v10, %v5873_v12 }
 0x1f0   : > { %v3257_v21 = vadd.f32 %v3256_v31, %v3194_v50  ;;  %v3325_v5 = vadd.f32 %v3324_v23, %v3294_v46  ;;  %3229 = vst [vmem:[%s5943_s30 + $0x58] sm:$0xff] %v3197_v22  ;;  %v3298_v49 = vmul.f32 %v3197_v22, %v3197_v22 }
 0x1f1   : > { %3227 = vst [vmem:[%s5943_s30 + $0x48] sm:$0xff] %v3195_v18  ;;  %v3296_v14 = vmul.f32 %v3195_v18, %v3195_v18  ;;  %v4220_v4 = vpop.f32.mrb[124].mxu1  ;;  %v4304_v42 = vpop.f32.mrb[124].mxu0 }
 0x1f2   : > { %v3326_v35 = vadd.f32 %v3325_v5, %v3295_v1  ;;  %v3258_v47 = vadd.f32 %v3257_v21, %v3195_v18  ;;  %v3116_v51 = vadd.f32 %v4304_v42, %v5930_v44  ;;  %v4221_v3 = vpop.f32.mrb[125].mxu1  ;;  %v3107_v0 = vpop.f32.mrb[125].mxu0 }
 0x1f3   : > { %v4222_v16 = vadd.f32 %v4221_v3, %v4220_v4  ;;  %v3108_v15 = vadd.f32 %v3107_v0, %v5918_v41  ;;  %v4223_v12 = vpop.f32.mrb[126].mxu1  ;;  %v4305_v56 = vpop.f32.mrb[126].mxu0 }
 0x1f4   : > { %v3259_v6 = vadd.f32 %v3258_v47, %v3196_v13  ;;  %v3327_v59 = vadd.f32 %v3326_v35, %v3296_v14  ;;  %v3200_v48 = vmax.f32 %v3116_v51, 0.0  ;;  %v3119_v39 = vadd.f32 %v4305_v56, %v5936_v61  ;;  %v4224_v11 = vpop.f32.mrb[127].mxu1  ;;  %v3110_v40 = vpop.f32.mrb[127].mxu0 }
 0x1f5   : > { %v3198_v33 = vmax.f32 %v3108_v15, 0.0  ;;  %v4225_v44 = vadd.f32 %v4224_v11, %v4223_v12  ;;  %v3111_v32 = vadd.f32 %v3110_v40, %v5924_v24  ;;  %v2987_v63 = vadd.f32 %v4222_v16, %v5879_v30 }
 0x1f6   : > { %v3328_v41 = vadd.f32 %v3327_v59, %v3297_v17  ;;  %3232 = vst [vmem:[%s5943_s30 + $0x70] sm:$0xff] %v3200_v48  ;;  %v3260_v58 = vadd.f32 %v3259_v6, %v3197_v22  ;;  %v3201_v62 = vmax.f32 %v3119_v39, 0.0  ;;  %v3301_v43 = vmul.f32 %v3200_v48, %v3200_v48 }
 0x1f7   : > { %3230 = vst [vmem:[%s5943_s30 + $0x60] sm:$0xff] %v3198_v33  ;;  %v3299_v29 = vmul.f32 %v3198_v33, %v3198_v33  ;;  %v3199_v38 = vmax.f32 %v3111_v32, 0.0  ;;  %v2990_v61 = vadd.f32 %v4225_v44, %v5885_v26 }
 0x1f8   : > { %v3261_v36 = vadd.f32 %v3260_v58, %v3198_v33  ;;  %v3329_v20 = vadd.f32 %v3328_v41, %v3298_v49  ;;  %3233 = vst [vmem:[%s5943_s30 + $0x78] sm:$0xff] %v3201_v62  ;;  %v3302_v47 = vmul.f32 %v3201_v62, %v3201_v62 }
 0x1f9   : > { %3231 = vst [vmem:[%s5943_s30 + $0x68] sm:$0xff] %v3199_v38  ;;  %v3300_v13 = vmul.f32 %v3199_v38, %v3199_v38  ;;  %v4226_v28 = vpop.f32.mrb[128].mxu1  ;;  %v4308_v54 = vpop.f32.mrb[128].mxu0 }
 0x1fa   : > { %v3330_v24 = vadd.f32 %v3329_v20, %v3299_v29  ;;  %v3262_v19 = vadd.f32 %v3261_v36, %v3199_v38  ;;  %v3132_v30 = vadd.f32 %v4308_v54, %v5964_v9  ;;  %v4227_v50 = vpop.f32.mrb[129].mxu1  ;;  %v3123_v10 = vpop.f32.mrb[129].mxu0 }
 0x1fb   : > { %v4228_v46 = vadd.f32 %v4227_v50, %v4226_v28  ;;  %v3124_v23 = vadd.f32 %v3123_v10, %v5949_v7  ;;  %v4229_v31 = vpop.f32.mrb[130].mxu1  ;;  %v4309_v26 = vpop.f32.mrb[130].mxu0 }
 0x1fc   : > { %v3263_v22 = vadd.f32 %v3262_v19, %v3200_v48  ;;  %v3331_v1 = vadd.f32 %v3330_v24, %v3300_v13  ;;  %v3204_v18 = vmax.f32 %v3132_v30, 0.0  ;;  %v3135_v21 = vadd.f32 %v4309_v26, %v5968_v2  ;;  %v4230_v5 = vpop.f32.mrb[131].mxu1  ;;  %v3126_v14 = vpop.f32.mrb[131].mxu0 }
 0x1fd   : > { %v3202_v4 = vmax.f32 %v3124_v23, 0.0  ;;  %v4231_v9 = vadd.f32 %v4230_v5, %v4229_v31  ;;  %v3127_v42 = vadd.f32 %v3126_v14, %v5954_v45  ;;  %v2995_v35 = vadd.f32 %v4228_v46, %v5891_v52 }
 0x1fe   : > { %v3332_v7 = vadd.f32 %v3331_v1, %v3301_v43  ;;  %3236 = vst [vmem:[%s5943_s30 + $0x90] sm:$0xff] %v3204_v18  ;;  %v3264_v51 = vadd.f32 %v3263_v22, %v3201_v62  ;;  %v3205_v3 = vmax.f32 %v3135_v21, 0.0  ;;  %v3305_v11 = vmul.f32 %v3204_v18, %v3204_v18 }
 0x1ff   : > { %3234 = vst [vmem:[%s5943_s30 + $0x80] sm:$0xff] %v3202_v4  ;;  %v3303_v0 = vmul.f32 %v3202_v4, %v3202_v4  ;;  %v3203_v17 = vmax.f32 %v3127_v42, 0.0  ;;  %v2998_v2 = vadd.f32 %v4231_v9, %v5897_v8 }
 0x200   : > { %v3265_v16 = vadd.f32 %v3264_v51, %v3202_v4  ;;  %v3333_v15 = vadd.f32 %v3332_v7, %v3302_v47  ;;  %3237 = vst [vmem:[%s5943_s30 + $0x98] sm:$0xff] %v3205_v3  ;;  %v3306_v13 = vmul.f32 %v3205_v3, %v3205_v3 }
 0x201   : > { %3235 = vst [vmem:[%s5943_s30 + $0x88] sm:$0xff] %v3203_v17  ;;  %v3304_v12 = vmul.f32 %v3203_v17, %v3203_v17  ;;  %v4232_v56 = vpop.f32.mrb[132].mxu1  ;;  %v4312_v6 = vpop.f32.mrb[132].mxu0 }
 0x202   : > { %v3334_v45 = vadd.f32 %v3333_v15, %v3303_v0  ;;  %v3266_v59 = vadd.f32 %v3265_v16, %v3203_v17  ;;  %v3148_v52 = vadd.f32 %v4312_v6, %v2987_v63  ;;  %v4233_v48 = vpop.f32.mrb[133].mxu1  ;;  %v3139_v39 = vpop.f32.mrb[133].mxu0 }
 0x203   : > { %v4234_v40 = vadd.f32 %v4233_v48, %v4232_v56  ;;  %v3140_v33 = vadd.f32 %v3139_v39, %v5977_v57  ;;  %v4235_v44 = vpop.f32.mrb[134].mxu1  ;;  %v4313_v32 = vpop.f32.mrb[134].mxu0 }
 0x204   : > { %v3267_v8 = vadd.f32 %v3266_v59, %v3204_v18  ;;  %v3335_v49 = vadd.f32 %v3334_v45, %v3304_v12  ;;  %v3208_v41 = vmax.f32 %v3148_v52, 0.0  ;;  %v3151_v58 = vadd.f32 %v4313_v32, %v2990_v61  ;;  %v4236_v62 = vpop.f32.mrb[135].mxu1  ;;  %v3142_v29 = vpop.f32.mrb[135].mxu0 }
 0x205   : > { %v3206_v38 = vmax.f32 %v3140_v33, 0.0  ;;  %v4237_v63 = vadd.f32 %v4236_v62, %v4235_v44  ;;  %v3143_v36 = vadd.f32 %v3142_v29, %v5982_v53  ;;  %v3003_v20 = vadd.f32 %v4234_v40, %v5903_v37 }
 0x206   : > { %v3336_v28 = vadd.f32 %v3335_v49, %v3305_v11  ;;  %3240 = vst [vmem:[%s5943_s30 + $0xb0] sm:$0xff] %v3208_v41  ;;  %v3268_v57 = vadd.f32 %v3267_v8, %v3205_v3  ;;  %v3209_v54 = vmax.f32 %v3151_v58, 0.0  ;;  %v3309_v22 = vmul.f32 %v3208_v41, %v3208_v41 }
 0x207   : > { %3238 = vst [vmem:[%s5943_s30 + $0xa0] sm:$0xff] %v3206_v38  ;;  %v3307_v24 = vmul.f32 %v3206_v38, %v3206_v38  ;;  %v3207_v19 = vmax.f32 %v3143_v36, 0.0  ;;  %v3006_v61 = vadd.f32 %v4237_v63, %v5909_v55 }
 0x208   : > { %v3269_v30 = vadd.f32 %v3268_v57, %v3206_v38  ;;  %v3337_v50 = vadd.f32 %v3336_v28, %v3306_v13  ;;  %3241 = vst [vmem:[%s5943_s30 + $0xb8] sm:$0xff] %v3209_v54  ;;  %v3310_v17 = vmul.f32 %v3209_v54, %v3209_v54 }
 0x209   : > { %3239 = vst [vmem:[%s5943_s30 + $0xa8] sm:$0xff] %v3207_v19  ;;  %v3308_v10 = vmul.f32 %v3207_v19, %v3207_v19  ;;  %v4238_v43 = vpop.f32.mrb[136].mxu1  ;;  %v4316_v46 = vpop.f32.mrb[136].mxu0 }
 0x20a   : > { %v3338_v53 = vadd.f32 %v3337_v50, %v3307_v24  ;;  %v3270_v23 = vadd.f32 %v3269_v30, %v3207_v19  ;;  %v3164_v37 = vadd.f32 %v4316_v46, %v3003_v20  ;;  %v4239_v31 = vpop.f32.mrb[137].mxu1  ;;  %v3155_v26 = vpop.f32.mrb[137].mxu0 }
 0x20b   : > { %v4240_v1 = vadd.f32 %v4239_v31, %v4238_v43  ;;  %v3156_v18 = vadd.f32 %v3155_v26, %v2995_v35  ;;  %v4241_v21 = vpop.f32.mrb[138].mxu1  ;;  %v4317_v5 = vpop.f32.mrb[138].mxu0 }
 0x20c   : > { %v3271_v55 = vadd.f32 %v3270_v23, %v3208_v41  ;;  %v3339_v14 = vadd.f32 %v3338_v53, %v3308_v10  ;;  %v3212_v4 = vmax.f32 %v3164_v37, 0.0  ;;  %v3167_v9 = vadd.f32 %v4317_v5, %v3006_v61  ;;  %v4242_v42 = vpop.f32.mrb[139].mxu1  ;;  %v3158_v47 = vpop.f32.mrb[139].mxu0 }
 0x20d   : > { %v3210_v7 = vmax.f32 %v3156_v18, 0.0  ;;  %v4243_v51 = vadd.f32 %v4242_v42, %v4241_v21  ;;  %v3159_v3 = vadd.f32 %v3158_v47, %v2998_v2  ;;  %v3011_v0 = vadd.f32 %v4240_v1, %v5915_v27 }
 0x20e   : > { %v3340_v16 = vadd.f32 %v3339_v14, %v3309_v22  ;;  %3244 = vst [vmem:[%s5943_s30 + $0xd0] sm:$0xff] %v3212_v4  ;;  %v3272_v35 = vadd.f32 %v3271_v55, %v3209_v54  ;;  %v3213_v15 = vmax.f32 %v3167_v9, 0.0  ;;  %v3313_v49 = vmul.f32 %v3212_v4, %v3212_v4 }
 0x20f   : > { %3242 = vst [vmem:[%s5943_s30 + $0xc0] sm:$0xff] %v3210_v7  ;;  %v3311_v12 = vmul.f32 %v3210_v7, %v3210_v7  ;;  %v3211_v56 = vmax.f32 %v3159_v3, 0.0  ;;  %v3014_v6 = vadd.f32 %v4243_v51, %v5921_v25 }
 0x210   : > { %v3273_v45 = vadd.f32 %v3272_v35, %v3210_v7  ;;  %v3341_v59 = vadd.f32 %v3340_v16, %v3310_v17  ;;  %3245 = vst [vmem:[%s5943_s30 + $0xd8] sm:$0xff] %v3213_v15  ;;  %v3314_v20 = vmul.f32 %v3213_v15, %v3213_v15 }
 0x211   : > { %3243 = vst [vmem:[%s5943_s30 + $0xc8] sm:$0xff] %v3211_v56  ;;  %v3312_v52 = vmul.f32 %v3211_v56, %v3211_v56  ;;  %v4244_v48 = vpop.f32.mrb[140].mxu1  ;;  %v4320_v39 = vpop.f32.mrb[140].mxu0 }
 0x212   : > { %v3342_v2 = vadd.f32 %v3341_v59, %v3311_v12  ;;  %v3274_v11 = vadd.f32 %v3273_v45, %v3211_v56  ;;  %v4245_v27 = vpop.f32.mrb[141].mxu1  ;;  %v3171_v40 = vpop.f32.mrb[141].mxu0 }
 0x213   : > { %v4246_v33 = vadd.f32 %v4245_v27, %v4244_v48  ;;  %v3172_v44 = vadd.f32 %v3171_v40, %v3011_v0  ;;  %v4247_v32 = vpop.f32.mrb[142].mxu1  ;;  %v4321_v8 = vpop.f32.mrb[142].mxu0 }
 0x214   : > { %v3275_v41 = vadd.f32 %v3274_v11, %v3212_v4  ;;  %v3343_v58 = vadd.f32 %v3342_v2, %v3312_v52  ;;  %v4248_v25 = vpop.f32.mrb[143].mxu1  ;;  %v3174_v62 = vpop.f32.mrb[143].mxu0 }
 0x215   : > { %v3019_v29 = vadd.f32 %v4246_v33, %v5927_v60  ;;  %v3214_v38 = vmax.f32 %v3172_v44, 0.0  ;;  %v4249_v63 = vadd.f32 %v4248_v25, %v4247_v32  ;;  %v3175_v36 = vadd.f32 %v3174_v62, %v3014_v6 }
 0x216   : > { %v3344_v13 = vadd.f32 %v3343_v58, %v3313_v49  ;;  %v3276_v28 = vadd.f32 %v3275_v41, %v3213_v15 }
 0x217   : > { %v3180_v57 = vadd.f32 %v4320_v39, %v3019_v29  ;;  %3246 = vst [vmem:[%s5943_s30 + $0xe0] sm:$0xff] %v3214_v38  ;;  %v3315_v54 = vmul.f32 %v3214_v38, %v3214_v38  ;;  %v3022_v24 = vadd.f32 %v4249_v63, %v5933_v34  ;;  %v3215_v19 = vmax.f32 %v3175_v36, 0.0 }
 0x218   : > { %v3277_v61 = vadd.f32 %v3276_v28, %v3214_v38  ;;  %v3345_v30 = vadd.f32 %v3344_v13, %v3314_v20 }
 0x219   : > { %v3216_v50 = vmax.f32 %v3180_v57, 0.0  ;;  %v3183_v10 = vadd.f32 %v4321_v8, %v3022_v24  ;;  %3247 = vst [vmem:[%s5943_s30 + $0xe8] sm:$0xff] %v3215_v19  ;;  %v3316_v60 = vmul.f32 %v3215_v19, %v3215_v19 }
 0x21a   : > { %v3346_v43 = vadd.f32 %v3345_v30, %v3315_v54  ;;  %v3278_v46 = vadd.f32 %v3277_v61, %v3215_v19 }
 0x21b   : > { %3248 = vst [vmem:[%s5943_s30 + $0xf0] sm:$0xff] %v3216_v50  ;;  %v3317_v53 = vmul.f32 %v3216_v50, %v3216_v50  ;;  %v3217_v23 = vmax.f32 %v3183_v10, 0.0 }
 0x21c   : > { %v3279_v37 = vadd.f32 %v3278_v46, %v3216_v50  ;;  %v3347_v31 = vadd.f32 %v3346_v43, %v3316_v60 }
 0x21d   : > { %3249 = vst [vmem:[%s5943_s30 + $0xf8] sm:$0xff] %v3217_v23  ;;  %v3318_v26 = vmul.f32 %v3217_v23, %v3217_v23 }
 0x21e   : > { %v3280_v22 = vadd.f32 %v3279_v37, %v3217_v23  ;;  %v3348_v1 = vadd.f32 %v3347_v31, %v3317_v53 }
 0x220   : > { %v3281_v34 = vrot.slane %v3280_v22, 4  ;;  %v3349_v18 = vadd.f32 %v3348_v1, %v3318_v26 }
 0x222   : > { %v3282_v21 = vadd.f32 %v3281_v34, %v3280_v22  ;;  %v3350_v5 = vrot.slane %v3349_v18, 4 }
 0x224   : > { %v3283_v55 = vrot.slane %v3282_v21, 2  ;;  %v3351_v14 = vadd.f32 %v3350_v5, %v3349_v18 }
 0x226   : > { %v3284_v4 = vadd.f32 %v3283_v55, %v3282_v21  ;;  %v3352_v9 = vrot.slane %v3351_v14, 2 }
 0x228   : > { %v3285_v42 = vrot.slane %v3284_v4, 1  ;;  %v3353_v47 = vadd.f32 %v3352_v9, %v3351_v14 }
 0x22a   : > { %v3354_v7 = vrot.slane %v3353_v47, 1  ;;  %v3286_v51 = vadd.f32 %v3285_v42, %v3284_v4 }
 0x22c   : > { %v3355_v3 = vadd.f32 %v3354_v7, %v3353_v47 }
 0x22e   : > { %v3357_v0 = vsel %vm3356_vm2, %v3286_v51, %v3355_v3 }
 0x22f   : > { %3358 = vst [vmem:[%s208_s8] sm:$0x3] %v3357_v0 }
 0x230 PF: > { %s15_s15 = sadd.s32 1, %s4577_s15  }
 0x231   : > { %p12_p4 = scmp.ge.s32.totalorder %s15_s15, 4  }
 0x233   :  { %14 = sbr.rel (!%p12_p4) target bundleno = 1 (0x1), region = 76 }

</bundles_post_ra>
